<compile_context>
chip_gen: v5e
topology: v5e:2x2
jax: 0.10.0
libtpu: 0.0.40
codegen_flags: <defaults>
</compile_context>

<pallas_src>
import jax
import jax.numpy as jnp
from jax.experimental import pallas as pl
from jax.experimental.pallas import tpu as pltpu


# -----------------------------------------------------------------------------
# Plain-JAX helpers used only for deterministic parameter initialization
# (mirrors pykan's extend_grid / B_batch / curve2coef).
# -----------------------------------------------------------------------------
def extend_grid(grid, k):
    # grid: (D, G+1)
    h = (grid[:, -1:] - grid[:, :1]) / (grid.shape[1] - 1)
    for _ in range(k):
        grid = jnp.concatenate([grid[:, :1] - h, grid, grid[:, -1:] + h], axis=1)
    return grid  # (D, G+1+2k)


def b_batch(x, grid, k):
    # x: (D, N), grid: (D, G+1)  ->  basis values (D, G+k, N)
    grid = extend_grid(grid, k)
    ge = grid[:, :, None]          # (D, P, 1)
    xe = x[:, None, :]             # (D, 1, N)
    value = ((xe >= ge[:, :-1]) & (xe < ge[:, 1:])).astype(x.dtype)
    for p in range(1, k + 1):
        value = ((xe - ge[:, :-(p + 1)]) / (ge[:, p:-1] - ge[:, :-(p + 1)]) * value[:, :-1]
                 + (ge[:, p + 1:] - xe) / (ge[:, p + 1:] - ge[:, 1:-p]) * value[:, 1:])
    return value


def curve2coef(x_eval, y_eval, grid, k):
    # Least-squares fit coef s.t. sum_j coef[d,j] B_j(x_eval[d]) ~= y_eval[d].
    mat = jnp.transpose(b_batch(x_eval, grid, k), (0, 2, 1))      # (D, N, nb)
    ata = jnp.einsum('dnj,dnk->djk', mat, mat)
    aty = jnp.einsum('dnj,dn->dj', mat, y_eval)
    nb = ata.shape[-1]
    coef = jnp.linalg.solve(ata + 1e-8 * jnp.eye(nb, dtype=ata.dtype), aty[..., None])[..., 0]
    return coef                                                   # (D, nb)


def _round_up(x, m):
    return ((x + m - 1) // m) * m


TBL = 128   # samples per grid tile (one full lane width); keeps live vregs bounded


# -----------------------------------------------------------------------------
# Fused Pallas kernel: L x (per-feature B-spline activation + Linear layer).
# Transposed layout: activations are (features_on_sublanes, 128 samples_on_lanes).
# Knots / reciprocal denominators are compile-time constants; coef & bias are
# lane-replicated VMEM tables.
# -----------------------------------------------------------------------------
def _make_fused_kernel(layer_meta, knots, rden, k, nb):
    P = len(knots)

    def spline_chunk(hc, coef_rows):
        # hc: (8, TBL) f32 chunk of activations (8 feature rows, 128 samples).
        # coef_rows[j]: (8, TBL) lane-replicated spline coefficients for basis j.
        # Hoisted knot differences d[j] = x - g[j]; reused by seed and all levels.
        d = [hc - knots[j] for j in range(P)]

        # Order-0 seed via step differences: 1_{g[j] <= x < g[j+1]}
        #   = (x >= g[j]) - (x >= g[j+1])   (exact for a sorted grid).
        ge_prev = (hc >= knots[0]).astype(jnp.float32)
        basis = []
        for j in range(1, P):
            ge_cur = (hc >= knots[j]).astype(jnp.float32)
            basis.append(ge_prev - ge_cur)
            ge_prev = ge_cur

        # Cox-de Boor recursion with baked reciprocal denominators (no divides):
        #   B_j^p = (x-g[j]) * r1 * B_j^{p-1} - (x-g[j+p+1]) * r2 * B_{j+1}^{p-1}
        for p in range(1, k + 1):
            new_basis = []
            for j in range(P - p - 1):
                r1 = rden[p - 1][j]
                r2 = rden[p - 1][j + 1]
                if r1 == r2:   # uniform grid: factor the common constant out
                    t = r1 * (d[j] * basis[j] - d[j + p + 1] * basis[j + 1])
                else:
                    t = (d[j] * r1) * basis[j] - (d[j + p + 1] * r2) * basis[j + 1]
                new_basis.append(t)
            basis = new_basis

        # Spline output for these 8 feature rows: y[d,:] = sum_j coef[d,j] * B_j
        y = coef_rows[0] * basis[0]
        for j in range(1, nb):
            y = y + coef_rows[j] * basis[j]
        return y

    def kernel(*refs):
        x_ref = refs[0]
        o_ref = refs[-1]
        p_refs = refs[1:-1]

        h = x_ref[...].astype(jnp.float32)                     # (din0_pad, TBL)
        for l, (din_pad, dout_pad) in enumerate(layer_meta):   # statically unrolled
            coef_ref, w_ref, b_ref = p_refs[3 * l:3 * l + 3]
            n_chunks = din_pad // 8

            # Evaluate the spline 8 feature rows at a time (keeps every live basis /
            # difference array at exactly one vreg -> no spills).
            y_chunks = []
            for c in range(n_chunks):
                hc = h[c * 8:(c + 1) * 8, :]
                coef_rows = [coef_ref[j, c * 8:(c + 1) * 8, :] for j in range(nb)]
                y_chunks.append(spline_chunk(hc, coef_rows))
            y = y_chunks[0] if n_chunks == 1 else jnp.concatenate(y_chunks, axis=0)

            # Linear (transposed): h_next = W @ y + b,  W: (dout_pad, din_pad).
            # Kept f32: MXU is idle at these sizes and bf16 casts would add VPU work.
            h = jnp.dot(w_ref[...], y, preferred_element_type=jnp.float32) + b_ref[...]

        o_ref[...] = h.astype(o_ref.dtype)

    return kernel


def forward_pallas(x, params):
    meta = params['meta']
    layer_meta = meta['layer_meta']
    knots, rden = meta['knots'], meta['rden']
    k, nb = meta['k'], meta['nb']
    din0, dout_last = meta['din0'], meta['dout_last']
    din0_pad = layer_meta[0][0]
    dlast_pad = layer_meta[-1][1]

    B = x.shape[0]
    Bpad = _round_up(max(B, TBL), TBL)
    num_tiles = Bpad // TBL   # on v7x, batches >= 256 give >= 2 tiles for both TCs

    # Transposed lane-dense layout: features on sublanes, samples on lanes.
    xt = jnp.zeros((din0_pad, Bpad), jnp.float32)
    xt = xt.at[:din0, :B].set(jnp.transpose(x).astype(jnp.float32))

    kernel = _make_fused_kernel(layer_meta, knots, rden, k, nb)

    in_specs = [pl.BlockSpec((din0_pad, TBL), lambda i: (0, i))]
    args = [xt]
    for l, (din_pad, dout_pad) in enumerate(layer_meta):
        coef_rep, w_pad, b_rep = params['layers'][l]
        in_specs += [
            pl.BlockSpec((nb, din_pad, TBL), lambda i: (0, 0, 0)),   # lane-replicated coef
            pl.BlockSpec((dout_pad, din_pad), lambda i: (0, 0)),     # W (full block)
            pl.BlockSpec((dout_pad, TBL), lambda i: (0, 0)),         # lane-replicated bias
        ]
        args += [coef_rep, w_pad, b_rep]

    out = pl.pallas_call(
        kernel,
        out_shape=jax.ShapeDtypeStruct((dlast_pad, Bpad), x.dtype),
        grid_spec=pl.GridSpec(
            grid=(num_tiles,),
            in_specs=in_specs,
            out_specs=pl.BlockSpec((dlast_pad, TBL), lambda i: (0, i)),
        ),
        compiler_params=pltpu.CompilerParams(dimension_semantics=("parallel",)),
    )(*args)

    return jnp.transpose(out[:dout_last, :B])


# -----------------------------------------------------------------------------
# Module: BSpline_First_MLP (batch_norm=False)
# -----------------------------------------------------------------------------
class Args:
    def __init__(self):
        self.input_size = 8
        self.layers_width = [32]
        self.output_size = 16
        self.kan_bspline_grid = 5
        self.kan_grid_range = [-1.0, 1.0]
        self.kan_bspline_order = 3
        self.batch_norm = False  # TODO(synk): BatchNorm1d (train-mode batch stats) not implemented


def init_params(args, key):
    layers_width = [args.input_size] + args.layers_width + [args.output_size]
    G = args.kan_bspline_grid
    k = args.kan_bspline_order
    lo, hi = args.kan_grid_range

    L = len(layers_width) - 1
    P = G + 1 + 2 * k            # extended grid points
    nb = G + k                   # basis functions / spline coefs

    # Shared uniform knot vector (the module builds grid = ones(din) x linspace, so
    # knots are identical for every feature and layer) -> bake as f32-exact floats.
    base = jnp.linspace(lo, hi, G + 1, dtype=jnp.float32)[None, :]
    ext = extend_grid(base, k)[0]                                   # (P,), f32
    knots = tuple(float(v) for v in ext)
    rden = tuple(tuple(float(1.0 / (ext[j + p] - ext[j])) for j in range(P - p))
                 for p in range(1, k + 1))

    layers, layer_meta, ref_layers = [], [], []
    for i in range(L):
        din, dout = layers_width[i], layers_width[i + 1]
        din_pad, dout_pad = _round_up(din, 8), _round_up(dout, 8)
        key, k_noise, k_w, k_b = jax.random.split(key, 4)

        # --- BSpline parameters (same init recipe as the PyTorch module) ---
        grid = jnp.ones((din, 1), jnp.float32) * jnp.linspace(lo, hi, G + 1,
                                                              dtype=jnp.float32)[None, :]
        noises = (jax.random.uniform(k_noise, grid.shape, jnp.float32) - 0.5) * 0.1 / G
        coef = curve2coef(grid, noises, grid, k)                     # (din, nb)
        grid_ext = extend_grid(grid, k)                              # (din, P)

        # --- Linear parameters (PyTorch default init) ---
        bound = float(din) ** -0.5
        W = jax.random.uniform(k_w, (dout, din), jnp.float32, -bound, bound)
        bias = jax.random.uniform(k_b, (dout,), jnp.float32, -bound, bound)

        ref_layers.append((grid_ext, coef, W, bias))

        # --- Lane-replicated / sublane-padded tables for the fused kernel ---
        # Padded feature rows carry zero coef and zero weight columns, so the valid
        # slice of the output is exact.
        coef_rep = jnp.zeros((nb, din_pad, TBL), jnp.float32)
        coef_rep = coef_rep.at[:, :din, :].set(
            jnp.broadcast_to(jnp.transpose(coef)[:, :, None], (nb, din, TBL)))
        w_pad = jnp.zeros((dout_pad, din_pad), jnp.float32).at[:dout, :din].set(W)
        b_rep = jnp.zeros((dout_pad, TBL), jnp.float32).at[:dout, :].set(
            jnp.broadcast_to(bias[:, None], (dout, TBL)))

        layers.append((coef_rep, w_pad, b_rep))
        layer_meta.append((din_pad, dout_pad))

    params = dict(
        layers=layers,
        meta=dict(layer_meta=tuple(layer_meta), knots=knots, rden=rden, k=k, nb=nb,
                  din0=layers_width[0], dout_last=layers_width[-1]),
    )
    return params, ref_layers


def forward_reference(x, ref_layers, k):
    # Pure-JAX reference (unpadded, division-based Cox-de Boor) for correctness checks.
    for grid_ext, coef, W, bias in ref_layers:
        xe = jnp.transpose(x)                     # (D, B)
        ge = grid_ext[:, :, None]                 # (D, P, 1)
        xx = xe[:, None, :]                       # (D, 1, B)
        basis = ((xx >= ge[:, :-1]) & (xx < ge[:, 1:])).astype(jnp.float32)
        for p in range(1, k + 1):
            basis = ((xx - ge[:, :-(p + 1)]) / (ge[:, p:-1] - ge[:, :-(p + 1)]) * basis[:, :-1]
                     + (ge[:, p + 1:] - xx) / (ge[:, p + 1:] - ge[:, 1:-p]) * basis[:, 1:])
        y = jnp.einsum('dj,djb->db', coef, basis)   # (D, B)
        x = jnp.transpose(y) @ jnp.transpose(W) + bias[None, :]
    return x


if __name__ == "__main__":
    args = Args()
    key = jax.random.PRNGKey(0)
    key, k_params, k_x = jax.random.split(key, 3)

    params, ref_layers = init_params(args, k_params)

    batch = 8
    x = jax.random.normal(k_x, (batch, args.input_size), jnp.float32)

    out = forward_pallas(x, params)
    out = jax.block_until_ready(out)

    ref = forward_reference(x, ref_layers, args.kan_bspline_order)
    assert out.shape == (batch, args.output_size)
    assert jnp.allclose(out, ref, atol=1e-4, rtol=1e-4), "Pallas output mismatch vs reference"

    print("KERNEL_OK")
</pallas_src>

<mosaic_0001>
module attributes {stable_mosaic.version = 11 : i64} {
  func.func @kernel(%arg0: i32, %arg1: memref<8x128xf32, #tpu.memory_space<vmem>>, %arg2: memref<8x8x128xf32, #tpu.memory_space<vmem>>, %arg3: memref<32x8xf32, #tpu.memory_space<vmem>>, %arg4: memref<32x128xf32, #tpu.memory_space<vmem>>, %arg5: memref<8x32x128xf32, #tpu.memory_space<vmem>>, %arg6: memref<16x32xf32, #tpu.memory_space<vmem>>, %arg7: memref<16x128xf32, #tpu.memory_space<vmem>>, %arg8: memref<16x128xf32, #tpu.memory_space<vmem>>) attributes {dimension_semantics = [#tpu.dimension_semantics<parallel>], iteration_bounds = array<i64: 1>, scalar_prefetch = 0 : i64, scratch_operands = 0 : i64, tpu.core_type = #tpu.core_type<tc>, window_params = [{transform_indices = @transform_0, window_bounds = array<i64: 8, 128>}, {pipeline_mode = #tpu.pipeline_mode<synchronous>, transform_indices = @transform_1, window_bounds = array<i64: 8, 8, 128>}, {pipeline_mode = #tpu.pipeline_mode<synchronous>, transform_indices = @transform_2, window_bounds = array<i64: 32, 8>}, {pipeline_mode = #tpu.pipeline_mode<synchronous>, transform_indices = @transform_3, window_bounds = array<i64: 32, 128>}, {pipeline_mode = #tpu.pipeline_mode<synchronous>, transform_indices = @transform_4, window_bounds = array<i64: 8, 32, 128>}, {pipeline_mode = #tpu.pipeline_mode<synchronous>, transform_indices = @transform_5, window_bounds = array<i64: 16, 32>}, {pipeline_mode = #tpu.pipeline_mode<synchronous>, transform_indices = @transform_6, window_bounds = array<i64: 16, 128>}, {transform_indices = @transform_7, window_bounds = array<i64: 16, 128>}]} {
    %c0 = arith.constant 0 : index
    %c0_0 = arith.constant 0 : index
    %0 = vector.load %arg1[%c0, %c0_0] : memref<8x128xf32, #tpu.memory_space<vmem>>, vector<8x128xf32>
    %c0_1 = arith.constant 0 : index
    %c0_2 = arith.constant 0 : index
    %c0_3 = arith.constant 0 : index
    %1 = vector.load %arg2[%c0_1, %c0_2, %c0_3] : memref<8x8x128xf32, #tpu.memory_space<vmem>>, vector<1x8x128xf32>
    %2 = vector.shape_cast %1 : vector<1x8x128xf32> to vector<8x128xf32>
    %c1 = arith.constant 1 : index
    %c0_4 = arith.constant 0 : index
    %c0_5 = arith.constant 0 : index
    %3 = vector.load %arg2[%c1, %c0_4, %c0_5] : memref<8x8x128xf32, #tpu.memory_space<vmem>>, vector<1x8x128xf32>
    %4 = vector.shape_cast %3 : vector<1x8x128xf32> to vector<8x128xf32>
    %c2 = arith.constant 2 : index
    %c0_6 = arith.constant 0 : index
    %c0_7 = arith.constant 0 : index
    %5 = vector.load %arg2[%c2, %c0_6, %c0_7] : memref<8x8x128xf32, #tpu.memory_space<vmem>>, vector<1x8x128xf32>
    %6 = vector.shape_cast %5 : vector<1x8x128xf32> to vector<8x128xf32>
    %c3 = arith.constant 3 : index
    %c0_8 = arith.constant 0 : index
    %c0_9 = arith.constant 0 : index
    %7 = vector.load %arg2[%c3, %c0_8, %c0_9] : memref<8x8x128xf32, #tpu.memory_space<vmem>>, vector<1x8x128xf32>
    %8 = vector.shape_cast %7 : vector<1x8x128xf32> to vector<8x128xf32>
    %c4 = arith.constant 4 : index
    %c0_10 = arith.constant 0 : index
    %c0_11 = arith.constant 0 : index
    %9 = vector.load %arg2[%c4, %c0_10, %c0_11] : memref<8x8x128xf32, #tpu.memory_space<vmem>>, vector<1x8x128xf32>
    %10 = vector.shape_cast %9 : vector<1x8x128xf32> to vector<8x128xf32>
    %c5 = arith.constant 5 : index
    %c0_12 = arith.constant 0 : index
    %c0_13 = arith.constant 0 : index
    %11 = vector.load %arg2[%c5, %c0_12, %c0_13] : memref<8x8x128xf32, #tpu.memory_space<vmem>>, vector<1x8x128xf32>
    %12 = vector.shape_cast %11 : vector<1x8x128xf32> to vector<8x128xf32>
    %c6 = arith.constant 6 : index
    %c0_14 = arith.constant 0 : index
    %c0_15 = arith.constant 0 : index
    %13 = vector.load %arg2[%c6, %c0_14, %c0_15] : memref<8x8x128xf32, #tpu.memory_space<vmem>>, vector<1x8x128xf32>
    %14 = vector.shape_cast %13 : vector<1x8x128xf32> to vector<8x128xf32>
    %c7 = arith.constant 7 : index
    %c0_16 = arith.constant 0 : index
    %c0_17 = arith.constant 0 : index
    %15 = vector.load %arg2[%c7, %c0_16, %c0_17] : memref<8x8x128xf32, #tpu.memory_space<vmem>>, vector<1x8x128xf32>
    %16 = vector.shape_cast %15 : vector<1x8x128xf32> to vector<8x128xf32>
    %cst = arith.constant -2.200000e+00 : f32
    %17 = vector.broadcast %cst : f32 to vector<8x128xf32>
    %18 = arith.subf %0, %17 : vector<8x128xf32>
    %cst_18 = arith.constant -1.800000e+00 : f32
    %19 = vector.broadcast %cst_18 : f32 to vector<8x128xf32>
    %20 = arith.subf %0, %19 : vector<8x128xf32>
    %cst_19 = arith.constant -1.400000e+00 : f32
    %21 = vector.broadcast %cst_19 : f32 to vector<8x128xf32>
    %22 = arith.subf %0, %21 : vector<8x128xf32>
    %cst_20 = arith.constant -1.000000e+00 : f32
    %23 = vector.broadcast %cst_20 : f32 to vector<8x128xf32>
    %24 = arith.subf %0, %23 : vector<8x128xf32>
    %cst_21 = arith.constant -6.000000e-01 : f32
    %25 = vector.broadcast %cst_21 : f32 to vector<8x128xf32>
    %26 = arith.subf %0, %25 : vector<8x128xf32>
    %cst_22 = arith.constant -0.200000018 : f32
    %27 = vector.broadcast %cst_22 : f32 to vector<8x128xf32>
    %28 = arith.subf %0, %27 : vector<8x128xf32>
    %cst_23 = arith.constant 0.200000033 : f32
    %29 = vector.broadcast %cst_23 : f32 to vector<8x128xf32>
    %30 = arith.subf %0, %29 : vector<8x128xf32>
    %cst_24 = arith.constant 6.000000e-01 : f32
    %31 = vector.broadcast %cst_24 : f32 to vector<8x128xf32>
    %32 = arith.subf %0, %31 : vector<8x128xf32>
    %cst_25 = arith.constant 1.000000e+00 : f32
    %33 = vector.broadcast %cst_25 : f32 to vector<8x128xf32>
    %34 = arith.subf %0, %33 : vector<8x128xf32>
    %cst_26 = arith.constant 1.400000e+00 : f32
    %35 = vector.broadcast %cst_26 : f32 to vector<8x128xf32>
    %36 = arith.subf %0, %35 : vector<8x128xf32>
    %cst_27 = arith.constant 1.800000e+00 : f32
    %37 = vector.broadcast %cst_27 : f32 to vector<8x128xf32>
    %38 = arith.subf %0, %37 : vector<8x128xf32>
    %cst_28 = arith.constant 2.200000e+00 : f32
    %39 = vector.broadcast %cst_28 : f32 to vector<8x128xf32>
    %40 = arith.subf %0, %39 : vector<8x128xf32>
    %cst_29 = arith.constant -2.200000e+00 : f32
    %41 = vector.broadcast %cst_29 : f32 to vector<8x128xf32>
    %42 = arith.cmpf oge, %0, %41 : vector<8x128xf32>
    %43 = arith.extui %42 : vector<8x128xi1> to vector<8x128xi32>
    %44 = arith.sitofp %43 : vector<8x128xi32> to vector<8x128xf32>
    %cst_30 = arith.constant -1.800000e+00 : f32
    %45 = vector.broadcast %cst_30 : f32 to vector<8x128xf32>
    %46 = arith.cmpf oge, %0, %45 : vector<8x128xf32>
    %47 = arith.extui %46 : vector<8x128xi1> to vector<8x128xi32>
    %48 = arith.sitofp %47 : vector<8x128xi32> to vector<8x128xf32>
    %49 = arith.subf %44, %48 : vector<8x128xf32>
    %cst_31 = arith.constant -1.400000e+00 : f32
    %50 = vector.broadcast %cst_31 : f32 to vector<8x128xf32>
    %51 = arith.cmpf oge, %0, %50 : vector<8x128xf32>
    %52 = arith.extui %51 : vector<8x128xi1> to vector<8x128xi32>
    %53 = arith.sitofp %52 : vector<8x128xi32> to vector<8x128xf32>
    %54 = arith.subf %48, %53 : vector<8x128xf32>
    %cst_32 = arith.constant -1.000000e+00 : f32
    %55 = vector.broadcast %cst_32 : f32 to vector<8x128xf32>
    %56 = arith.cmpf oge, %0, %55 : vector<8x128xf32>
    %57 = arith.extui %56 : vector<8x128xi1> to vector<8x128xi32>
    %58 = arith.sitofp %57 : vector<8x128xi32> to vector<8x128xf32>
    %59 = arith.subf %53, %58 : vector<8x128xf32>
    %cst_33 = arith.constant -6.000000e-01 : f32
    %60 = vector.broadcast %cst_33 : f32 to vector<8x128xf32>
    %61 = arith.cmpf oge, %0, %60 : vector<8x128xf32>
    %62 = arith.extui %61 : vector<8x128xi1> to vector<8x128xi32>
    %63 = arith.sitofp %62 : vector<8x128xi32> to vector<8x128xf32>
    %64 = arith.subf %58, %63 : vector<8x128xf32>
    %cst_34 = arith.constant -0.200000018 : f32
    %65 = vector.broadcast %cst_34 : f32 to vector<8x128xf32>
    %66 = arith.cmpf oge, %0, %65 : vector<8x128xf32>
    %67 = arith.extui %66 : vector<8x128xi1> to vector<8x128xi32>
    %68 = arith.sitofp %67 : vector<8x128xi32> to vector<8x128xf32>
    %69 = arith.subf %63, %68 : vector<8x128xf32>
    %cst_35 = arith.constant 0.200000033 : f32
    %70 = vector.broadcast %cst_35 : f32 to vector<8x128xf32>
    %71 = arith.cmpf oge, %0, %70 : vector<8x128xf32>
    %72 = arith.extui %71 : vector<8x128xi1> to vector<8x128xi32>
    %73 = arith.sitofp %72 : vector<8x128xi32> to vector<8x128xf32>
    %74 = arith.subf %68, %73 : vector<8x128xf32>
    %cst_36 = arith.constant 6.000000e-01 : f32
    %75 = vector.broadcast %cst_36 : f32 to vector<8x128xf32>
    %76 = arith.cmpf oge, %0, %75 : vector<8x128xf32>
    %77 = arith.extui %76 : vector<8x128xi1> to vector<8x128xi32>
    %78 = arith.sitofp %77 : vector<8x128xi32> to vector<8x128xf32>
    %79 = arith.subf %73, %78 : vector<8x128xf32>
    %cst_37 = arith.constant 1.000000e+00 : f32
    %80 = vector.broadcast %cst_37 : f32 to vector<8x128xf32>
    %81 = arith.cmpf oge, %0, %80 : vector<8x128xf32>
    %82 = arith.extui %81 : vector<8x128xi1> to vector<8x128xi32>
    %83 = arith.sitofp %82 : vector<8x128xi32> to vector<8x128xf32>
    %84 = arith.subf %78, %83 : vector<8x128xf32>
    %cst_38 = arith.constant 1.400000e+00 : f32
    %85 = vector.broadcast %cst_38 : f32 to vector<8x128xf32>
    %86 = arith.cmpf oge, %0, %85 : vector<8x128xf32>
    %87 = arith.extui %86 : vector<8x128xi1> to vector<8x128xi32>
    %88 = arith.sitofp %87 : vector<8x128xi32> to vector<8x128xf32>
    %89 = arith.subf %83, %88 : vector<8x128xf32>
    %cst_39 = arith.constant 1.800000e+00 : f32
    %90 = vector.broadcast %cst_39 : f32 to vector<8x128xf32>
    %91 = arith.cmpf oge, %0, %90 : vector<8x128xf32>
    %92 = arith.extui %91 : vector<8x128xi1> to vector<8x128xi32>
    %93 = arith.sitofp %92 : vector<8x128xi32> to vector<8x128xf32>
    %94 = arith.subf %88, %93 : vector<8x128xf32>
    %cst_40 = arith.constant 2.200000e+00 : f32
    %95 = vector.broadcast %cst_40 : f32 to vector<8x128xf32>
    %96 = arith.cmpf oge, %0, %95 : vector<8x128xf32>
    %97 = arith.extui %96 : vector<8x128xi1> to vector<8x128xi32>
    %98 = arith.sitofp %97 : vector<8x128xi32> to vector<8x128xf32>
    %99 = arith.subf %93, %98 : vector<8x128xf32>
    %cst_41 = arith.constant 2.49999952 : f32
    %100 = vector.broadcast %cst_41 : f32 to vector<8x128xf32>
    %101 = arith.mulf %18, %100 : vector<8x128xf32>
    %102 = arith.mulf %101, %49 : vector<8x128xf32>
    %cst_42 = arith.constant 2.50000024 : f32
    %103 = vector.broadcast %cst_42 : f32 to vector<8x128xf32>
    %104 = arith.mulf %22, %103 : vector<8x128xf32>
    %105 = arith.mulf %104, %54 : vector<8x128xf32>
    %106 = arith.subf %102, %105 : vector<8x128xf32>
    %107 = arith.mulf %20, %54 : vector<8x128xf32>
    %108 = arith.mulf %24, %59 : vector<8x128xf32>
    %109 = arith.subf %107, %108 : vector<8x128xf32>
    %cst_43 = arith.constant 2.50000024 : f32
    %110 = vector.broadcast %cst_43 : f32 to vector<8x128xf32>
    %111 = arith.mulf %110, %109 : vector<8x128xf32>
    %112 = arith.mulf %22, %59 : vector<8x128xf32>
    %113 = arith.mulf %26, %64 : vector<8x128xf32>
    %114 = arith.subf %112, %113 : vector<8x128xf32>
    %cst_44 = arith.constant 2.50000024 : f32
    %115 = vector.broadcast %cst_44 : f32 to vector<8x128xf32>
    %116 = arith.mulf %115, %114 : vector<8x128xf32>
    %cst_45 = arith.constant 2.50000024 : f32
    %117 = vector.broadcast %cst_45 : f32 to vector<8x128xf32>
    %118 = arith.mulf %24, %117 : vector<8x128xf32>
    %119 = arith.mulf %118, %64 : vector<8x128xf32>
    %cst_46 = arith.constant 2.500000e+00 : f32
    %120 = vector.broadcast %cst_46 : f32 to vector<8x128xf32>
    %121 = arith.mulf %28, %120 : vector<8x128xf32>
    %122 = arith.mulf %121, %69 : vector<8x128xf32>
    %123 = arith.subf %119, %122 : vector<8x128xf32>
    %cst_47 = arith.constant 2.500000e+00 : f32
    %124 = vector.broadcast %cst_47 : f32 to vector<8x128xf32>
    %125 = arith.mulf %26, %124 : vector<8x128xf32>
    %126 = arith.mulf %125, %69 : vector<8x128xf32>
    %cst_48 = arith.constant 2.49999976 : f32
    %127 = vector.broadcast %cst_48 : f32 to vector<8x128xf32>
    %128 = arith.mulf %30, %127 : vector<8x128xf32>
    %129 = arith.mulf %128, %74 : vector<8x128xf32>
    %130 = arith.subf %126, %129 : vector<8x128xf32>
    %cst_49 = arith.constant 2.49999976 : f32
    %131 = vector.broadcast %cst_49 : f32 to vector<8x128xf32>
    %132 = arith.mulf %28, %131 : vector<8x128xf32>
    %133 = arith.mulf %132, %74 : vector<8x128xf32>
    %cst_50 = arith.constant 2.50000024 : f32
    %134 = vector.broadcast %cst_50 : f32 to vector<8x128xf32>
    %135 = arith.mulf %32, %134 : vector<8x128xf32>
    %136 = arith.mulf %135, %79 : vector<8x128xf32>
    %137 = arith.subf %133, %136 : vector<8x128xf32>
    %138 = arith.mulf %30, %79 : vector<8x128xf32>
    %139 = arith.mulf %34, %84 : vector<8x128xf32>
    %140 = arith.subf %138, %139 : vector<8x128xf32>
    %cst_51 = arith.constant 2.50000024 : f32
    %141 = vector.broadcast %cst_51 : f32 to vector<8x128xf32>
    %142 = arith.mulf %141, %140 : vector<8x128xf32>
    %143 = arith.mulf %32, %84 : vector<8x128xf32>
    %144 = arith.mulf %36, %89 : vector<8x128xf32>
    %145 = arith.subf %143, %144 : vector<8x128xf32>
    %cst_52 = arith.constant 2.50000024 : f32
    %146 = vector.broadcast %cst_52 : f32 to vector<8x128xf32>
    %147 = arith.mulf %146, %145 : vector<8x128xf32>
    %148 = arith.mulf %34, %89 : vector<8x128xf32>
    %149 = arith.mulf %38, %94 : vector<8x128xf32>
    %150 = arith.subf %148, %149 : vector<8x128xf32>
    %cst_53 = arith.constant 2.50000024 : f32
    %151 = vector.broadcast %cst_53 : f32 to vector<8x128xf32>
    %152 = arith.mulf %151, %150 : vector<8x128xf32>
    %cst_54 = arith.constant 2.50000024 : f32
    %153 = vector.broadcast %cst_54 : f32 to vector<8x128xf32>
    %154 = arith.mulf %36, %153 : vector<8x128xf32>
    %155 = arith.mulf %154, %94 : vector<8x128xf32>
    %cst_55 = arith.constant 2.49999952 : f32
    %156 = vector.broadcast %cst_55 : f32 to vector<8x128xf32>
    %157 = arith.mulf %40, %156 : vector<8x128xf32>
    %158 = arith.mulf %157, %99 : vector<8x128xf32>
    %159 = arith.subf %155, %158 : vector<8x128xf32>
    %cst_56 = arith.constant 1.24999988 : f32
    %160 = vector.broadcast %cst_56 : f32 to vector<8x128xf32>
    %161 = arith.mulf %18, %160 : vector<8x128xf32>
    %162 = arith.mulf %161, %106 : vector<8x128xf32>
    %cst_57 = arith.constant 1.25000012 : f32
    %163 = vector.broadcast %cst_57 : f32 to vector<8x128xf32>
    %164 = arith.mulf %24, %163 : vector<8x128xf32>
    %165 = arith.mulf %164, %111 : vector<8x128xf32>
    %166 = arith.subf %162, %165 : vector<8x128xf32>
    %167 = arith.mulf %20, %111 : vector<8x128xf32>
    %168 = arith.mulf %26, %116 : vector<8x128xf32>
    %169 = arith.subf %167, %168 : vector<8x128xf32>
    %cst_58 = arith.constant 1.25000012 : f32
    %170 = vector.broadcast %cst_58 : f32 to vector<8x128xf32>
    %171 = arith.mulf %170, %169 : vector<8x128xf32>
    %172 = arith.mulf %22, %116 : vector<8x128xf32>
    %173 = arith.mulf %28, %123 : vector<8x128xf32>
    %174 = arith.subf %172, %173 : vector<8x128xf32>
    %cst_59 = arith.constant 1.25000012 : f32
    %175 = vector.broadcast %cst_59 : f32 to vector<8x128xf32>
    %176 = arith.mulf %175, %174 : vector<8x128xf32>
    %cst_60 = arith.constant 1.25000012 : f32
    %177 = vector.broadcast %cst_60 : f32 to vector<8x128xf32>
    %178 = arith.mulf %24, %177 : vector<8x128xf32>
    %179 = arith.mulf %178, %123 : vector<8x128xf32>
    %cst_61 = arith.constant 1.24999988 : f32
    %180 = vector.broadcast %cst_61 : f32 to vector<8x128xf32>
    %181 = arith.mulf %30, %180 : vector<8x128xf32>
    %182 = arith.mulf %181, %130 : vector<8x128xf32>
    %183 = arith.subf %179, %182 : vector<8x128xf32>
    %184 = arith.mulf %26, %130 : vector<8x128xf32>
    %185 = arith.mulf %32, %137 : vector<8x128xf32>
    %186 = arith.subf %184, %185 : vector<8x128xf32>
    %cst_62 = arith.constant 1.24999988 : f32
    %187 = vector.broadcast %cst_62 : f32 to vector<8x128xf32>
    %188 = arith.mulf %187, %186 : vector<8x128xf32>
    %cst_63 = arith.constant 1.24999988 : f32
    %189 = vector.broadcast %cst_63 : f32 to vector<8x128xf32>
    %190 = arith.mulf %28, %189 : vector<8x128xf32>
    %191 = arith.mulf %190, %137 : vector<8x128xf32>
    %cst_64 = arith.constant 1.25000012 : f32
    %192 = vector.broadcast %cst_64 : f32 to vector<8x128xf32>
    %193 = arith.mulf %34, %192 : vector<8x128xf32>
    %194 = arith.mulf %193, %142 : vector<8x128xf32>
    %195 = arith.subf %191, %194 : vector<8x128xf32>
    %196 = arith.mulf %30, %142 : vector<8x128xf32>
    %197 = arith.mulf %36, %147 : vector<8x128xf32>
    %198 = arith.subf %196, %197 : vector<8x128xf32>
    %cst_65 = arith.constant 1.25000012 : f32
    %199 = vector.broadcast %cst_65 : f32 to vector<8x128xf32>
    %200 = arith.mulf %199, %198 : vector<8x128xf32>
    %201 = arith.mulf %32, %147 : vector<8x128xf32>
    %202 = arith.mulf %38, %152 : vector<8x128xf32>
    %203 = arith.subf %201, %202 : vector<8x128xf32>
    %cst_66 = arith.constant 1.25000012 : f32
    %204 = vector.broadcast %cst_66 : f32 to vector<8x128xf32>
    %205 = arith.mulf %204, %203 : vector<8x128xf32>
    %cst_67 = arith.constant 1.25000012 : f32
    %206 = vector.broadcast %cst_67 : f32 to vector<8x128xf32>
    %207 = arith.mulf %34, %206 : vector<8x128xf32>
    %208 = arith.mulf %207, %152 : vector<8x128xf32>
    %cst_68 = arith.constant 1.24999988 : f32
    %209 = vector.broadcast %cst_68 : f32 to vector<8x128xf32>
    %210 = arith.mulf %40, %209 : vector<8x128xf32>
    %211 = arith.mulf %210, %159 : vector<8x128xf32>
    %212 = arith.subf %208, %211 : vector<8x128xf32>
    %cst_69 = arith.constant 0.833333313 : f32
    %213 = vector.broadcast %cst_69 : f32 to vector<8x128xf32>
    %214 = arith.mulf %18, %213 : vector<8x128xf32>
    %215 = arith.mulf %214, %166 : vector<8x128xf32>
    %cst_70 = arith.constant 0.833333373 : f32
    %216 = vector.broadcast %cst_70 : f32 to vector<8x128xf32>
    %217 = arith.mulf %26, %216 : vector<8x128xf32>
    %218 = arith.mulf %217, %171 : vector<8x128xf32>
    %219 = arith.subf %215, %218 : vector<8x128xf32>
    %220 = arith.mulf %20, %171 : vector<8x128xf32>
    %221 = arith.mulf %28, %176 : vector<8x128xf32>
    %222 = arith.subf %220, %221 : vector<8x128xf32>
    %cst_71 = arith.constant 0.833333373 : f32
    %223 = vector.broadcast %cst_71 : f32 to vector<8x128xf32>
    %224 = arith.mulf %223, %222 : vector<8x128xf32>
    %cst_72 = arith.constant 0.833333373 : f32
    %225 = vector.broadcast %cst_72 : f32 to vector<8x128xf32>
    %226 = arith.mulf %22, %225 : vector<8x128xf32>
    %227 = arith.mulf %226, %176 : vector<8x128xf32>
    %cst_73 = arith.constant 0.833333313 : f32
    %228 = vector.broadcast %cst_73 : f32 to vector<8x128xf32>
    %229 = arith.mulf %30, %228 : vector<8x128xf32>
    %230 = arith.mulf %229, %183 : vector<8x128xf32>
    %231 = arith.subf %227, %230 : vector<8x128xf32>
    %232 = arith.mulf %24, %183 : vector<8x128xf32>
    %233 = arith.mulf %32, %188 : vector<8x128xf32>
    %234 = arith.subf %232, %233 : vector<8x128xf32>
    %cst_74 = arith.constant 0.833333313 : f32
    %235 = vector.broadcast %cst_74 : f32 to vector<8x128xf32>
    %236 = arith.mulf %235, %234 : vector<8x128xf32>
    %237 = arith.mulf %26, %188 : vector<8x128xf32>
    %238 = arith.mulf %34, %195 : vector<8x128xf32>
    %239 = arith.subf %237, %238 : vector<8x128xf32>
    %cst_75 = arith.constant 0.833333313 : f32
    %240 = vector.broadcast %cst_75 : f32 to vector<8x128xf32>
    %241 = arith.mulf %240, %239 : vector<8x128xf32>
    %cst_76 = arith.constant 0.833333313 : f32
    %242 = vector.broadcast %cst_76 : f32 to vector<8x128xf32>
    %243 = arith.mulf %28, %242 : vector<8x128xf32>
    %244 = arith.mulf %243, %195 : vector<8x128xf32>
    %cst_77 = arith.constant 0.833333373 : f32
    %245 = vector.broadcast %cst_77 : f32 to vector<8x128xf32>
    %246 = arith.mulf %36, %245 : vector<8x128xf32>
    %247 = arith.mulf %246, %200 : vector<8x128xf32>
    %248 = arith.subf %244, %247 : vector<8x128xf32>
    %249 = arith.mulf %30, %200 : vector<8x128xf32>
    %250 = arith.mulf %38, %205 : vector<8x128xf32>
    %251 = arith.subf %249, %250 : vector<8x128xf32>
    %cst_78 = arith.constant 0.833333373 : f32
    %252 = vector.broadcast %cst_78 : f32 to vector<8x128xf32>
    %253 = arith.mulf %252, %251 : vector<8x128xf32>
    %cst_79 = arith.constant 0.833333373 : f32
    %254 = vector.broadcast %cst_79 : f32 to vector<8x128xf32>
    %255 = arith.mulf %32, %254 : vector<8x128xf32>
    %256 = arith.mulf %255, %205 : vector<8x128xf32>
    %cst_80 = arith.constant 0.833333313 : f32
    %257 = vector.broadcast %cst_80 : f32 to vector<8x128xf32>
    %258 = arith.mulf %40, %257 : vector<8x128xf32>
    %259 = arith.mulf %258, %212 : vector<8x128xf32>
    %260 = arith.subf %256, %259 : vector<8x128xf32>
    %261 = arith.mulf %2, %219 : vector<8x128xf32>
    %262 = arith.mulf %4, %224 : vector<8x128xf32>
    %263 = arith.addf %261, %262 : vector<8x128xf32>
    %264 = arith.mulf %6, %231 : vector<8x128xf32>
    %265 = arith.addf %263, %264 : vector<8x128xf32>
    %266 = arith.mulf %8, %236 : vector<8x128xf32>
    %267 = arith.addf %265, %266 : vector<8x128xf32>
    %268 = arith.mulf %10, %241 : vector<8x128xf32>
    %269 = arith.addf %267, %268 : vector<8x128xf32>
    %270 = arith.mulf %12, %248 : vector<8x128xf32>
    %271 = arith.addf %269, %270 : vector<8x128xf32>
    %272 = arith.mulf %14, %253 : vector<8x128xf32>
    %273 = arith.addf %271, %272 : vector<8x128xf32>
    %274 = arith.mulf %16, %260 : vector<8x128xf32>
    %275 = arith.addf %273, %274 : vector<8x128xf32>
    %c0_81 = arith.constant 0 : index
    %c0_82 = arith.constant 0 : index
    %276 = vector.load %arg3[%c0_81, %c0_82] : memref<32x8xf32, #tpu.memory_space<vmem>>, vector<32x8xf32>
    %cst_83 = arith.constant dense<0.000000e+00> : vector<32x128xf32>
    %277 = tpu.matmul %276, %275, %cst_83 {dimension_numbers = #tpu.dot_dimension_numbers<[1], [0], [0], [1], [0, 0, 1, 1], [], []>} : vector<32x8xf32>, vector<8x128xf32>, vector<32x128xf32> -> vector<32x128xf32>
    %c0_84 = arith.constant 0 : index
    %c0_85 = arith.constant 0 : index
    %278 = vector.load %arg4[%c0_84, %c0_85] : memref<32x128xf32, #tpu.memory_space<vmem>>, vector<32x128xf32>
    %279 = arith.addf %277, %278 : vector<32x128xf32>
    %280 = vector.extract_strided_slice %279 {offsets = [0, 0], sizes = [8, 128], strides = [1, 1]} : vector<32x128xf32> to vector<8x128xf32>
    %c0_86 = arith.constant 0 : index
    %c0_87 = arith.constant 0 : index
    %c0_88 = arith.constant 0 : index
    %281 = vector.load %arg5[%c0_86, %c0_87, %c0_88] : memref<8x32x128xf32, #tpu.memory_space<vmem>>, vector<1x8x128xf32>
    %282 = vector.shape_cast %281 : vector<1x8x128xf32> to vector<8x128xf32>
    %c1_89 = arith.constant 1 : index
    %c0_90 = arith.constant 0 : index
    %c0_91 = arith.constant 0 : index
    %283 = vector.load %arg5[%c1_89, %c0_90, %c0_91] : memref<8x32x128xf32, #tpu.memory_space<vmem>>, vector<1x8x128xf32>
    %284 = vector.shape_cast %283 : vector<1x8x128xf32> to vector<8x128xf32>
    %c2_92 = arith.constant 2 : index
    %c0_93 = arith.constant 0 : index
    %c0_94 = arith.constant 0 : index
    %285 = vector.load %arg5[%c2_92, %c0_93, %c0_94] : memref<8x32x128xf32, #tpu.memory_space<vmem>>, vector<1x8x128xf32>
    %286 = vector.shape_cast %285 : vector<1x8x128xf32> to vector<8x128xf32>
    %c3_95 = arith.constant 3 : index
    %c0_96 = arith.constant 0 : index
    %c0_97 = arith.constant 0 : index
    %287 = vector.load %arg5[%c3_95, %c0_96, %c0_97] : memref<8x32x128xf32, #tpu.memory_space<vmem>>, vector<1x8x128xf32>
    %288 = vector.shape_cast %287 : vector<1x8x128xf32> to vector<8x128xf32>
    %c4_98 = arith.constant 4 : index
    %c0_99 = arith.constant 0 : index
    %c0_100 = arith.constant 0 : index
    %289 = vector.load %arg5[%c4_98, %c0_99, %c0_100] : memref<8x32x128xf32, #tpu.memory_space<vmem>>, vector<1x8x128xf32>
    %290 = vector.shape_cast %289 : vector<1x8x128xf32> to vector<8x128xf32>
    %c5_101 = arith.constant 5 : index
    %c0_102 = arith.constant 0 : index
    %c0_103 = arith.constant 0 : index
    %291 = vector.load %arg5[%c5_101, %c0_102, %c0_103] : memref<8x32x128xf32, #tpu.memory_space<vmem>>, vector<1x8x128xf32>
    %292 = vector.shape_cast %291 : vector<1x8x128xf32> to vector<8x128xf32>
    %c6_104 = arith.constant 6 : index
    %c0_105 = arith.constant 0 : index
    %c0_106 = arith.constant 0 : index
    %293 = vector.load %arg5[%c6_104, %c0_105, %c0_106] : memref<8x32x128xf32, #tpu.memory_space<vmem>>, vector<1x8x128xf32>
    %294 = vector.shape_cast %293 : vector<1x8x128xf32> to vector<8x128xf32>
    %c7_107 = arith.constant 7 : index
    %c0_108 = arith.constant 0 : index
    %c0_109 = arith.constant 0 : index
    %295 = vector.load %arg5[%c7_107, %c0_108, %c0_109] : memref<8x32x128xf32, #tpu.memory_space<vmem>>, vector<1x8x128xf32>
    %296 = vector.shape_cast %295 : vector<1x8x128xf32> to vector<8x128xf32>
    %cst_110 = arith.constant -2.200000e+00 : f32
    %297 = vector.broadcast %cst_110 : f32 to vector<8x128xf32>
    %298 = arith.subf %280, %297 : vector<8x128xf32>
    %cst_111 = arith.constant -1.800000e+00 : f32
    %299 = vector.broadcast %cst_111 : f32 to vector<8x128xf32>
    %300 = arith.subf %280, %299 : vector<8x128xf32>
    %cst_112 = arith.constant -1.400000e+00 : f32
    %301 = vector.broadcast %cst_112 : f32 to vector<8x128xf32>
    %302 = arith.subf %280, %301 : vector<8x128xf32>
    %cst_113 = arith.constant -1.000000e+00 : f32
    %303 = vector.broadcast %cst_113 : f32 to vector<8x128xf32>
    %304 = arith.subf %280, %303 : vector<8x128xf32>
    %cst_114 = arith.constant -6.000000e-01 : f32
    %305 = vector.broadcast %cst_114 : f32 to vector<8x128xf32>
    %306 = arith.subf %280, %305 : vector<8x128xf32>
    %cst_115 = arith.constant -0.200000018 : f32
    %307 = vector.broadcast %cst_115 : f32 to vector<8x128xf32>
    %308 = arith.subf %280, %307 : vector<8x128xf32>
    %cst_116 = arith.constant 0.200000033 : f32
    %309 = vector.broadcast %cst_116 : f32 to vector<8x128xf32>
    %310 = arith.subf %280, %309 : vector<8x128xf32>
    %cst_117 = arith.constant 6.000000e-01 : f32
    %311 = vector.broadcast %cst_117 : f32 to vector<8x128xf32>
    %312 = arith.subf %280, %311 : vector<8x128xf32>
    %cst_118 = arith.constant 1.000000e+00 : f32
    %313 = vector.broadcast %cst_118 : f32 to vector<8x128xf32>
    %314 = arith.subf %280, %313 : vector<8x128xf32>
    %cst_119 = arith.constant 1.400000e+00 : f32
    %315 = vector.broadcast %cst_119 : f32 to vector<8x128xf32>
    %316 = arith.subf %280, %315 : vector<8x128xf32>
    %cst_120 = arith.constant 1.800000e+00 : f32
    %317 = vector.broadcast %cst_120 : f32 to vector<8x128xf32>
    %318 = arith.subf %280, %317 : vector<8x128xf32>
    %cst_121 = arith.constant 2.200000e+00 : f32
    %319 = vector.broadcast %cst_121 : f32 to vector<8x128xf32>
    %320 = arith.subf %280, %319 : vector<8x128xf32>
    %cst_122 = arith.constant -2.200000e+00 : f32
    %321 = vector.broadcast %cst_122 : f32 to vector<8x128xf32>
    %322 = arith.cmpf oge, %280, %321 : vector<8x128xf32>
    %323 = arith.extui %322 : vector<8x128xi1> to vector<8x128xi32>
    %324 = arith.sitofp %323 : vector<8x128xi32> to vector<8x128xf32>
    %cst_123 = arith.constant -1.800000e+00 : f32
    %325 = vector.broadcast %cst_123 : f32 to vector<8x128xf32>
    %326 = arith.cmpf oge, %280, %325 : vector<8x128xf32>
    %327 = arith.extui %326 : vector<8x128xi1> to vector<8x128xi32>
    %328 = arith.sitofp %327 : vector<8x128xi32> to vector<8x128xf32>
    %329 = arith.subf %324, %328 : vector<8x128xf32>
    %cst_124 = arith.constant -1.400000e+00 : f32
    %330 = vector.broadcast %cst_124 : f32 to vector<8x128xf32>
    %331 = arith.cmpf oge, %280, %330 : vector<8x128xf32>
    %332 = arith.extui %331 : vector<8x128xi1> to vector<8x128xi32>
    %333 = arith.sitofp %332 : vector<8x128xi32> to vector<8x128xf32>
    %334 = arith.subf %328, %333 : vector<8x128xf32>
    %cst_125 = arith.constant -1.000000e+00 : f32
    %335 = vector.broadcast %cst_125 : f32 to vector<8x128xf32>
    %336 = arith.cmpf oge, %280, %335 : vector<8x128xf32>
    %337 = arith.extui %336 : vector<8x128xi1> to vector<8x128xi32>
    %338 = arith.sitofp %337 : vector<8x128xi32> to vector<8x128xf32>
    %339 = arith.subf %333, %338 : vector<8x128xf32>
    %cst_126 = arith.constant -6.000000e-01 : f32
    %340 = vector.broadcast %cst_126 : f32 to vector<8x128xf32>
    %341 = arith.cmpf oge, %280, %340 : vector<8x128xf32>
    %342 = arith.extui %341 : vector<8x128xi1> to vector<8x128xi32>
    %343 = arith.sitofp %342 : vector<8x128xi32> to vector<8x128xf32>
    %344 = arith.subf %338, %343 : vector<8x128xf32>
    %cst_127 = arith.constant -0.200000018 : f32
    %345 = vector.broadcast %cst_127 : f32 to vector<8x128xf32>
    %346 = arith.cmpf oge, %280, %345 : vector<8x128xf32>
    %347 = arith.extui %346 : vector<8x128xi1> to vector<8x128xi32>
    %348 = arith.sitofp %347 : vector<8x128xi32> to vector<8x128xf32>
    %349 = arith.subf %343, %348 : vector<8x128xf32>
    %cst_128 = arith.constant 0.200000033 : f32
    %350 = vector.broadcast %cst_128 : f32 to vector<8x128xf32>
    %351 = arith.cmpf oge, %280, %350 : vector<8x128xf32>
    %352 = arith.extui %351 : vector<8x128xi1> to vector<8x128xi32>
    %353 = arith.sitofp %352 : vector<8x128xi32> to vector<8x128xf32>
    %354 = arith.subf %348, %353 : vector<8x128xf32>
    %cst_129 = arith.constant 6.000000e-01 : f32
    %355 = vector.broadcast %cst_129 : f32 to vector<8x128xf32>
    %356 = arith.cmpf oge, %280, %355 : vector<8x128xf32>
    %357 = arith.extui %356 : vector<8x128xi1> to vector<8x128xi32>
    %358 = arith.sitofp %357 : vector<8x128xi32> to vector<8x128xf32>
    %359 = arith.subf %353, %358 : vector<8x128xf32>
    %cst_130 = arith.constant 1.000000e+00 : f32
    %360 = vector.broadcast %cst_130 : f32 to vector<8x128xf32>
    %361 = arith.cmpf oge, %280, %360 : vector<8x128xf32>
    %362 = arith.extui %361 : vector<8x128xi1> to vector<8x128xi32>
    %363 = arith.sitofp %362 : vector<8x128xi32> to vector<8x128xf32>
    %364 = arith.subf %358, %363 : vector<8x128xf32>
    %cst_131 = arith.constant 1.400000e+00 : f32
    %365 = vector.broadcast %cst_131 : f32 to vector<8x128xf32>
    %366 = arith.cmpf oge, %280, %365 : vector<8x128xf32>
    %367 = arith.extui %366 : vector<8x128xi1> to vector<8x128xi32>
    %368 = arith.sitofp %367 : vector<8x128xi32> to vector<8x128xf32>
    %369 = arith.subf %363, %368 : vector<8x128xf32>
    %cst_132 = arith.constant 1.800000e+00 : f32
    %370 = vector.broadcast %cst_132 : f32 to vector<8x128xf32>
    %371 = arith.cmpf oge, %280, %370 : vector<8x128xf32>
    %372 = arith.extui %371 : vector<8x128xi1> to vector<8x128xi32>
    %373 = arith.sitofp %372 : vector<8x128xi32> to vector<8x128xf32>
    %374 = arith.subf %368, %373 : vector<8x128xf32>
    %cst_133 = arith.constant 2.200000e+00 : f32
    %375 = vector.broadcast %cst_133 : f32 to vector<8x128xf32>
    %376 = arith.cmpf oge, %280, %375 : vector<8x128xf32>
    %377 = arith.extui %376 : vector<8x128xi1> to vector<8x128xi32>
    %378 = arith.sitofp %377 : vector<8x128xi32> to vector<8x128xf32>
    %379 = arith.subf %373, %378 : vector<8x128xf32>
    %cst_134 = arith.constant 2.49999952 : f32
    %380 = vector.broadcast %cst_134 : f32 to vector<8x128xf32>
    %381 = arith.mulf %298, %380 : vector<8x128xf32>
    %382 = arith.mulf %381, %329 : vector<8x128xf32>
    %cst_135 = arith.constant 2.50000024 : f32
    %383 = vector.broadcast %cst_135 : f32 to vector<8x128xf32>
    %384 = arith.mulf %302, %383 : vector<8x128xf32>
    %385 = arith.mulf %384, %334 : vector<8x128xf32>
    %386 = arith.subf %382, %385 : vector<8x128xf32>
    %387 = arith.mulf %300, %334 : vector<8x128xf32>
    %388 = arith.mulf %304, %339 : vector<8x128xf32>
    %389 = arith.subf %387, %388 : vector<8x128xf32>
    %cst_136 = arith.constant 2.50000024 : f32
    %390 = vector.broadcast %cst_136 : f32 to vector<8x128xf32>
    %391 = arith.mulf %390, %389 : vector<8x128xf32>
    %392 = arith.mulf %302, %339 : vector<8x128xf32>
    %393 = arith.mulf %306, %344 : vector<8x128xf32>
    %394 = arith.subf %392, %393 : vector<8x128xf32>
    %cst_137 = arith.constant 2.50000024 : f32
    %395 = vector.broadcast %cst_137 : f32 to vector<8x128xf32>
    %396 = arith.mulf %395, %394 : vector<8x128xf32>
    %cst_138 = arith.constant 2.50000024 : f32
    %397 = vector.broadcast %cst_138 : f32 to vector<8x128xf32>
    %398 = arith.mulf %304, %397 : vector<8x128xf32>
    %399 = arith.mulf %398, %344 : vector<8x128xf32>
    %cst_139 = arith.constant 2.500000e+00 : f32
    %400 = vector.broadcast %cst_139 : f32 to vector<8x128xf32>
    %401 = arith.mulf %308, %400 : vector<8x128xf32>
    %402 = arith.mulf %401, %349 : vector<8x128xf32>
    %403 = arith.subf %399, %402 : vector<8x128xf32>
    %cst_140 = arith.constant 2.500000e+00 : f32
    %404 = vector.broadcast %cst_140 : f32 to vector<8x128xf32>
    %405 = arith.mulf %306, %404 : vector<8x128xf32>
    %406 = arith.mulf %405, %349 : vector<8x128xf32>
    %cst_141 = arith.constant 2.49999976 : f32
    %407 = vector.broadcast %cst_141 : f32 to vector<8x128xf32>
    %408 = arith.mulf %310, %407 : vector<8x128xf32>
    %409 = arith.mulf %408, %354 : vector<8x128xf32>
    %410 = arith.subf %406, %409 : vector<8x128xf32>
    %cst_142 = arith.constant 2.49999976 : f32
    %411 = vector.broadcast %cst_142 : f32 to vector<8x128xf32>
    %412 = arith.mulf %308, %411 : vector<8x128xf32>
    %413 = arith.mulf %412, %354 : vector<8x128xf32>
    %cst_143 = arith.constant 2.50000024 : f32
    %414 = vector.broadcast %cst_143 : f32 to vector<8x128xf32>
    %415 = arith.mulf %312, %414 : vector<8x128xf32>
    %416 = arith.mulf %415, %359 : vector<8x128xf32>
    %417 = arith.subf %413, %416 : vector<8x128xf32>
    %418 = arith.mulf %310, %359 : vector<8x128xf32>
    %419 = arith.mulf %314, %364 : vector<8x128xf32>
    %420 = arith.subf %418, %419 : vector<8x128xf32>
    %cst_144 = arith.constant 2.50000024 : f32
    %421 = vector.broadcast %cst_144 : f32 to vector<8x128xf32>
    %422 = arith.mulf %421, %420 : vector<8x128xf32>
    %423 = arith.mulf %312, %364 : vector<8x128xf32>
    %424 = arith.mulf %316, %369 : vector<8x128xf32>
    %425 = arith.subf %423, %424 : vector<8x128xf32>
    %cst_145 = arith.constant 2.50000024 : f32
    %426 = vector.broadcast %cst_145 : f32 to vector<8x128xf32>
    %427 = arith.mulf %426, %425 : vector<8x128xf32>
    %428 = arith.mulf %314, %369 : vector<8x128xf32>
    %429 = arith.mulf %318, %374 : vector<8x128xf32>
    %430 = arith.subf %428, %429 : vector<8x128xf32>
    %cst_146 = arith.constant 2.50000024 : f32
    %431 = vector.broadcast %cst_146 : f32 to vector<8x128xf32>
    %432 = arith.mulf %431, %430 : vector<8x128xf32>
    %cst_147 = arith.constant 2.50000024 : f32
    %433 = vector.broadcast %cst_147 : f32 to vector<8x128xf32>
    %434 = arith.mulf %316, %433 : vector<8x128xf32>
    %435 = arith.mulf %434, %374 : vector<8x128xf32>
    %cst_148 = arith.constant 2.49999952 : f32
    %436 = vector.broadcast %cst_148 : f32 to vector<8x128xf32>
    %437 = arith.mulf %320, %436 : vector<8x128xf32>
    %438 = arith.mulf %437, %379 : vector<8x128xf32>
    %439 = arith.subf %435, %438 : vector<8x128xf32>
    %cst_149 = arith.constant 1.24999988 : f32
    %440 = vector.broadcast %cst_149 : f32 to vector<8x128xf32>
    %441 = arith.mulf %298, %440 : vector<8x128xf32>
    %442 = arith.mulf %441, %386 : vector<8x128xf32>
    %cst_150 = arith.constant 1.25000012 : f32
    %443 = vector.broadcast %cst_150 : f32 to vector<8x128xf32>
    %444 = arith.mulf %304, %443 : vector<8x128xf32>
    %445 = arith.mulf %444, %391 : vector<8x128xf32>
    %446 = arith.subf %442, %445 : vector<8x128xf32>
    %447 = arith.mulf %300, %391 : vector<8x128xf32>
    %448 = arith.mulf %306, %396 : vector<8x128xf32>
    %449 = arith.subf %447, %448 : vector<8x128xf32>
    %cst_151 = arith.constant 1.25000012 : f32
    %450 = vector.broadcast %cst_151 : f32 to vector<8x128xf32>
    %451 = arith.mulf %450, %449 : vector<8x128xf32>
    %452 = arith.mulf %302, %396 : vector<8x128xf32>
    %453 = arith.mulf %308, %403 : vector<8x128xf32>
    %454 = arith.subf %452, %453 : vector<8x128xf32>
    %cst_152 = arith.constant 1.25000012 : f32
    %455 = vector.broadcast %cst_152 : f32 to vector<8x128xf32>
    %456 = arith.mulf %455, %454 : vector<8x128xf32>
    %cst_153 = arith.constant 1.25000012 : f32
    %457 = vector.broadcast %cst_153 : f32 to vector<8x128xf32>
    %458 = arith.mulf %304, %457 : vector<8x128xf32>
    %459 = arith.mulf %458, %403 : vector<8x128xf32>
    %cst_154 = arith.constant 1.24999988 : f32
    %460 = vector.broadcast %cst_154 : f32 to vector<8x128xf32>
    %461 = arith.mulf %310, %460 : vector<8x128xf32>
    %462 = arith.mulf %461, %410 : vector<8x128xf32>
    %463 = arith.subf %459, %462 : vector<8x128xf32>
    %464 = arith.mulf %306, %410 : vector<8x128xf32>
    %465 = arith.mulf %312, %417 : vector<8x128xf32>
    %466 = arith.subf %464, %465 : vector<8x128xf32>
    %cst_155 = arith.constant 1.24999988 : f32
    %467 = vector.broadcast %cst_155 : f32 to vector<8x128xf32>
    %468 = arith.mulf %467, %466 : vector<8x128xf32>
    %cst_156 = arith.constant 1.24999988 : f32
    %469 = vector.broadcast %cst_156 : f32 to vector<8x128xf32>
    %470 = arith.mulf %308, %469 : vector<8x128xf32>
    %471 = arith.mulf %470, %417 : vector<8x128xf32>
    %cst_157 = arith.constant 1.25000012 : f32
    %472 = vector.broadcast %cst_157 : f32 to vector<8x128xf32>
    %473 = arith.mulf %314, %472 : vector<8x128xf32>
    %474 = arith.mulf %473, %422 : vector<8x128xf32>
    %475 = arith.subf %471, %474 : vector<8x128xf32>
    %476 = arith.mulf %310, %422 : vector<8x128xf32>
    %477 = arith.mulf %316, %427 : vector<8x128xf32>
    %478 = arith.subf %476, %477 : vector<8x128xf32>
    %cst_158 = arith.constant 1.25000012 : f32
    %479 = vector.broadcast %cst_158 : f32 to vector<8x128xf32>
    %480 = arith.mulf %479, %478 : vector<8x128xf32>
    %481 = arith.mulf %312, %427 : vector<8x128xf32>
    %482 = arith.mulf %318, %432 : vector<8x128xf32>
    %483 = arith.subf %481, %482 : vector<8x128xf32>
    %cst_159 = arith.constant 1.25000012 : f32
    %484 = vector.broadcast %cst_159 : f32 to vector<8x128xf32>
    %485 = arith.mulf %484, %483 : vector<8x128xf32>
    %cst_160 = arith.constant 1.25000012 : f32
    %486 = vector.broadcast %cst_160 : f32 to vector<8x128xf32>
    %487 = arith.mulf %314, %486 : vector<8x128xf32>
    %488 = arith.mulf %487, %432 : vector<8x128xf32>
    %cst_161 = arith.constant 1.24999988 : f32
    %489 = vector.broadcast %cst_161 : f32 to vector<8x128xf32>
    %490 = arith.mulf %320, %489 : vector<8x128xf32>
    %491 = arith.mulf %490, %439 : vector<8x128xf32>
    %492 = arith.subf %488, %491 : vector<8x128xf32>
    %cst_162 = arith.constant 0.833333313 : f32
    %493 = vector.broadcast %cst_162 : f32 to vector<8x128xf32>
    %494 = arith.mulf %298, %493 : vector<8x128xf32>
    %495 = arith.mulf %494, %446 : vector<8x128xf32>
    %cst_163 = arith.constant 0.833333373 : f32
    %496 = vector.broadcast %cst_163 : f32 to vector<8x128xf32>
    %497 = arith.mulf %306, %496 : vector<8x128xf32>
    %498 = arith.mulf %497, %451 : vector<8x128xf32>
    %499 = arith.subf %495, %498 : vector<8x128xf32>
    %500 = arith.mulf %300, %451 : vector<8x128xf32>
    %501 = arith.mulf %308, %456 : vector<8x128xf32>
    %502 = arith.subf %500, %501 : vector<8x128xf32>
    %cst_164 = arith.constant 0.833333373 : f32
    %503 = vector.broadcast %cst_164 : f32 to vector<8x128xf32>
    %504 = arith.mulf %503, %502 : vector<8x128xf32>
    %cst_165 = arith.constant 0.833333373 : f32
    %505 = vector.broadcast %cst_165 : f32 to vector<8x128xf32>
    %506 = arith.mulf %302, %505 : vector<8x128xf32>
    %507 = arith.mulf %506, %456 : vector<8x128xf32>
    %cst_166 = arith.constant 0.833333313 : f32
    %508 = vector.broadcast %cst_166 : f32 to vector<8x128xf32>
    %509 = arith.mulf %310, %508 : vector<8x128xf32>
    %510 = arith.mulf %509, %463 : vector<8x128xf32>
    %511 = arith.subf %507, %510 : vector<8x128xf32>
    %512 = arith.mulf %304, %463 : vector<8x128xf32>
    %513 = arith.mulf %312, %468 : vector<8x128xf32>
    %514 = arith.subf %512, %513 : vector<8x128xf32>
    %cst_167 = arith.constant 0.833333313 : f32
    %515 = vector.broadcast %cst_167 : f32 to vector<8x128xf32>
    %516 = arith.mulf %515, %514 : vector<8x128xf32>
    %517 = arith.mulf %306, %468 : vector<8x128xf32>
    %518 = arith.mulf %314, %475 : vector<8x128xf32>
    %519 = arith.subf %517, %518 : vector<8x128xf32>
    %cst_168 = arith.constant 0.833333313 : f32
    %520 = vector.broadcast %cst_168 : f32 to vector<8x128xf32>
    %521 = arith.mulf %520, %519 : vector<8x128xf32>
    %cst_169 = arith.constant 0.833333313 : f32
    %522 = vector.broadcast %cst_169 : f32 to vector<8x128xf32>
    %523 = arith.mulf %308, %522 : vector<8x128xf32>
    %524 = arith.mulf %523, %475 : vector<8x128xf32>
    %cst_170 = arith.constant 0.833333373 : f32
    %525 = vector.broadcast %cst_170 : f32 to vector<8x128xf32>
    %526 = arith.mulf %316, %525 : vector<8x128xf32>
    %527 = arith.mulf %526, %480 : vector<8x128xf32>
    %528 = arith.subf %524, %527 : vector<8x128xf32>
    %529 = arith.mulf %310, %480 : vector<8x128xf32>
    %530 = arith.mulf %318, %485 : vector<8x128xf32>
    %531 = arith.subf %529, %530 : vector<8x128xf32>
    %cst_171 = arith.constant 0.833333373 : f32
    %532 = vector.broadcast %cst_171 : f32 to vector<8x128xf32>
    %533 = arith.mulf %532, %531 : vector<8x128xf32>
    %cst_172 = arith.constant 0.833333373 : f32
    %534 = vector.broadcast %cst_172 : f32 to vector<8x128xf32>
    %535 = arith.mulf %312, %534 : vector<8x128xf32>
    %536 = arith.mulf %535, %485 : vector<8x128xf32>
    %cst_173 = arith.constant 0.833333313 : f32
    %537 = vector.broadcast %cst_173 : f32 to vector<8x128xf32>
    %538 = arith.mulf %320, %537 : vector<8x128xf32>
    %539 = arith.mulf %538, %492 : vector<8x128xf32>
    %540 = arith.subf %536, %539 : vector<8x128xf32>
    %541 = arith.mulf %282, %499 : vector<8x128xf32>
    %542 = arith.mulf %284, %504 : vector<8x128xf32>
    %543 = arith.addf %541, %542 : vector<8x128xf32>
    %544 = arith.mulf %286, %511 : vector<8x128xf32>
    %545 = arith.addf %543, %544 : vector<8x128xf32>
    %546 = arith.mulf %288, %516 : vector<8x128xf32>
    %547 = arith.addf %545, %546 : vector<8x128xf32>
    %548 = arith.mulf %290, %521 : vector<8x128xf32>
    %549 = arith.addf %547, %548 : vector<8x128xf32>
    %550 = arith.mulf %292, %528 : vector<8x128xf32>
    %551 = arith.addf %549, %550 : vector<8x128xf32>
    %552 = arith.mulf %294, %533 : vector<8x128xf32>
    %553 = arith.addf %551, %552 : vector<8x128xf32>
    %554 = arith.mulf %296, %540 : vector<8x128xf32>
    %555 = arith.addf %553, %554 : vector<8x128xf32>
    %556 = vector.extract_strided_slice %279 {offsets = [8, 0], sizes = [8, 128], strides = [1, 1]} : vector<32x128xf32> to vector<8x128xf32>
    %c0_174 = arith.constant 0 : index
    %c8 = arith.constant 8 : index
    %c0_175 = arith.constant 0 : index
    %557 = vector.load %arg5[%c0_174, %c8, %c0_175] : memref<8x32x128xf32, #tpu.memory_space<vmem>>, vector<1x8x128xf32>
    %558 = vector.shape_cast %557 : vector<1x8x128xf32> to vector<8x128xf32>
    %c1_176 = arith.constant 1 : index
    %c8_177 = arith.constant 8 : index
    %c0_178 = arith.constant 0 : index
    %559 = vector.load %arg5[%c1_176, %c8_177, %c0_178] : memref<8x32x128xf32, #tpu.memory_space<vmem>>, vector<1x8x128xf32>
    %560 = vector.shape_cast %559 : vector<1x8x128xf32> to vector<8x128xf32>
    %c2_179 = arith.constant 2 : index
    %c8_180 = arith.constant 8 : index
    %c0_181 = arith.constant 0 : index
    %561 = vector.load %arg5[%c2_179, %c8_180, %c0_181] : memref<8x32x128xf32, #tpu.memory_space<vmem>>, vector<1x8x128xf32>
    %562 = vector.shape_cast %561 : vector<1x8x128xf32> to vector<8x128xf32>
    %c3_182 = arith.constant 3 : index
    %c8_183 = arith.constant 8 : index
    %c0_184 = arith.constant 0 : index
    %563 = vector.load %arg5[%c3_182, %c8_183, %c0_184] : memref<8x32x128xf32, #tpu.memory_space<vmem>>, vector<1x8x128xf32>
    %564 = vector.shape_cast %563 : vector<1x8x128xf32> to vector<8x128xf32>
    %c4_185 = arith.constant 4 : index
    %c8_186 = arith.constant 8 : index
    %c0_187 = arith.constant 0 : index
    %565 = vector.load %arg5[%c4_185, %c8_186, %c0_187] : memref<8x32x128xf32, #tpu.memory_space<vmem>>, vector<1x8x128xf32>
    %566 = vector.shape_cast %565 : vector<1x8x128xf32> to vector<8x128xf32>
    %c5_188 = arith.constant 5 : index
    %c8_189 = arith.constant 8 : index
    %c0_190 = arith.constant 0 : index
    %567 = vector.load %arg5[%c5_188, %c8_189, %c0_190] : memref<8x32x128xf32, #tpu.memory_space<vmem>>, vector<1x8x128xf32>
    %568 = vector.shape_cast %567 : vector<1x8x128xf32> to vector<8x128xf32>
    %c6_191 = arith.constant 6 : index
    %c8_192 = arith.constant 8 : index
    %c0_193 = arith.constant 0 : index
    %569 = vector.load %arg5[%c6_191, %c8_192, %c0_193] : memref<8x32x128xf32, #tpu.memory_space<vmem>>, vector<1x8x128xf32>
    %570 = vector.shape_cast %569 : vector<1x8x128xf32> to vector<8x128xf32>
    %c7_194 = arith.constant 7 : index
    %c8_195 = arith.constant 8 : index
    %c0_196 = arith.constant 0 : index
    %571 = vector.load %arg5[%c7_194, %c8_195, %c0_196] : memref<8x32x128xf32, #tpu.memory_space<vmem>>, vector<1x8x128xf32>
    %572 = vector.shape_cast %571 : vector<1x8x128xf32> to vector<8x128xf32>
    %cst_197 = arith.constant -2.200000e+00 : f32
    %573 = vector.broadcast %cst_197 : f32 to vector<8x128xf32>
    %574 = arith.subf %556, %573 : vector<8x128xf32>
    %cst_198 = arith.constant -1.800000e+00 : f32
    %575 = vector.broadcast %cst_198 : f32 to vector<8x128xf32>
    %576 = arith.subf %556, %575 : vector<8x128xf32>
    %cst_199 = arith.constant -1.400000e+00 : f32
    %577 = vector.broadcast %cst_199 : f32 to vector<8x128xf32>
    %578 = arith.subf %556, %577 : vector<8x128xf32>
    %cst_200 = arith.constant -1.000000e+00 : f32
    %579 = vector.broadcast %cst_200 : f32 to vector<8x128xf32>
    %580 = arith.subf %556, %579 : vector<8x128xf32>
    %cst_201 = arith.constant -6.000000e-01 : f32
    %581 = vector.broadcast %cst_201 : f32 to vector<8x128xf32>
    %582 = arith.subf %556, %581 : vector<8x128xf32>
    %cst_202 = arith.constant -0.200000018 : f32
    %583 = vector.broadcast %cst_202 : f32 to vector<8x128xf32>
    %584 = arith.subf %556, %583 : vector<8x128xf32>
    %cst_203 = arith.constant 0.200000033 : f32
    %585 = vector.broadcast %cst_203 : f32 to vector<8x128xf32>
    %586 = arith.subf %556, %585 : vector<8x128xf32>
    %cst_204 = arith.constant 6.000000e-01 : f32
    %587 = vector.broadcast %cst_204 : f32 to vector<8x128xf32>
    %588 = arith.subf %556, %587 : vector<8x128xf32>
    %cst_205 = arith.constant 1.000000e+00 : f32
    %589 = vector.broadcast %cst_205 : f32 to vector<8x128xf32>
    %590 = arith.subf %556, %589 : vector<8x128xf32>
    %cst_206 = arith.constant 1.400000e+00 : f32
    %591 = vector.broadcast %cst_206 : f32 to vector<8x128xf32>
    %592 = arith.subf %556, %591 : vector<8x128xf32>
    %cst_207 = arith.constant 1.800000e+00 : f32
    %593 = vector.broadcast %cst_207 : f32 to vector<8x128xf32>
    %594 = arith.subf %556, %593 : vector<8x128xf32>
    %cst_208 = arith.constant 2.200000e+00 : f32
    %595 = vector.broadcast %cst_208 : f32 to vector<8x128xf32>
    %596 = arith.subf %556, %595 : vector<8x128xf32>
    %cst_209 = arith.constant -2.200000e+00 : f32
    %597 = vector.broadcast %cst_209 : f32 to vector<8x128xf32>
    %598 = arith.cmpf oge, %556, %597 : vector<8x128xf32>
    %599 = arith.extui %598 : vector<8x128xi1> to vector<8x128xi32>
    %600 = arith.sitofp %599 : vector<8x128xi32> to vector<8x128xf32>
    %cst_210 = arith.constant -1.800000e+00 : f32
    %601 = vector.broadcast %cst_210 : f32 to vector<8x128xf32>
    %602 = arith.cmpf oge, %556, %601 : vector<8x128xf32>
    %603 = arith.extui %602 : vector<8x128xi1> to vector<8x128xi32>
    %604 = arith.sitofp %603 : vector<8x128xi32> to vector<8x128xf32>
    %605 = arith.subf %600, %604 : vector<8x128xf32>
    %cst_211 = arith.constant -1.400000e+00 : f32
    %606 = vector.broadcast %cst_211 : f32 to vector<8x128xf32>
    %607 = arith.cmpf oge, %556, %606 : vector<8x128xf32>
    %608 = arith.extui %607 : vector<8x128xi1> to vector<8x128xi32>
    %609 = arith.sitofp %608 : vector<8x128xi32> to vector<8x128xf32>
    %610 = arith.subf %604, %609 : vector<8x128xf32>
    %cst_212 = arith.constant -1.000000e+00 : f32
    %611 = vector.broadcast %cst_212 : f32 to vector<8x128xf32>
    %612 = arith.cmpf oge, %556, %611 : vector<8x128xf32>
    %613 = arith.extui %612 : vector<8x128xi1> to vector<8x128xi32>
    %614 = arith.sitofp %613 : vector<8x128xi32> to vector<8x128xf32>
    %615 = arith.subf %609, %614 : vector<8x128xf32>
    %cst_213 = arith.constant -6.000000e-01 : f32
    %616 = vector.broadcast %cst_213 : f32 to vector<8x128xf32>
    %617 = arith.cmpf oge, %556, %616 : vector<8x128xf32>
    %618 = arith.extui %617 : vector<8x128xi1> to vector<8x128xi32>
    %619 = arith.sitofp %618 : vector<8x128xi32> to vector<8x128xf32>
    %620 = arith.subf %614, %619 : vector<8x128xf32>
    %cst_214 = arith.constant -0.200000018 : f32
    %621 = vector.broadcast %cst_214 : f32 to vector<8x128xf32>
    %622 = arith.cmpf oge, %556, %621 : vector<8x128xf32>
    %623 = arith.extui %622 : vector<8x128xi1> to vector<8x128xi32>
    %624 = arith.sitofp %623 : vector<8x128xi32> to vector<8x128xf32>
    %625 = arith.subf %619, %624 : vector<8x128xf32>
    %cst_215 = arith.constant 0.200000033 : f32
    %626 = vector.broadcast %cst_215 : f32 to vector<8x128xf32>
    %627 = arith.cmpf oge, %556, %626 : vector<8x128xf32>
    %628 = arith.extui %627 : vector<8x128xi1> to vector<8x128xi32>
    %629 = arith.sitofp %628 : vector<8x128xi32> to vector<8x128xf32>
    %630 = arith.subf %624, %629 : vector<8x128xf32>
    %cst_216 = arith.constant 6.000000e-01 : f32
    %631 = vector.broadcast %cst_216 : f32 to vector<8x128xf32>
    %632 = arith.cmpf oge, %556, %631 : vector<8x128xf32>
    %633 = arith.extui %632 : vector<8x128xi1> to vector<8x128xi32>
    %634 = arith.sitofp %633 : vector<8x128xi32> to vector<8x128xf32>
    %635 = arith.subf %629, %634 : vector<8x128xf32>
    %cst_217 = arith.constant 1.000000e+00 : f32
    %636 = vector.broadcast %cst_217 : f32 to vector<8x128xf32>
    %637 = arith.cmpf oge, %556, %636 : vector<8x128xf32>
    %638 = arith.extui %637 : vector<8x128xi1> to vector<8x128xi32>
    %639 = arith.sitofp %638 : vector<8x128xi32> to vector<8x128xf32>
    %640 = arith.subf %634, %639 : vector<8x128xf32>
    %cst_218 = arith.constant 1.400000e+00 : f32
    %641 = vector.broadcast %cst_218 : f32 to vector<8x128xf32>
    %642 = arith.cmpf oge, %556, %641 : vector<8x128xf32>
    %643 = arith.extui %642 : vector<8x128xi1> to vector<8x128xi32>
    %644 = arith.sitofp %643 : vector<8x128xi32> to vector<8x128xf32>
    %645 = arith.subf %639, %644 : vector<8x128xf32>
    %cst_219 = arith.constant 1.800000e+00 : f32
    %646 = vector.broadcast %cst_219 : f32 to vector<8x128xf32>
    %647 = arith.cmpf oge, %556, %646 : vector<8x128xf32>
    %648 = arith.extui %647 : vector<8x128xi1> to vector<8x128xi32>
    %649 = arith.sitofp %648 : vector<8x128xi32> to vector<8x128xf32>
    %650 = arith.subf %644, %649 : vector<8x128xf32>
    %cst_220 = arith.constant 2.200000e+00 : f32
    %651 = vector.broadcast %cst_220 : f32 to vector<8x128xf32>
    %652 = arith.cmpf oge, %556, %651 : vector<8x128xf32>
    %653 = arith.extui %652 : vector<8x128xi1> to vector<8x128xi32>
    %654 = arith.sitofp %653 : vector<8x128xi32> to vector<8x128xf32>
    %655 = arith.subf %649, %654 : vector<8x128xf32>
    %cst_221 = arith.constant 2.49999952 : f32
    %656 = vector.broadcast %cst_221 : f32 to vector<8x128xf32>
    %657 = arith.mulf %574, %656 : vector<8x128xf32>
    %658 = arith.mulf %657, %605 : vector<8x128xf32>
    %cst_222 = arith.constant 2.50000024 : f32
    %659 = vector.broadcast %cst_222 : f32 to vector<8x128xf32>
    %660 = arith.mulf %578, %659 : vector<8x128xf32>
    %661 = arith.mulf %660, %610 : vector<8x128xf32>
    %662 = arith.subf %658, %661 : vector<8x128xf32>
    %663 = arith.mulf %576, %610 : vector<8x128xf32>
    %664 = arith.mulf %580, %615 : vector<8x128xf32>
    %665 = arith.subf %663, %664 : vector<8x128xf32>
    %cst_223 = arith.constant 2.50000024 : f32
    %666 = vector.broadcast %cst_223 : f32 to vector<8x128xf32>
    %667 = arith.mulf %666, %665 : vector<8x128xf32>
    %668 = arith.mulf %578, %615 : vector<8x128xf32>
    %669 = arith.mulf %582, %620 : vector<8x128xf32>
    %670 = arith.subf %668, %669 : vector<8x128xf32>
    %cst_224 = arith.constant 2.50000024 : f32
    %671 = vector.broadcast %cst_224 : f32 to vector<8x128xf32>
    %672 = arith.mulf %671, %670 : vector<8x128xf32>
    %cst_225 = arith.constant 2.50000024 : f32
    %673 = vector.broadcast %cst_225 : f32 to vector<8x128xf32>
    %674 = arith.mulf %580, %673 : vector<8x128xf32>
    %675 = arith.mulf %674, %620 : vector<8x128xf32>
    %cst_226 = arith.constant 2.500000e+00 : f32
    %676 = vector.broadcast %cst_226 : f32 to vector<8x128xf32>
    %677 = arith.mulf %584, %676 : vector<8x128xf32>
    %678 = arith.mulf %677, %625 : vector<8x128xf32>
    %679 = arith.subf %675, %678 : vector<8x128xf32>
    %cst_227 = arith.constant 2.500000e+00 : f32
    %680 = vector.broadcast %cst_227 : f32 to vector<8x128xf32>
    %681 = arith.mulf %582, %680 : vector<8x128xf32>
    %682 = arith.mulf %681, %625 : vector<8x128xf32>
    %cst_228 = arith.constant 2.49999976 : f32
    %683 = vector.broadcast %cst_228 : f32 to vector<8x128xf32>
    %684 = arith.mulf %586, %683 : vector<8x128xf32>
    %685 = arith.mulf %684, %630 : vector<8x128xf32>
    %686 = arith.subf %682, %685 : vector<8x128xf32>
    %cst_229 = arith.constant 2.49999976 : f32
    %687 = vector.broadcast %cst_229 : f32 to vector<8x128xf32>
    %688 = arith.mulf %584, %687 : vector<8x128xf32>
    %689 = arith.mulf %688, %630 : vector<8x128xf32>
    %cst_230 = arith.constant 2.50000024 : f32
    %690 = vector.broadcast %cst_230 : f32 to vector<8x128xf32>
    %691 = arith.mulf %588, %690 : vector<8x128xf32>
    %692 = arith.mulf %691, %635 : vector<8x128xf32>
    %693 = arith.subf %689, %692 : vector<8x128xf32>
    %694 = arith.mulf %586, %635 : vector<8x128xf32>
    %695 = arith.mulf %590, %640 : vector<8x128xf32>
    %696 = arith.subf %694, %695 : vector<8x128xf32>
    %cst_231 = arith.constant 2.50000024 : f32
    %697 = vector.broadcast %cst_231 : f32 to vector<8x128xf32>
    %698 = arith.mulf %697, %696 : vector<8x128xf32>
    %699 = arith.mulf %588, %640 : vector<8x128xf32>
    %700 = arith.mulf %592, %645 : vector<8x128xf32>
    %701 = arith.subf %699, %700 : vector<8x128xf32>
    %cst_232 = arith.constant 2.50000024 : f32
    %702 = vector.broadcast %cst_232 : f32 to vector<8x128xf32>
    %703 = arith.mulf %702, %701 : vector<8x128xf32>
    %704 = arith.mulf %590, %645 : vector<8x128xf32>
    %705 = arith.mulf %594, %650 : vector<8x128xf32>
    %706 = arith.subf %704, %705 : vector<8x128xf32>
    %cst_233 = arith.constant 2.50000024 : f32
    %707 = vector.broadcast %cst_233 : f32 to vector<8x128xf32>
    %708 = arith.mulf %707, %706 : vector<8x128xf32>
    %cst_234 = arith.constant 2.50000024 : f32
    %709 = vector.broadcast %cst_234 : f32 to vector<8x128xf32>
    %710 = arith.mulf %592, %709 : vector<8x128xf32>
    %711 = arith.mulf %710, %650 : vector<8x128xf32>
    %cst_235 = arith.constant 2.49999952 : f32
    %712 = vector.broadcast %cst_235 : f32 to vector<8x128xf32>
    %713 = arith.mulf %596, %712 : vector<8x128xf32>
    %714 = arith.mulf %713, %655 : vector<8x128xf32>
    %715 = arith.subf %711, %714 : vector<8x128xf32>
    %cst_236 = arith.constant 1.24999988 : f32
    %716 = vector.broadcast %cst_236 : f32 to vector<8x128xf32>
    %717 = arith.mulf %574, %716 : vector<8x128xf32>
    %718 = arith.mulf %717, %662 : vector<8x128xf32>
    %cst_237 = arith.constant 1.25000012 : f32
    %719 = vector.broadcast %cst_237 : f32 to vector<8x128xf32>
    %720 = arith.mulf %580, %719 : vector<8x128xf32>
    %721 = arith.mulf %720, %667 : vector<8x128xf32>
    %722 = arith.subf %718, %721 : vector<8x128xf32>
    %723 = arith.mulf %576, %667 : vector<8x128xf32>
    %724 = arith.mulf %582, %672 : vector<8x128xf32>
    %725 = arith.subf %723, %724 : vector<8x128xf32>
    %cst_238 = arith.constant 1.25000012 : f32
    %726 = vector.broadcast %cst_238 : f32 to vector<8x128xf32>
    %727 = arith.mulf %726, %725 : vector<8x128xf32>
    %728 = arith.mulf %578, %672 : vector<8x128xf32>
    %729 = arith.mulf %584, %679 : vector<8x128xf32>
    %730 = arith.subf %728, %729 : vector<8x128xf32>
    %cst_239 = arith.constant 1.25000012 : f32
    %731 = vector.broadcast %cst_239 : f32 to vector<8x128xf32>
    %732 = arith.mulf %731, %730 : vector<8x128xf32>
    %cst_240 = arith.constant 1.25000012 : f32
    %733 = vector.broadcast %cst_240 : f32 to vector<8x128xf32>
    %734 = arith.mulf %580, %733 : vector<8x128xf32>
    %735 = arith.mulf %734, %679 : vector<8x128xf32>
    %cst_241 = arith.constant 1.24999988 : f32
    %736 = vector.broadcast %cst_241 : f32 to vector<8x128xf32>
    %737 = arith.mulf %586, %736 : vector<8x128xf32>
    %738 = arith.mulf %737, %686 : vector<8x128xf32>
    %739 = arith.subf %735, %738 : vector<8x128xf32>
    %740 = arith.mulf %582, %686 : vector<8x128xf32>
    %741 = arith.mulf %588, %693 : vector<8x128xf32>
    %742 = arith.subf %740, %741 : vector<8x128xf32>
    %cst_242 = arith.constant 1.24999988 : f32
    %743 = vector.broadcast %cst_242 : f32 to vector<8x128xf32>
    %744 = arith.mulf %743, %742 : vector<8x128xf32>
    %cst_243 = arith.constant 1.24999988 : f32
    %745 = vector.broadcast %cst_243 : f32 to vector<8x128xf32>
    %746 = arith.mulf %584, %745 : vector<8x128xf32>
    %747 = arith.mulf %746, %693 : vector<8x128xf32>
    %cst_244 = arith.constant 1.25000012 : f32
    %748 = vector.broadcast %cst_244 : f32 to vector<8x128xf32>
    %749 = arith.mulf %590, %748 : vector<8x128xf32>
    %750 = arith.mulf %749, %698 : vector<8x128xf32>
    %751 = arith.subf %747, %750 : vector<8x128xf32>
    %752 = arith.mulf %586, %698 : vector<8x128xf32>
    %753 = arith.mulf %592, %703 : vector<8x128xf32>
    %754 = arith.subf %752, %753 : vector<8x128xf32>
    %cst_245 = arith.constant 1.25000012 : f32
    %755 = vector.broadcast %cst_245 : f32 to vector<8x128xf32>
    %756 = arith.mulf %755, %754 : vector<8x128xf32>
    %757 = arith.mulf %588, %703 : vector<8x128xf32>
    %758 = arith.mulf %594, %708 : vector<8x128xf32>
    %759 = arith.subf %757, %758 : vector<8x128xf32>
    %cst_246 = arith.constant 1.25000012 : f32
    %760 = vector.broadcast %cst_246 : f32 to vector<8x128xf32>
    %761 = arith.mulf %760, %759 : vector<8x128xf32>
    %cst_247 = arith.constant 1.25000012 : f32
    %762 = vector.broadcast %cst_247 : f32 to vector<8x128xf32>
    %763 = arith.mulf %590, %762 : vector<8x128xf32>
    %764 = arith.mulf %763, %708 : vector<8x128xf32>
    %cst_248 = arith.constant 1.24999988 : f32
    %765 = vector.broadcast %cst_248 : f32 to vector<8x128xf32>
    %766 = arith.mulf %596, %765 : vector<8x128xf32>
    %767 = arith.mulf %766, %715 : vector<8x128xf32>
    %768 = arith.subf %764, %767 : vector<8x128xf32>
    %cst_249 = arith.constant 0.833333313 : f32
    %769 = vector.broadcast %cst_249 : f32 to vector<8x128xf32>
    %770 = arith.mulf %574, %769 : vector<8x128xf32>
    %771 = arith.mulf %770, %722 : vector<8x128xf32>
    %cst_250 = arith.constant 0.833333373 : f32
    %772 = vector.broadcast %cst_250 : f32 to vector<8x128xf32>
    %773 = arith.mulf %582, %772 : vector<8x128xf32>
    %774 = arith.mulf %773, %727 : vector<8x128xf32>
    %775 = arith.subf %771, %774 : vector<8x128xf32>
    %776 = arith.mulf %576, %727 : vector<8x128xf32>
    %777 = arith.mulf %584, %732 : vector<8x128xf32>
    %778 = arith.subf %776, %777 : vector<8x128xf32>
    %cst_251 = arith.constant 0.833333373 : f32
    %779 = vector.broadcast %cst_251 : f32 to vector<8x128xf32>
    %780 = arith.mulf %779, %778 : vector<8x128xf32>
    %cst_252 = arith.constant 0.833333373 : f32
    %781 = vector.broadcast %cst_252 : f32 to vector<8x128xf32>
    %782 = arith.mulf %578, %781 : vector<8x128xf32>
    %783 = arith.mulf %782, %732 : vector<8x128xf32>
    %cst_253 = arith.constant 0.833333313 : f32
    %784 = vector.broadcast %cst_253 : f32 to vector<8x128xf32>
    %785 = arith.mulf %586, %784 : vector<8x128xf32>
    %786 = arith.mulf %785, %739 : vector<8x128xf32>
    %787 = arith.subf %783, %786 : vector<8x128xf32>
    %788 = arith.mulf %580, %739 : vector<8x128xf32>
    %789 = arith.mulf %588, %744 : vector<8x128xf32>
    %790 = arith.subf %788, %789 : vector<8x128xf32>
    %cst_254 = arith.constant 0.833333313 : f32
    %791 = vector.broadcast %cst_254 : f32 to vector<8x128xf32>
    %792 = arith.mulf %791, %790 : vector<8x128xf32>
    %793 = arith.mulf %582, %744 : vector<8x128xf32>
    %794 = arith.mulf %590, %751 : vector<8x128xf32>
    %795 = arith.subf %793, %794 : vector<8x128xf32>
    %cst_255 = arith.constant 0.833333313 : f32
    %796 = vector.broadcast %cst_255 : f32 to vector<8x128xf32>
    %797 = arith.mulf %796, %795 : vector<8x128xf32>
    %cst_256 = arith.constant 0.833333313 : f32
    %798 = vector.broadcast %cst_256 : f32 to vector<8x128xf32>
    %799 = arith.mulf %584, %798 : vector<8x128xf32>
    %800 = arith.mulf %799, %751 : vector<8x128xf32>
    %cst_257 = arith.constant 0.833333373 : f32
    %801 = vector.broadcast %cst_257 : f32 to vector<8x128xf32>
    %802 = arith.mulf %592, %801 : vector<8x128xf32>
    %803 = arith.mulf %802, %756 : vector<8x128xf32>
    %804 = arith.subf %800, %803 : vector<8x128xf32>
    %805 = arith.mulf %586, %756 : vector<8x128xf32>
    %806 = arith.mulf %594, %761 : vector<8x128xf32>
    %807 = arith.subf %805, %806 : vector<8x128xf32>
    %cst_258 = arith.constant 0.833333373 : f32
    %808 = vector.broadcast %cst_258 : f32 to vector<8x128xf32>
    %809 = arith.mulf %808, %807 : vector<8x128xf32>
    %cst_259 = arith.constant 0.833333373 : f32
    %810 = vector.broadcast %cst_259 : f32 to vector<8x128xf32>
    %811 = arith.mulf %588, %810 : vector<8x128xf32>
    %812 = arith.mulf %811, %761 : vector<8x128xf32>
    %cst_260 = arith.constant 0.833333313 : f32
    %813 = vector.broadcast %cst_260 : f32 to vector<8x128xf32>
    %814 = arith.mulf %596, %813 : vector<8x128xf32>
    %815 = arith.mulf %814, %768 : vector<8x128xf32>
    %816 = arith.subf %812, %815 : vector<8x128xf32>
    %817 = arith.mulf %558, %775 : vector<8x128xf32>
    %818 = arith.mulf %560, %780 : vector<8x128xf32>
    %819 = arith.addf %817, %818 : vector<8x128xf32>
    %820 = arith.mulf %562, %787 : vector<8x128xf32>
    %821 = arith.addf %819, %820 : vector<8x128xf32>
    %822 = arith.mulf %564, %792 : vector<8x128xf32>
    %823 = arith.addf %821, %822 : vector<8x128xf32>
    %824 = arith.mulf %566, %797 : vector<8x128xf32>
    %825 = arith.addf %823, %824 : vector<8x128xf32>
    %826 = arith.mulf %568, %804 : vector<8x128xf32>
    %827 = arith.addf %825, %826 : vector<8x128xf32>
    %828 = arith.mulf %570, %809 : vector<8x128xf32>
    %829 = arith.addf %827, %828 : vector<8x128xf32>
    %830 = arith.mulf %572, %816 : vector<8x128xf32>
    %831 = arith.addf %829, %830 : vector<8x128xf32>
    %832 = vector.extract_strided_slice %279 {offsets = [16, 0], sizes = [8, 128], strides = [1, 1]} : vector<32x128xf32> to vector<8x128xf32>
    %c0_261 = arith.constant 0 : index
    %c16 = arith.constant 16 : index
    %c0_262 = arith.constant 0 : index
    %833 = vector.load %arg5[%c0_261, %c16, %c0_262] : memref<8x32x128xf32, #tpu.memory_space<vmem>>, vector<1x8x128xf32>
    %834 = vector.shape_cast %833 : vector<1x8x128xf32> to vector<8x128xf32>
    %c1_263 = arith.constant 1 : index
    %c16_264 = arith.constant 16 : index
    %c0_265 = arith.constant 0 : index
    %835 = vector.load %arg5[%c1_263, %c16_264, %c0_265] : memref<8x32x128xf32, #tpu.memory_space<vmem>>, vector<1x8x128xf32>
    %836 = vector.shape_cast %835 : vector<1x8x128xf32> to vector<8x128xf32>
    %c2_266 = arith.constant 2 : index
    %c16_267 = arith.constant 16 : index
    %c0_268 = arith.constant 0 : index
    %837 = vector.load %arg5[%c2_266, %c16_267, %c0_268] : memref<8x32x128xf32, #tpu.memory_space<vmem>>, vector<1x8x128xf32>
    %838 = vector.shape_cast %837 : vector<1x8x128xf32> to vector<8x128xf32>
    %c3_269 = arith.constant 3 : index
    %c16_270 = arith.constant 16 : index
    %c0_271 = arith.constant 0 : index
    %839 = vector.load %arg5[%c3_269, %c16_270, %c0_271] : memref<8x32x128xf32, #tpu.memory_space<vmem>>, vector<1x8x128xf32>
    %840 = vector.shape_cast %839 : vector<1x8x128xf32> to vector<8x128xf32>
    %c4_272 = arith.constant 4 : index
    %c16_273 = arith.constant 16 : index
    %c0_274 = arith.constant 0 : index
    %841 = vector.load %arg5[%c4_272, %c16_273, %c0_274] : memref<8x32x128xf32, #tpu.memory_space<vmem>>, vector<1x8x128xf32>
    %842 = vector.shape_cast %841 : vector<1x8x128xf32> to vector<8x128xf32>
    %c5_275 = arith.constant 5 : index
    %c16_276 = arith.constant 16 : index
    %c0_277 = arith.constant 0 : index
    %843 = vector.load %arg5[%c5_275, %c16_276, %c0_277] : memref<8x32x128xf32, #tpu.memory_space<vmem>>, vector<1x8x128xf32>
    %844 = vector.shape_cast %843 : vector<1x8x128xf32> to vector<8x128xf32>
    %c6_278 = arith.constant 6 : index
    %c16_279 = arith.constant 16 : index
    %c0_280 = arith.constant 0 : index
    %845 = vector.load %arg5[%c6_278, %c16_279, %c0_280] : memref<8x32x128xf32, #tpu.memory_space<vmem>>, vector<1x8x128xf32>
    %846 = vector.shape_cast %845 : vector<1x8x128xf32> to vector<8x128xf32>
    %c7_281 = arith.constant 7 : index
    %c16_282 = arith.constant 16 : index
    %c0_283 = arith.constant 0 : index
    %847 = vector.load %arg5[%c7_281, %c16_282, %c0_283] : memref<8x32x128xf32, #tpu.memory_space<vmem>>, vector<1x8x128xf32>
    %848 = vector.shape_cast %847 : vector<1x8x128xf32> to vector<8x128xf32>
    %cst_284 = arith.constant -2.200000e+00 : f32
    %849 = vector.broadcast %cst_284 : f32 to vector<8x128xf32>
    %850 = arith.subf %832, %849 : vector<8x128xf32>
    %cst_285 = arith.constant -1.800000e+00 : f32
    %851 = vector.broadcast %cst_285 : f32 to vector<8x128xf32>
    %852 = arith.subf %832, %851 : vector<8x128xf32>
    %cst_286 = arith.constant -1.400000e+00 : f32
    %853 = vector.broadcast %cst_286 : f32 to vector<8x128xf32>
    %854 = arith.subf %832, %853 : vector<8x128xf32>
    %cst_287 = arith.constant -1.000000e+00 : f32
    %855 = vector.broadcast %cst_287 : f32 to vector<8x128xf32>
    %856 = arith.subf %832, %855 : vector<8x128xf32>
    %cst_288 = arith.constant -6.000000e-01 : f32
    %857 = vector.broadcast %cst_288 : f32 to vector<8x128xf32>
    %858 = arith.subf %832, %857 : vector<8x128xf32>
    %cst_289 = arith.constant -0.200000018 : f32
    %859 = vector.broadcast %cst_289 : f32 to vector<8x128xf32>
    %860 = arith.subf %832, %859 : vector<8x128xf32>
    %cst_290 = arith.constant 0.200000033 : f32
    %861 = vector.broadcast %cst_290 : f32 to vector<8x128xf32>
    %862 = arith.subf %832, %861 : vector<8x128xf32>
    %cst_291 = arith.constant 6.000000e-01 : f32
    %863 = vector.broadcast %cst_291 : f32 to vector<8x128xf32>
    %864 = arith.subf %832, %863 : vector<8x128xf32>
    %cst_292 = arith.constant 1.000000e+00 : f32
    %865 = vector.broadcast %cst_292 : f32 to vector<8x128xf32>
    %866 = arith.subf %832, %865 : vector<8x128xf32>
    %cst_293 = arith.constant 1.400000e+00 : f32
    %867 = vector.broadcast %cst_293 : f32 to vector<8x128xf32>
    %868 = arith.subf %832, %867 : vector<8x128xf32>
    %cst_294 = arith.constant 1.800000e+00 : f32
    %869 = vector.broadcast %cst_294 : f32 to vector<8x128xf32>
    %870 = arith.subf %832, %869 : vector<8x128xf32>
    %cst_295 = arith.constant 2.200000e+00 : f32
    %871 = vector.broadcast %cst_295 : f32 to vector<8x128xf32>
    %872 = arith.subf %832, %871 : vector<8x128xf32>
    %cst_296 = arith.constant -2.200000e+00 : f32
    %873 = vector.broadcast %cst_296 : f32 to vector<8x128xf32>
    %874 = arith.cmpf oge, %832, %873 : vector<8x128xf32>
    %875 = arith.extui %874 : vector<8x128xi1> to vector<8x128xi32>
    %876 = arith.sitofp %875 : vector<8x128xi32> to vector<8x128xf32>
    %cst_297 = arith.constant -1.800000e+00 : f32
    %877 = vector.broadcast %cst_297 : f32 to vector<8x128xf32>
    %878 = arith.cmpf oge, %832, %877 : vector<8x128xf32>
    %879 = arith.extui %878 : vector<8x128xi1> to vector<8x128xi32>
    %880 = arith.sitofp %879 : vector<8x128xi32> to vector<8x128xf32>
    %881 = arith.subf %876, %880 : vector<8x128xf32>
    %cst_298 = arith.constant -1.400000e+00 : f32
    %882 = vector.broadcast %cst_298 : f32 to vector<8x128xf32>
    %883 = arith.cmpf oge, %832, %882 : vector<8x128xf32>
    %884 = arith.extui %883 : vector<8x128xi1> to vector<8x128xi32>
    %885 = arith.sitofp %884 : vector<8x128xi32> to vector<8x128xf32>
    %886 = arith.subf %880, %885 : vector<8x128xf32>
    %cst_299 = arith.constant -1.000000e+00 : f32
    %887 = vector.broadcast %cst_299 : f32 to vector<8x128xf32>
    %888 = arith.cmpf oge, %832, %887 : vector<8x128xf32>
    %889 = arith.extui %888 : vector<8x128xi1> to vector<8x128xi32>
    %890 = arith.sitofp %889 : vector<8x128xi32> to vector<8x128xf32>
    %891 = arith.subf %885, %890 : vector<8x128xf32>
    %cst_300 = arith.constant -6.000000e-01 : f32
    %892 = vector.broadcast %cst_300 : f32 to vector<8x128xf32>
    %893 = arith.cmpf oge, %832, %892 : vector<8x128xf32>
    %894 = arith.extui %893 : vector<8x128xi1> to vector<8x128xi32>
    %895 = arith.sitofp %894 : vector<8x128xi32> to vector<8x128xf32>
    %896 = arith.subf %890, %895 : vector<8x128xf32>
    %cst_301 = arith.constant -0.200000018 : f32
    %897 = vector.broadcast %cst_301 : f32 to vector<8x128xf32>
    %898 = arith.cmpf oge, %832, %897 : vector<8x128xf32>
    %899 = arith.extui %898 : vector<8x128xi1> to vector<8x128xi32>
    %900 = arith.sitofp %899 : vector<8x128xi32> to vector<8x128xf32>
    %901 = arith.subf %895, %900 : vector<8x128xf32>
    %cst_302 = arith.constant 0.200000033 : f32
    %902 = vector.broadcast %cst_302 : f32 to vector<8x128xf32>
    %903 = arith.cmpf oge, %832, %902 : vector<8x128xf32>
    %904 = arith.extui %903 : vector<8x128xi1> to vector<8x128xi32>
    %905 = arith.sitofp %904 : vector<8x128xi32> to vector<8x128xf32>
    %906 = arith.subf %900, %905 : vector<8x128xf32>
    %cst_303 = arith.constant 6.000000e-01 : f32
    %907 = vector.broadcast %cst_303 : f32 to vector<8x128xf32>
    %908 = arith.cmpf oge, %832, %907 : vector<8x128xf32>
    %909 = arith.extui %908 : vector<8x128xi1> to vector<8x128xi32>
    %910 = arith.sitofp %909 : vector<8x128xi32> to vector<8x128xf32>
    %911 = arith.subf %905, %910 : vector<8x128xf32>
    %cst_304 = arith.constant 1.000000e+00 : f32
    %912 = vector.broadcast %cst_304 : f32 to vector<8x128xf32>
    %913 = arith.cmpf oge, %832, %912 : vector<8x128xf32>
    %914 = arith.extui %913 : vector<8x128xi1> to vector<8x128xi32>
    %915 = arith.sitofp %914 : vector<8x128xi32> to vector<8x128xf32>
    %916 = arith.subf %910, %915 : vector<8x128xf32>
    %cst_305 = arith.constant 1.400000e+00 : f32
    %917 = vector.broadcast %cst_305 : f32 to vector<8x128xf32>
    %918 = arith.cmpf oge, %832, %917 : vector<8x128xf32>
    %919 = arith.extui %918 : vector<8x128xi1> to vector<8x128xi32>
    %920 = arith.sitofp %919 : vector<8x128xi32> to vector<8x128xf32>
    %921 = arith.subf %915, %920 : vector<8x128xf32>
    %cst_306 = arith.constant 1.800000e+00 : f32
    %922 = vector.broadcast %cst_306 : f32 to vector<8x128xf32>
    %923 = arith.cmpf oge, %832, %922 : vector<8x128xf32>
    %924 = arith.extui %923 : vector<8x128xi1> to vector<8x128xi32>
    %925 = arith.sitofp %924 : vector<8x128xi32> to vector<8x128xf32>
    %926 = arith.subf %920, %925 : vector<8x128xf32>
    %cst_307 = arith.constant 2.200000e+00 : f32
    %927 = vector.broadcast %cst_307 : f32 to vector<8x128xf32>
    %928 = arith.cmpf oge, %832, %927 : vector<8x128xf32>
    %929 = arith.extui %928 : vector<8x128xi1> to vector<8x128xi32>
    %930 = arith.sitofp %929 : vector<8x128xi32> to vector<8x128xf32>
    %931 = arith.subf %925, %930 : vector<8x128xf32>
    %cst_308 = arith.constant 2.49999952 : f32
    %932 = vector.broadcast %cst_308 : f32 to vector<8x128xf32>
    %933 = arith.mulf %850, %932 : vector<8x128xf32>
    %934 = arith.mulf %933, %881 : vector<8x128xf32>
    %cst_309 = arith.constant 2.50000024 : f32
    %935 = vector.broadcast %cst_309 : f32 to vector<8x128xf32>
    %936 = arith.mulf %854, %935 : vector<8x128xf32>
    %937 = arith.mulf %936, %886 : vector<8x128xf32>
    %938 = arith.subf %934, %937 : vector<8x128xf32>
    %939 = arith.mulf %852, %886 : vector<8x128xf32>
    %940 = arith.mulf %856, %891 : vector<8x128xf32>
    %941 = arith.subf %939, %940 : vector<8x128xf32>
    %cst_310 = arith.constant 2.50000024 : f32
    %942 = vector.broadcast %cst_310 : f32 to vector<8x128xf32>
    %943 = arith.mulf %942, %941 : vector<8x128xf32>
    %944 = arith.mulf %854, %891 : vector<8x128xf32>
    %945 = arith.mulf %858, %896 : vector<8x128xf32>
    %946 = arith.subf %944, %945 : vector<8x128xf32>
    %cst_311 = arith.constant 2.50000024 : f32
    %947 = vector.broadcast %cst_311 : f32 to vector<8x128xf32>
    %948 = arith.mulf %947, %946 : vector<8x128xf32>
    %cst_312 = arith.constant 2.50000024 : f32
    %949 = vector.broadcast %cst_312 : f32 to vector<8x128xf32>
    %950 = arith.mulf %856, %949 : vector<8x128xf32>
    %951 = arith.mulf %950, %896 : vector<8x128xf32>
    %cst_313 = arith.constant 2.500000e+00 : f32
    %952 = vector.broadcast %cst_313 : f32 to vector<8x128xf32>
    %953 = arith.mulf %860, %952 : vector<8x128xf32>
    %954 = arith.mulf %953, %901 : vector<8x128xf32>
    %955 = arith.subf %951, %954 : vector<8x128xf32>
    %cst_314 = arith.constant 2.500000e+00 : f32
    %956 = vector.broadcast %cst_314 : f32 to vector<8x128xf32>
    %957 = arith.mulf %858, %956 : vector<8x128xf32>
    %958 = arith.mulf %957, %901 : vector<8x128xf32>
    %cst_315 = arith.constant 2.49999976 : f32
    %959 = vector.broadcast %cst_315 : f32 to vector<8x128xf32>
    %960 = arith.mulf %862, %959 : vector<8x128xf32>
    %961 = arith.mulf %960, %906 : vector<8x128xf32>
    %962 = arith.subf %958, %961 : vector<8x128xf32>
    %cst_316 = arith.constant 2.49999976 : f32
    %963 = vector.broadcast %cst_316 : f32 to vector<8x128xf32>
    %964 = arith.mulf %860, %963 : vector<8x128xf32>
    %965 = arith.mulf %964, %906 : vector<8x128xf32>
    %cst_317 = arith.constant 2.50000024 : f32
    %966 = vector.broadcast %cst_317 : f32 to vector<8x128xf32>
    %967 = arith.mulf %864, %966 : vector<8x128xf32>
    %968 = arith.mulf %967, %911 : vector<8x128xf32>
    %969 = arith.subf %965, %968 : vector<8x128xf32>
    %970 = arith.mulf %862, %911 : vector<8x128xf32>
    %971 = arith.mulf %866, %916 : vector<8x128xf32>
    %972 = arith.subf %970, %971 : vector<8x128xf32>
    %cst_318 = arith.constant 2.50000024 : f32
    %973 = vector.broadcast %cst_318 : f32 to vector<8x128xf32>
    %974 = arith.mulf %973, %972 : vector<8x128xf32>
    %975 = arith.mulf %864, %916 : vector<8x128xf32>
    %976 = arith.mulf %868, %921 : vector<8x128xf32>
    %977 = arith.subf %975, %976 : vector<8x128xf32>
    %cst_319 = arith.constant 2.50000024 : f32
    %978 = vector.broadcast %cst_319 : f32 to vector<8x128xf32>
    %979 = arith.mulf %978, %977 : vector<8x128xf32>
    %980 = arith.mulf %866, %921 : vector<8x128xf32>
    %981 = arith.mulf %870, %926 : vector<8x128xf32>
    %982 = arith.subf %980, %981 : vector<8x128xf32>
    %cst_320 = arith.constant 2.50000024 : f32
    %983 = vector.broadcast %cst_320 : f32 to vector<8x128xf32>
    %984 = arith.mulf %983, %982 : vector<8x128xf32>
    %cst_321 = arith.constant 2.50000024 : f32
    %985 = vector.broadcast %cst_321 : f32 to vector<8x128xf32>
    %986 = arith.mulf %868, %985 : vector<8x128xf32>
    %987 = arith.mulf %986, %926 : vector<8x128xf32>
    %cst_322 = arith.constant 2.49999952 : f32
    %988 = vector.broadcast %cst_322 : f32 to vector<8x128xf32>
    %989 = arith.mulf %872, %988 : vector<8x128xf32>
    %990 = arith.mulf %989, %931 : vector<8x128xf32>
    %991 = arith.subf %987, %990 : vector<8x128xf32>
    %cst_323 = arith.constant 1.24999988 : f32
    %992 = vector.broadcast %cst_323 : f32 to vector<8x128xf32>
    %993 = arith.mulf %850, %992 : vector<8x128xf32>
    %994 = arith.mulf %993, %938 : vector<8x128xf32>
    %cst_324 = arith.constant 1.25000012 : f32
    %995 = vector.broadcast %cst_324 : f32 to vector<8x128xf32>
    %996 = arith.mulf %856, %995 : vector<8x128xf32>
    %997 = arith.mulf %996, %943 : vector<8x128xf32>
    %998 = arith.subf %994, %997 : vector<8x128xf32>
    %999 = arith.mulf %852, %943 : vector<8x128xf32>
    %1000 = arith.mulf %858, %948 : vector<8x128xf32>
    %1001 = arith.subf %999, %1000 : vector<8x128xf32>
    %cst_325 = arith.constant 1.25000012 : f32
    %1002 = vector.broadcast %cst_325 : f32 to vector<8x128xf32>
    %1003 = arith.mulf %1002, %1001 : vector<8x128xf32>
    %1004 = arith.mulf %854, %948 : vector<8x128xf32>
    %1005 = arith.mulf %860, %955 : vector<8x128xf32>
    %1006 = arith.subf %1004, %1005 : vector<8x128xf32>
    %cst_326 = arith.constant 1.25000012 : f32
    %1007 = vector.broadcast %cst_326 : f32 to vector<8x128xf32>
    %1008 = arith.mulf %1007, %1006 : vector<8x128xf32>
    %cst_327 = arith.constant 1.25000012 : f32
    %1009 = vector.broadcast %cst_327 : f32 to vector<8x128xf32>
    %1010 = arith.mulf %856, %1009 : vector<8x128xf32>
    %1011 = arith.mulf %1010, %955 : vector<8x128xf32>
    %cst_328 = arith.constant 1.24999988 : f32
    %1012 = vector.broadcast %cst_328 : f32 to vector<8x128xf32>
    %1013 = arith.mulf %862, %1012 : vector<8x128xf32>
    %1014 = arith.mulf %1013, %962 : vector<8x128xf32>
    %1015 = arith.subf %1011, %1014 : vector<8x128xf32>
    %1016 = arith.mulf %858, %962 : vector<8x128xf32>
    %1017 = arith.mulf %864, %969 : vector<8x128xf32>
    %1018 = arith.subf %1016, %1017 : vector<8x128xf32>
    %cst_329 = arith.constant 1.24999988 : f32
    %1019 = vector.broadcast %cst_329 : f32 to vector<8x128xf32>
    %1020 = arith.mulf %1019, %1018 : vector<8x128xf32>
    %cst_330 = arith.constant 1.24999988 : f32
    %1021 = vector.broadcast %cst_330 : f32 to vector<8x128xf32>
    %1022 = arith.mulf %860, %1021 : vector<8x128xf32>
    %1023 = arith.mulf %1022, %969 : vector<8x128xf32>
    %cst_331 = arith.constant 1.25000012 : f32
    %1024 = vector.broadcast %cst_331 : f32 to vector<8x128xf32>
    %1025 = arith.mulf %866, %1024 : vector<8x128xf32>
    %1026 = arith.mulf %1025, %974 : vector<8x128xf32>
    %1027 = arith.subf %1023, %1026 : vector<8x128xf32>
    %1028 = arith.mulf %862, %974 : vector<8x128xf32>
    %1029 = arith.mulf %868, %979 : vector<8x128xf32>
    %1030 = arith.subf %1028, %1029 : vector<8x128xf32>
    %cst_332 = arith.constant 1.25000012 : f32
    %1031 = vector.broadcast %cst_332 : f32 to vector<8x128xf32>
    %1032 = arith.mulf %1031, %1030 : vector<8x128xf32>
    %1033 = arith.mulf %864, %979 : vector<8x128xf32>
    %1034 = arith.mulf %870, %984 : vector<8x128xf32>
    %1035 = arith.subf %1033, %1034 : vector<8x128xf32>
    %cst_333 = arith.constant 1.25000012 : f32
    %1036 = vector.broadcast %cst_333 : f32 to vector<8x128xf32>
    %1037 = arith.mulf %1036, %1035 : vector<8x128xf32>
    %cst_334 = arith.constant 1.25000012 : f32
    %1038 = vector.broadcast %cst_334 : f32 to vector<8x128xf32>
    %1039 = arith.mulf %866, %1038 : vector<8x128xf32>
    %1040 = arith.mulf %1039, %984 : vector<8x128xf32>
    %cst_335 = arith.constant 1.24999988 : f32
    %1041 = vector.broadcast %cst_335 : f32 to vector<8x128xf32>
    %1042 = arith.mulf %872, %1041 : vector<8x128xf32>
    %1043 = arith.mulf %1042, %991 : vector<8x128xf32>
    %1044 = arith.subf %1040, %1043 : vector<8x128xf32>
    %cst_336 = arith.constant 0.833333313 : f32
    %1045 = vector.broadcast %cst_336 : f32 to vector<8x128xf32>
    %1046 = arith.mulf %850, %1045 : vector<8x128xf32>
    %1047 = arith.mulf %1046, %998 : vector<8x128xf32>
    %cst_337 = arith.constant 0.833333373 : f32
    %1048 = vector.broadcast %cst_337 : f32 to vector<8x128xf32>
    %1049 = arith.mulf %858, %1048 : vector<8x128xf32>
    %1050 = arith.mulf %1049, %1003 : vector<8x128xf32>
    %1051 = arith.subf %1047, %1050 : vector<8x128xf32>
    %1052 = arith.mulf %852, %1003 : vector<8x128xf32>
    %1053 = arith.mulf %860, %1008 : vector<8x128xf32>
    %1054 = arith.subf %1052, %1053 : vector<8x128xf32>
    %cst_338 = arith.constant 0.833333373 : f32
    %1055 = vector.broadcast %cst_338 : f32 to vector<8x128xf32>
    %1056 = arith.mulf %1055, %1054 : vector<8x128xf32>
    %cst_339 = arith.constant 0.833333373 : f32
    %1057 = vector.broadcast %cst_339 : f32 to vector<8x128xf32>
    %1058 = arith.mulf %854, %1057 : vector<8x128xf32>
    %1059 = arith.mulf %1058, %1008 : vector<8x128xf32>
    %cst_340 = arith.constant 0.833333313 : f32
    %1060 = vector.broadcast %cst_340 : f32 to vector<8x128xf32>
    %1061 = arith.mulf %862, %1060 : vector<8x128xf32>
    %1062 = arith.mulf %1061, %1015 : vector<8x128xf32>
    %1063 = arith.subf %1059, %1062 : vector<8x128xf32>
    %1064 = arith.mulf %856, %1015 : vector<8x128xf32>
    %1065 = arith.mulf %864, %1020 : vector<8x128xf32>
    %1066 = arith.subf %1064, %1065 : vector<8x128xf32>
    %cst_341 = arith.constant 0.833333313 : f32
    %1067 = vector.broadcast %cst_341 : f32 to vector<8x128xf32>
    %1068 = arith.mulf %1067, %1066 : vector<8x128xf32>
    %1069 = arith.mulf %858, %1020 : vector<8x128xf32>
    %1070 = arith.mulf %866, %1027 : vector<8x128xf32>
    %1071 = arith.subf %1069, %1070 : vector<8x128xf32>
    %cst_342 = arith.constant 0.833333313 : f32
    %1072 = vector.broadcast %cst_342 : f32 to vector<8x128xf32>
    %1073 = arith.mulf %1072, %1071 : vector<8x128xf32>
    %cst_343 = arith.constant 0.833333313 : f32
    %1074 = vector.broadcast %cst_343 : f32 to vector<8x128xf32>
    %1075 = arith.mulf %860, %1074 : vector<8x128xf32>
    %1076 = arith.mulf %1075, %1027 : vector<8x128xf32>
    %cst_344 = arith.constant 0.833333373 : f32
    %1077 = vector.broadcast %cst_344 : f32 to vector<8x128xf32>
    %1078 = arith.mulf %868, %1077 : vector<8x128xf32>
    %1079 = arith.mulf %1078, %1032 : vector<8x128xf32>
    %1080 = arith.subf %1076, %1079 : vector<8x128xf32>
    %1081 = arith.mulf %862, %1032 : vector<8x128xf32>
    %1082 = arith.mulf %870, %1037 : vector<8x128xf32>
    %1083 = arith.subf %1081, %1082 : vector<8x128xf32>
    %cst_345 = arith.constant 0.833333373 : f32
    %1084 = vector.broadcast %cst_345 : f32 to vector<8x128xf32>
    %1085 = arith.mulf %1084, %1083 : vector<8x128xf32>
    %cst_346 = arith.constant 0.833333373 : f32
    %1086 = vector.broadcast %cst_346 : f32 to vector<8x128xf32>
    %1087 = arith.mulf %864, %1086 : vector<8x128xf32>
    %1088 = arith.mulf %1087, %1037 : vector<8x128xf32>
    %cst_347 = arith.constant 0.833333313 : f32
    %1089 = vector.broadcast %cst_347 : f32 to vector<8x128xf32>
    %1090 = arith.mulf %872, %1089 : vector<8x128xf32>
    %1091 = arith.mulf %1090, %1044 : vector<8x128xf32>
    %1092 = arith.subf %1088, %1091 : vector<8x128xf32>
    %1093 = arith.mulf %834, %1051 : vector<8x128xf32>
    %1094 = arith.mulf %836, %1056 : vector<8x128xf32>
    %1095 = arith.addf %1093, %1094 : vector<8x128xf32>
    %1096 = arith.mulf %838, %1063 : vector<8x128xf32>
    %1097 = arith.addf %1095, %1096 : vector<8x128xf32>
    %1098 = arith.mulf %840, %1068 : vector<8x128xf32>
    %1099 = arith.addf %1097, %1098 : vector<8x128xf32>
    %1100 = arith.mulf %842, %1073 : vector<8x128xf32>
    %1101 = arith.addf %1099, %1100 : vector<8x128xf32>
    %1102 = arith.mulf %844, %1080 : vector<8x128xf32>
    %1103 = arith.addf %1101, %1102 : vector<8x128xf32>
    %1104 = arith.mulf %846, %1085 : vector<8x128xf32>
    %1105 = arith.addf %1103, %1104 : vector<8x128xf32>
    %1106 = arith.mulf %848, %1092 : vector<8x128xf32>
    %1107 = arith.addf %1105, %1106 : vector<8x128xf32>
    %1108 = vector.extract_strided_slice %279 {offsets = [24, 0], sizes = [8, 128], strides = [1, 1]} : vector<32x128xf32> to vector<8x128xf32>
    %c0_348 = arith.constant 0 : index
    %c24 = arith.constant 24 : index
    %c0_349 = arith.constant 0 : index
    %1109 = vector.load %arg5[%c0_348, %c24, %c0_349] : memref<8x32x128xf32, #tpu.memory_space<vmem>>, vector<1x8x128xf32>
    %1110 = vector.shape_cast %1109 : vector<1x8x128xf32> to vector<8x128xf32>
    %c1_350 = arith.constant 1 : index
    %c24_351 = arith.constant 24 : index
    %c0_352 = arith.constant 0 : index
    %1111 = vector.load %arg5[%c1_350, %c24_351, %c0_352] : memref<8x32x128xf32, #tpu.memory_space<vmem>>, vector<1x8x128xf32>
    %1112 = vector.shape_cast %1111 : vector<1x8x128xf32> to vector<8x128xf32>
    %c2_353 = arith.constant 2 : index
    %c24_354 = arith.constant 24 : index
    %c0_355 = arith.constant 0 : index
    %1113 = vector.load %arg5[%c2_353, %c24_354, %c0_355] : memref<8x32x128xf32, #tpu.memory_space<vmem>>, vector<1x8x128xf32>
    %1114 = vector.shape_cast %1113 : vector<1x8x128xf32> to vector<8x128xf32>
    %c3_356 = arith.constant 3 : index
    %c24_357 = arith.constant 24 : index
    %c0_358 = arith.constant 0 : index
    %1115 = vector.load %arg5[%c3_356, %c24_357, %c0_358] : memref<8x32x128xf32, #tpu.memory_space<vmem>>, vector<1x8x128xf32>
    %1116 = vector.shape_cast %1115 : vector<1x8x128xf32> to vector<8x128xf32>
    %c4_359 = arith.constant 4 : index
    %c24_360 = arith.constant 24 : index
    %c0_361 = arith.constant 0 : index
    %1117 = vector.load %arg5[%c4_359, %c24_360, %c0_361] : memref<8x32x128xf32, #tpu.memory_space<vmem>>, vector<1x8x128xf32>
    %1118 = vector.shape_cast %1117 : vector<1x8x128xf32> to vector<8x128xf32>
    %c5_362 = arith.constant 5 : index
    %c24_363 = arith.constant 24 : index
    %c0_364 = arith.constant 0 : index
    %1119 = vector.load %arg5[%c5_362, %c24_363, %c0_364] : memref<8x32x128xf32, #tpu.memory_space<vmem>>, vector<1x8x128xf32>
    %1120 = vector.shape_cast %1119 : vector<1x8x128xf32> to vector<8x128xf32>
    %c6_365 = arith.constant 6 : index
    %c24_366 = arith.constant 24 : index
    %c0_367 = arith.constant 0 : index
    %1121 = vector.load %arg5[%c6_365, %c24_366, %c0_367] : memref<8x32x128xf32, #tpu.memory_space<vmem>>, vector<1x8x128xf32>
    %1122 = vector.shape_cast %1121 : vector<1x8x128xf32> to vector<8x128xf32>
    %c7_368 = arith.constant 7 : index
    %c24_369 = arith.constant 24 : index
    %c0_370 = arith.constant 0 : index
    %1123 = vector.load %arg5[%c7_368, %c24_369, %c0_370] : memref<8x32x128xf32, #tpu.memory_space<vmem>>, vector<1x8x128xf32>
    %1124 = vector.shape_cast %1123 : vector<1x8x128xf32> to vector<8x128xf32>
    %cst_371 = arith.constant -2.200000e+00 : f32
    %1125 = vector.broadcast %cst_371 : f32 to vector<8x128xf32>
    %1126 = arith.subf %1108, %1125 : vector<8x128xf32>
    %cst_372 = arith.constant -1.800000e+00 : f32
    %1127 = vector.broadcast %cst_372 : f32 to vector<8x128xf32>
    %1128 = arith.subf %1108, %1127 : vector<8x128xf32>
    %cst_373 = arith.constant -1.400000e+00 : f32
    %1129 = vector.broadcast %cst_373 : f32 to vector<8x128xf32>
    %1130 = arith.subf %1108, %1129 : vector<8x128xf32>
    %cst_374 = arith.constant -1.000000e+00 : f32
    %1131 = vector.broadcast %cst_374 : f32 to vector<8x128xf32>
    %1132 = arith.subf %1108, %1131 : vector<8x128xf32>
    %cst_375 = arith.constant -6.000000e-01 : f32
    %1133 = vector.broadcast %cst_375 : f32 to vector<8x128xf32>
    %1134 = arith.subf %1108, %1133 : vector<8x128xf32>
    %cst_376 = arith.constant -0.200000018 : f32
    %1135 = vector.broadcast %cst_376 : f32 to vector<8x128xf32>
    %1136 = arith.subf %1108, %1135 : vector<8x128xf32>
    %cst_377 = arith.constant 0.200000033 : f32
    %1137 = vector.broadcast %cst_377 : f32 to vector<8x128xf32>
    %1138 = arith.subf %1108, %1137 : vector<8x128xf32>
    %cst_378 = arith.constant 6.000000e-01 : f32
    %1139 = vector.broadcast %cst_378 : f32 to vector<8x128xf32>
    %1140 = arith.subf %1108, %1139 : vector<8x128xf32>
    %cst_379 = arith.constant 1.000000e+00 : f32
    %1141 = vector.broadcast %cst_379 : f32 to vector<8x128xf32>
    %1142 = arith.subf %1108, %1141 : vector<8x128xf32>
    %cst_380 = arith.constant 1.400000e+00 : f32
    %1143 = vector.broadcast %cst_380 : f32 to vector<8x128xf32>
    %1144 = arith.subf %1108, %1143 : vector<8x128xf32>
    %cst_381 = arith.constant 1.800000e+00 : f32
    %1145 = vector.broadcast %cst_381 : f32 to vector<8x128xf32>
    %1146 = arith.subf %1108, %1145 : vector<8x128xf32>
    %cst_382 = arith.constant 2.200000e+00 : f32
    %1147 = vector.broadcast %cst_382 : f32 to vector<8x128xf32>
    %1148 = arith.subf %1108, %1147 : vector<8x128xf32>
    %cst_383 = arith.constant -2.200000e+00 : f32
    %1149 = vector.broadcast %cst_383 : f32 to vector<8x128xf32>
    %1150 = arith.cmpf oge, %1108, %1149 : vector<8x128xf32>
    %1151 = arith.extui %1150 : vector<8x128xi1> to vector<8x128xi32>
    %1152 = arith.sitofp %1151 : vector<8x128xi32> to vector<8x128xf32>
    %cst_384 = arith.constant -1.800000e+00 : f32
    %1153 = vector.broadcast %cst_384 : f32 to vector<8x128xf32>
    %1154 = arith.cmpf oge, %1108, %1153 : vector<8x128xf32>
    %1155 = arith.extui %1154 : vector<8x128xi1> to vector<8x128xi32>
    %1156 = arith.sitofp %1155 : vector<8x128xi32> to vector<8x128xf32>
    %1157 = arith.subf %1152, %1156 : vector<8x128xf32>
    %cst_385 = arith.constant -1.400000e+00 : f32
    %1158 = vector.broadcast %cst_385 : f32 to vector<8x128xf32>
    %1159 = arith.cmpf oge, %1108, %1158 : vector<8x128xf32>
    %1160 = arith.extui %1159 : vector<8x128xi1> to vector<8x128xi32>
    %1161 = arith.sitofp %1160 : vector<8x128xi32> to vector<8x128xf32>
    %1162 = arith.subf %1156, %1161 : vector<8x128xf32>
    %cst_386 = arith.constant -1.000000e+00 : f32
    %1163 = vector.broadcast %cst_386 : f32 to vector<8x128xf32>
    %1164 = arith.cmpf oge, %1108, %1163 : vector<8x128xf32>
    %1165 = arith.extui %1164 : vector<8x128xi1> to vector<8x128xi32>
    %1166 = arith.sitofp %1165 : vector<8x128xi32> to vector<8x128xf32>
    %1167 = arith.subf %1161, %1166 : vector<8x128xf32>
    %cst_387 = arith.constant -6.000000e-01 : f32
    %1168 = vector.broadcast %cst_387 : f32 to vector<8x128xf32>
    %1169 = arith.cmpf oge, %1108, %1168 : vector<8x128xf32>
    %1170 = arith.extui %1169 : vector<8x128xi1> to vector<8x128xi32>
    %1171 = arith.sitofp %1170 : vector<8x128xi32> to vector<8x128xf32>
    %1172 = arith.subf %1166, %1171 : vector<8x128xf32>
    %cst_388 = arith.constant -0.200000018 : f32
    %1173 = vector.broadcast %cst_388 : f32 to vector<8x128xf32>
    %1174 = arith.cmpf oge, %1108, %1173 : vector<8x128xf32>
    %1175 = arith.extui %1174 : vector<8x128xi1> to vector<8x128xi32>
    %1176 = arith.sitofp %1175 : vector<8x128xi32> to vector<8x128xf32>
    %1177 = arith.subf %1171, %1176 : vector<8x128xf32>
    %cst_389 = arith.constant 0.200000033 : f32
    %1178 = vector.broadcast %cst_389 : f32 to vector<8x128xf32>
    %1179 = arith.cmpf oge, %1108, %1178 : vector<8x128xf32>
    %1180 = arith.extui %1179 : vector<8x128xi1> to vector<8x128xi32>
    %1181 = arith.sitofp %1180 : vector<8x128xi32> to vector<8x128xf32>
    %1182 = arith.subf %1176, %1181 : vector<8x128xf32>
    %cst_390 = arith.constant 6.000000e-01 : f32
    %1183 = vector.broadcast %cst_390 : f32 to vector<8x128xf32>
    %1184 = arith.cmpf oge, %1108, %1183 : vector<8x128xf32>
    %1185 = arith.extui %1184 : vector<8x128xi1> to vector<8x128xi32>
    %1186 = arith.sitofp %1185 : vector<8x128xi32> to vector<8x128xf32>
    %1187 = arith.subf %1181, %1186 : vector<8x128xf32>
    %cst_391 = arith.constant 1.000000e+00 : f32
    %1188 = vector.broadcast %cst_391 : f32 to vector<8x128xf32>
    %1189 = arith.cmpf oge, %1108, %1188 : vector<8x128xf32>
    %1190 = arith.extui %1189 : vector<8x128xi1> to vector<8x128xi32>
    %1191 = arith.sitofp %1190 : vector<8x128xi32> to vector<8x128xf32>
    %1192 = arith.subf %1186, %1191 : vector<8x128xf32>
    %cst_392 = arith.constant 1.400000e+00 : f32
    %1193 = vector.broadcast %cst_392 : f32 to vector<8x128xf32>
    %1194 = arith.cmpf oge, %1108, %1193 : vector<8x128xf32>
    %1195 = arith.extui %1194 : vector<8x128xi1> to vector<8x128xi32>
    %1196 = arith.sitofp %1195 : vector<8x128xi32> to vector<8x128xf32>
    %1197 = arith.subf %1191, %1196 : vector<8x128xf32>
    %cst_393 = arith.constant 1.800000e+00 : f32
    %1198 = vector.broadcast %cst_393 : f32 to vector<8x128xf32>
    %1199 = arith.cmpf oge, %1108, %1198 : vector<8x128xf32>
    %1200 = arith.extui %1199 : vector<8x128xi1> to vector<8x128xi32>
    %1201 = arith.sitofp %1200 : vector<8x128xi32> to vector<8x128xf32>
    %1202 = arith.subf %1196, %1201 : vector<8x128xf32>
    %cst_394 = arith.constant 2.200000e+00 : f32
    %1203 = vector.broadcast %cst_394 : f32 to vector<8x128xf32>
    %1204 = arith.cmpf oge, %1108, %1203 : vector<8x128xf32>
    %1205 = arith.extui %1204 : vector<8x128xi1> to vector<8x128xi32>
    %1206 = arith.sitofp %1205 : vector<8x128xi32> to vector<8x128xf32>
    %1207 = arith.subf %1201, %1206 : vector<8x128xf32>
    %cst_395 = arith.constant 2.49999952 : f32
    %1208 = vector.broadcast %cst_395 : f32 to vector<8x128xf32>
    %1209 = arith.mulf %1126, %1208 : vector<8x128xf32>
    %1210 = arith.mulf %1209, %1157 : vector<8x128xf32>
    %cst_396 = arith.constant 2.50000024 : f32
    %1211 = vector.broadcast %cst_396 : f32 to vector<8x128xf32>
    %1212 = arith.mulf %1130, %1211 : vector<8x128xf32>
    %1213 = arith.mulf %1212, %1162 : vector<8x128xf32>
    %1214 = arith.subf %1210, %1213 : vector<8x128xf32>
    %1215 = arith.mulf %1128, %1162 : vector<8x128xf32>
    %1216 = arith.mulf %1132, %1167 : vector<8x128xf32>
    %1217 = arith.subf %1215, %1216 : vector<8x128xf32>
    %cst_397 = arith.constant 2.50000024 : f32
    %1218 = vector.broadcast %cst_397 : f32 to vector<8x128xf32>
    %1219 = arith.mulf %1218, %1217 : vector<8x128xf32>
    %1220 = arith.mulf %1130, %1167 : vector<8x128xf32>
    %1221 = arith.mulf %1134, %1172 : vector<8x128xf32>
    %1222 = arith.subf %1220, %1221 : vector<8x128xf32>
    %cst_398 = arith.constant 2.50000024 : f32
    %1223 = vector.broadcast %cst_398 : f32 to vector<8x128xf32>
    %1224 = arith.mulf %1223, %1222 : vector<8x128xf32>
    %cst_399 = arith.constant 2.50000024 : f32
    %1225 = vector.broadcast %cst_399 : f32 to vector<8x128xf32>
    %1226 = arith.mulf %1132, %1225 : vector<8x128xf32>
    %1227 = arith.mulf %1226, %1172 : vector<8x128xf32>
    %cst_400 = arith.constant 2.500000e+00 : f32
    %1228 = vector.broadcast %cst_400 : f32 to vector<8x128xf32>
    %1229 = arith.mulf %1136, %1228 : vector<8x128xf32>
    %1230 = arith.mulf %1229, %1177 : vector<8x128xf32>
    %1231 = arith.subf %1227, %1230 : vector<8x128xf32>
    %cst_401 = arith.constant 2.500000e+00 : f32
    %1232 = vector.broadcast %cst_401 : f32 to vector<8x128xf32>
    %1233 = arith.mulf %1134, %1232 : vector<8x128xf32>
    %1234 = arith.mulf %1233, %1177 : vector<8x128xf32>
    %cst_402 = arith.constant 2.49999976 : f32
    %1235 = vector.broadcast %cst_402 : f32 to vector<8x128xf32>
    %1236 = arith.mulf %1138, %1235 : vector<8x128xf32>
    %1237 = arith.mulf %1236, %1182 : vector<8x128xf32>
    %1238 = arith.subf %1234, %1237 : vector<8x128xf32>
    %cst_403 = arith.constant 2.49999976 : f32
    %1239 = vector.broadcast %cst_403 : f32 to vector<8x128xf32>
    %1240 = arith.mulf %1136, %1239 : vector<8x128xf32>
    %1241 = arith.mulf %1240, %1182 : vector<8x128xf32>
    %cst_404 = arith.constant 2.50000024 : f32
    %1242 = vector.broadcast %cst_404 : f32 to vector<8x128xf32>
    %1243 = arith.mulf %1140, %1242 : vector<8x128xf32>
    %1244 = arith.mulf %1243, %1187 : vector<8x128xf32>
    %1245 = arith.subf %1241, %1244 : vector<8x128xf32>
    %1246 = arith.mulf %1138, %1187 : vector<8x128xf32>
    %1247 = arith.mulf %1142, %1192 : vector<8x128xf32>
    %1248 = arith.subf %1246, %1247 : vector<8x128xf32>
    %cst_405 = arith.constant 2.50000024 : f32
    %1249 = vector.broadcast %cst_405 : f32 to vector<8x128xf32>
    %1250 = arith.mulf %1249, %1248 : vector<8x128xf32>
    %1251 = arith.mulf %1140, %1192 : vector<8x128xf32>
    %1252 = arith.mulf %1144, %1197 : vector<8x128xf32>
    %1253 = arith.subf %1251, %1252 : vector<8x128xf32>
    %cst_406 = arith.constant 2.50000024 : f32
    %1254 = vector.broadcast %cst_406 : f32 to vector<8x128xf32>
    %1255 = arith.mulf %1254, %1253 : vector<8x128xf32>
    %1256 = arith.mulf %1142, %1197 : vector<8x128xf32>
    %1257 = arith.mulf %1146, %1202 : vector<8x128xf32>
    %1258 = arith.subf %1256, %1257 : vector<8x128xf32>
    %cst_407 = arith.constant 2.50000024 : f32
    %1259 = vector.broadcast %cst_407 : f32 to vector<8x128xf32>
    %1260 = arith.mulf %1259, %1258 : vector<8x128xf32>
    %cst_408 = arith.constant 2.50000024 : f32
    %1261 = vector.broadcast %cst_408 : f32 to vector<8x128xf32>
    %1262 = arith.mulf %1144, %1261 : vector<8x128xf32>
    %1263 = arith.mulf %1262, %1202 : vector<8x128xf32>
    %cst_409 = arith.constant 2.49999952 : f32
    %1264 = vector.broadcast %cst_409 : f32 to vector<8x128xf32>
    %1265 = arith.mulf %1148, %1264 : vector<8x128xf32>
    %1266 = arith.mulf %1265, %1207 : vector<8x128xf32>
    %1267 = arith.subf %1263, %1266 : vector<8x128xf32>
    %cst_410 = arith.constant 1.24999988 : f32
    %1268 = vector.broadcast %cst_410 : f32 to vector<8x128xf32>
    %1269 = arith.mulf %1126, %1268 : vector<8x128xf32>
    %1270 = arith.mulf %1269, %1214 : vector<8x128xf32>
    %cst_411 = arith.constant 1.25000012 : f32
    %1271 = vector.broadcast %cst_411 : f32 to vector<8x128xf32>
    %1272 = arith.mulf %1132, %1271 : vector<8x128xf32>
    %1273 = arith.mulf %1272, %1219 : vector<8x128xf32>
    %1274 = arith.subf %1270, %1273 : vector<8x128xf32>
    %1275 = arith.mulf %1128, %1219 : vector<8x128xf32>
    %1276 = arith.mulf %1134, %1224 : vector<8x128xf32>
    %1277 = arith.subf %1275, %1276 : vector<8x128xf32>
    %cst_412 = arith.constant 1.25000012 : f32
    %1278 = vector.broadcast %cst_412 : f32 to vector<8x128xf32>
    %1279 = arith.mulf %1278, %1277 : vector<8x128xf32>
    %1280 = arith.mulf %1130, %1224 : vector<8x128xf32>
    %1281 = arith.mulf %1136, %1231 : vector<8x128xf32>
    %1282 = arith.subf %1280, %1281 : vector<8x128xf32>
    %cst_413 = arith.constant 1.25000012 : f32
    %1283 = vector.broadcast %cst_413 : f32 to vector<8x128xf32>
    %1284 = arith.mulf %1283, %1282 : vector<8x128xf32>
    %cst_414 = arith.constant 1.25000012 : f32
    %1285 = vector.broadcast %cst_414 : f32 to vector<8x128xf32>
    %1286 = arith.mulf %1132, %1285 : vector<8x128xf32>
    %1287 = arith.mulf %1286, %1231 : vector<8x128xf32>
    %cst_415 = arith.constant 1.24999988 : f32
    %1288 = vector.broadcast %cst_415 : f32 to vector<8x128xf32>
    %1289 = arith.mulf %1138, %1288 : vector<8x128xf32>
    %1290 = arith.mulf %1289, %1238 : vector<8x128xf32>
    %1291 = arith.subf %1287, %1290 : vector<8x128xf32>
    %1292 = arith.mulf %1134, %1238 : vector<8x128xf32>
    %1293 = arith.mulf %1140, %1245 : vector<8x128xf32>
    %1294 = arith.subf %1292, %1293 : vector<8x128xf32>
    %cst_416 = arith.constant 1.24999988 : f32
    %1295 = vector.broadcast %cst_416 : f32 to vector<8x128xf32>
    %1296 = arith.mulf %1295, %1294 : vector<8x128xf32>
    %cst_417 = arith.constant 1.24999988 : f32
    %1297 = vector.broadcast %cst_417 : f32 to vector<8x128xf32>
    %1298 = arith.mulf %1136, %1297 : vector<8x128xf32>
    %1299 = arith.mulf %1298, %1245 : vector<8x128xf32>
    %cst_418 = arith.constant 1.25000012 : f32
    %1300 = vector.broadcast %cst_418 : f32 to vector<8x128xf32>
    %1301 = arith.mulf %1142, %1300 : vector<8x128xf32>
    %1302 = arith.mulf %1301, %1250 : vector<8x128xf32>
    %1303 = arith.subf %1299, %1302 : vector<8x128xf32>
    %1304 = arith.mulf %1138, %1250 : vector<8x128xf32>
    %1305 = arith.mulf %1144, %1255 : vector<8x128xf32>
    %1306 = arith.subf %1304, %1305 : vector<8x128xf32>
    %cst_419 = arith.constant 1.25000012 : f32
    %1307 = vector.broadcast %cst_419 : f32 to vector<8x128xf32>
    %1308 = arith.mulf %1307, %1306 : vector<8x128xf32>
    %1309 = arith.mulf %1140, %1255 : vector<8x128xf32>
    %1310 = arith.mulf %1146, %1260 : vector<8x128xf32>
    %1311 = arith.subf %1309, %1310 : vector<8x128xf32>
    %cst_420 = arith.constant 1.25000012 : f32
    %1312 = vector.broadcast %cst_420 : f32 to vector<8x128xf32>
    %1313 = arith.mulf %1312, %1311 : vector<8x128xf32>
    %cst_421 = arith.constant 1.25000012 : f32
    %1314 = vector.broadcast %cst_421 : f32 to vector<8x128xf32>
    %1315 = arith.mulf %1142, %1314 : vector<8x128xf32>
    %1316 = arith.mulf %1315, %1260 : vector<8x128xf32>
    %cst_422 = arith.constant 1.24999988 : f32
    %1317 = vector.broadcast %cst_422 : f32 to vector<8x128xf32>
    %1318 = arith.mulf %1148, %1317 : vector<8x128xf32>
    %1319 = arith.mulf %1318, %1267 : vector<8x128xf32>
    %1320 = arith.subf %1316, %1319 : vector<8x128xf32>
    %cst_423 = arith.constant 0.833333313 : f32
    %1321 = vector.broadcast %cst_423 : f32 to vector<8x128xf32>
    %1322 = arith.mulf %1126, %1321 : vector<8x128xf32>
    %1323 = arith.mulf %1322, %1274 : vector<8x128xf32>
    %cst_424 = arith.constant 0.833333373 : f32
    %1324 = vector.broadcast %cst_424 : f32 to vector<8x128xf32>
    %1325 = arith.mulf %1134, %1324 : vector<8x128xf32>
    %1326 = arith.mulf %1325, %1279 : vector<8x128xf32>
    %1327 = arith.subf %1323, %1326 : vector<8x128xf32>
    %1328 = arith.mulf %1128, %1279 : vector<8x128xf32>
    %1329 = arith.mulf %1136, %1284 : vector<8x128xf32>
    %1330 = arith.subf %1328, %1329 : vector<8x128xf32>
    %cst_425 = arith.constant 0.833333373 : f32
    %1331 = vector.broadcast %cst_425 : f32 to vector<8x128xf32>
    %1332 = arith.mulf %1331, %1330 : vector<8x128xf32>
    %cst_426 = arith.constant 0.833333373 : f32
    %1333 = vector.broadcast %cst_426 : f32 to vector<8x128xf32>
    %1334 = arith.mulf %1130, %1333 : vector<8x128xf32>
    %1335 = arith.mulf %1334, %1284 : vector<8x128xf32>
    %cst_427 = arith.constant 0.833333313 : f32
    %1336 = vector.broadcast %cst_427 : f32 to vector<8x128xf32>
    %1337 = arith.mulf %1138, %1336 : vector<8x128xf32>
    %1338 = arith.mulf %1337, %1291 : vector<8x128xf32>
    %1339 = arith.subf %1335, %1338 : vector<8x128xf32>
    %1340 = arith.mulf %1132, %1291 : vector<8x128xf32>
    %1341 = arith.mulf %1140, %1296 : vector<8x128xf32>
    %1342 = arith.subf %1340, %1341 : vector<8x128xf32>
    %cst_428 = arith.constant 0.833333313 : f32
    %1343 = vector.broadcast %cst_428 : f32 to vector<8x128xf32>
    %1344 = arith.mulf %1343, %1342 : vector<8x128xf32>
    %1345 = arith.mulf %1134, %1296 : vector<8x128xf32>
    %1346 = arith.mulf %1142, %1303 : vector<8x128xf32>
    %1347 = arith.subf %1345, %1346 : vector<8x128xf32>
    %cst_429 = arith.constant 0.833333313 : f32
    %1348 = vector.broadcast %cst_429 : f32 to vector<8x128xf32>
    %1349 = arith.mulf %1348, %1347 : vector<8x128xf32>
    %cst_430 = arith.constant 0.833333313 : f32
    %1350 = vector.broadcast %cst_430 : f32 to vector<8x128xf32>
    %1351 = arith.mulf %1136, %1350 : vector<8x128xf32>
    %1352 = arith.mulf %1351, %1303 : vector<8x128xf32>
    %cst_431 = arith.constant 0.833333373 : f32
    %1353 = vector.broadcast %cst_431 : f32 to vector<8x128xf32>
    %1354 = arith.mulf %1144, %1353 : vector<8x128xf32>
    %1355 = arith.mulf %1354, %1308 : vector<8x128xf32>
    %1356 = arith.subf %1352, %1355 : vector<8x128xf32>
    %1357 = arith.mulf %1138, %1308 : vector<8x128xf32>
    %1358 = arith.mulf %1146, %1313 : vector<8x128xf32>
    %1359 = arith.subf %1357, %1358 : vector<8x128xf32>
    %cst_432 = arith.constant 0.833333373 : f32
    %1360 = vector.broadcast %cst_432 : f32 to vector<8x128xf32>
    %1361 = arith.mulf %1360, %1359 : vector<8x128xf32>
    %cst_433 = arith.constant 0.833333373 : f32
    %1362 = vector.broadcast %cst_433 : f32 to vector<8x128xf32>
    %1363 = arith.mulf %1140, %1362 : vector<8x128xf32>
    %1364 = arith.mulf %1363, %1313 : vector<8x128xf32>
    %cst_434 = arith.constant 0.833333313 : f32
    %1365 = vector.broadcast %cst_434 : f32 to vector<8x128xf32>
    %1366 = arith.mulf %1148, %1365 : vector<8x128xf32>
    %1367 = arith.mulf %1366, %1320 : vector<8x128xf32>
    %1368 = arith.subf %1364, %1367 : vector<8x128xf32>
    %1369 = arith.mulf %1110, %1327 : vector<8x128xf32>
    %1370 = arith.mulf %1112, %1332 : vector<8x128xf32>
    %1371 = arith.addf %1369, %1370 : vector<8x128xf32>
    %1372 = arith.mulf %1114, %1339 : vector<8x128xf32>
    %1373 = arith.addf %1371, %1372 : vector<8x128xf32>
    %1374 = arith.mulf %1116, %1344 : vector<8x128xf32>
    %1375 = arith.addf %1373, %1374 : vector<8x128xf32>
    %1376 = arith.mulf %1118, %1349 : vector<8x128xf32>
    %1377 = arith.addf %1375, %1376 : vector<8x128xf32>
    %1378 = arith.mulf %1120, %1356 : vector<8x128xf32>
    %1379 = arith.addf %1377, %1378 : vector<8x128xf32>
    %1380 = arith.mulf %1122, %1361 : vector<8x128xf32>
    %1381 = arith.addf %1379, %1380 : vector<8x128xf32>
    %1382 = arith.mulf %1124, %1368 : vector<8x128xf32>
    %1383 = arith.addf %1381, %1382 : vector<8x128xf32>
    %1384 = tpu.concatenate %555, %831, %1107, %1383 in 0 : vector<8x128xf32>, vector<8x128xf32>, vector<8x128xf32>, vector<8x128xf32> -> vector<32x128xf32>
    %c0_435 = arith.constant 0 : index
    %c0_436 = arith.constant 0 : index
    %1385 = vector.load %arg6[%c0_435, %c0_436] : memref<16x32xf32, #tpu.memory_space<vmem>>, vector<16x32xf32>
    %cst_437 = arith.constant dense<0.000000e+00> : vector<16x128xf32>
    %1386 = tpu.matmul %1385, %1384, %cst_437 {dimension_numbers = #tpu.dot_dimension_numbers<[1], [0], [0], [1], [0, 0, 1, 1], [], []>} : vector<16x32xf32>, vector<32x128xf32>, vector<16x128xf32> -> vector<16x128xf32>
    %c0_438 = arith.constant 0 : index
    %c0_439 = arith.constant 0 : index
    %1387 = vector.load %arg7[%c0_438, %c0_439] : memref<16x128xf32, #tpu.memory_space<vmem>>, vector<16x128xf32>
    %1388 = arith.addf %1386, %1387 : vector<16x128xf32>
    %c0_440 = arith.constant 0 : index
    %c0_441 = arith.constant 0 : index
    %1389 = vector.load %arg8[%c0_440, %c0_441] : memref<16x128xf32, #tpu.memory_space<vmem>>, vector<16x128xf32>
    tpu.vector_store %arg8[%c0_440, %c0_441], %1388 {strides = array<i32>} : memref<16x128xf32, #tpu.memory_space<vmem>>, vector<16x128xf32>,
    return
  }
  func.func @transform_0(%arg0: i32) -> (i32, i32) {
    %c0_i32 = arith.constant 0 : i32
    %c0_i32_0 = arith.constant 0 : i32
    return %c0_i32, %arg0 : i32, i32
  }
  func.func @transform_1(%arg0: i32) -> (i32, i32, i32) {
    %c0_i32 = arith.constant 0 : i32
    %c0_i32_0 = arith.constant 0 : i32
    %c0_i32_1 = arith.constant 0 : i32
    %c0_i32_2 = arith.constant 0 : i32
    return %c0_i32, %c0_i32_0, %c0_i32_1 : i32, i32, i32
  }
  func.func @transform_2(%arg0: i32) -> (i32, i32) {
    %c0_i32 = arith.constant 0 : i32
    %c0_i32_0 = arith.constant 0 : i32
    %c0_i32_1 = arith.constant 0 : i32
    return %c0_i32, %c0_i32_0 : i32, i32
  }
  func.func @transform_3(%arg0: i32) -> (i32, i32) {
    %c0_i32 = arith.constant 0 : i32
    %c0_i32_0 = arith.constant 0 : i32
    %c0_i32_1 = arith.constant 0 : i32
    return %c0_i32, %c0_i32_0 : i32, i32
  }
  func.func @transform_4(%arg0: i32) -> (i32, i32, i32) {
    %c0_i32 = arith.constant 0 : i32
    %c0_i32_0 = arith.constant 0 : i32
    %c0_i32_1 = arith.constant 0 : i32
    %c0_i32_2 = arith.constant 0 : i32
    return %c0_i32, %c0_i32_0, %c0_i32_1 : i32, i32, i32
  }
  func.func @transform_5(%arg0: i32) -> (i32, i32) {
    %c0_i32 = arith.constant 0 : i32
    %c0_i32_0 = arith.constant 0 : i32
    %c0_i32_1 = arith.constant 0 : i32
    return %c0_i32, %c0_i32_0 : i32, i32
  }
  func.func @transform_6(%arg0: i32) -> (i32, i32) {
    %c0_i32 = arith.constant 0 : i32
    %c0_i32_0 = arith.constant 0 : i32
    %c0_i32_1 = arith.constant 0 : i32
    return %c0_i32, %c0_i32_0 : i32, i32
  }
  func.func @transform_7(%arg0: i32) -> (i32, i32) {
    %c0_i32 = arith.constant 0 : i32
    %c0_i32_0 = arith.constant 0 : i32
    return %c0_i32, %arg0 : i32, i32
  }
}

</mosaic_0001>

<bundles_post_ra>
// kernel: tpu_custom_call.1
= control target key start
LH: loop header
LB: loop body
LE: loop exit
PB: predicated region body
PF: predicated region fallthrough
CT: control target
= control target key end

     0   :  { %12 = vsyncpa [#allocation3], 0  ;;  %s2117_s0 = inlined_call_operand.vmem [shape: f32[8,128], index: 0, kind: input, shape index: {}]   ;;  %s2118_s1 = inlined_call_operand.hbm [shape: f32[8,8,128], index: 1, kind: input, shape index: {}]   ;;  %s2119_s2 = inlined_call_operand.vmem [shape: f32[32,8], index: 2, kind: input, shape index: {}]   ;;  %s2120_s3 = inlined_call_operand.vmem [shape: f32[32,128], index: 3, kind: input, shape index: {}]   ;;  %s2121_s4 = inlined_call_operand.hbm [shape: f32[8,32,128], index: 4, kind: input, shape index: {}]   ;;  %s2122_s5 = inlined_call_operand.hbm [shape: f32[16,32], index: 5, kind: input, shape index: {}]   ;;  %s2123_s6 = inlined_call_operand.hbm [shape: f32[16,128], index: 6, kind: input, shape index: {}]   ;;  %s2124_s7 = inlined_call_operand.hbm [shape: f32[16,128], index: 7, kind: output, shape index: {}]  }
   0x1   :  { %13 = vsyncpa [#allocation6], 0 }
   0x2   :  { %14 = vsyncpa [#allocation9], 0 }
   0x3   :  { %15 = vsyncpa [#allocation4], 0  ;;  %s39_s26 = sshll.u32 %s2121_s4, 4  ;;  %s1484_s27 = smov [#allocation5]   ;;  %s40_s26 = int_to_ptr.hbm [resolvable:$true] %s39_s26 }
   0x4   :  { %s41_s28 = sshll.u32 %s1484_s27, 4  ;;  %s22_s8 = sshll.u32 %s2118_s1, 4  ;;  %s42_s28 = int_to_ptr.vmem [resolvable:$true] %s41_s28  ;;  %s23_s8 = int_to_ptr.hbm [resolvable:$true] %s22_s8 }
   0x5   :  { %s1485_s9 = smov 128   ;;  %s1486_s10 = smov 8  }
   0x6   :  { %47 = dma.hbm_to_vmem [thread:$0]  %s40_s26, 4096, %s42_s28, [#allocation6], %s1485_s9, %s1485_s9, %s1486_s10  }
   0x7   :  { %s1487_s11 = smov [#allocation2]   ;;  %s52_s4 = sshll.u32 %s2122_s5, 4  ;;  %s53_s4 = int_to_ptr.hbm [resolvable:$true] %s52_s4 }
   0x8   :  { %s24_s12 = sshll.u32 %s1487_s11, 4  ;;  %s65_s16 = sshll.u32 %s2123_s6, 4  ;;  %s25_s12 = int_to_ptr.vmem [resolvable:$true] %s24_s12  ;;  %s66_s16 = int_to_ptr.hbm [resolvable:$true] %s65_s16 }
   0x9   :  { %30 = dma.hbm_to_vmem [thread:$0]  %s23_s8, 1024, %s25_s12, [#allocation3], %s1485_s9, %s1485_s9, %s1486_s10  }
   0xa   :  { %s1488_s17 = smov [#allocation7]   ;;  %s1489_s19 = smov [#allocation8]  }
   0xb   :  { %s54_s18 = sshll.u32 %s1488_s17, 4  ;;  %s67_s5 = sshll.u32 %s1489_s19, 4  ;;  %s55_s18 = int_to_ptr.vmem [resolvable:$true] %s54_s18  ;;  %s68_s5 = int_to_ptr.vmem [resolvable:$true] %s67_s5 }
   0xc   :  { %60 = dma.hbm_to_vmem [thread:$0]  %s53_s4, 256, %s55_s18, [#allocation6], %s1485_s9, %s1485_s9, %s1486_s10  }
   0xd   :  { %73 = dma.hbm_to_vmem [thread:$0]  %s66_s16, 256, %s68_s5, [#allocation9], %s1485_s9, %s1485_s9, %s1486_s10  }
   0xe   :  { %1476 = dma.done.wait [#allocation3], 1024  }
   0xf   :  { %1477 = vsyncadd [#allocation3], 4294966272 }
  0x10   :  { %1478 = dma.done.wait [#allocation6], 4352  }
  0x11   :  { %1479 = vsyncadd [#allocation6], 4294962944 }
  0x12   :  { %1480 = dma.done.wait [#allocation9], 256  }
  0x13   :  { %1481 = vsyncadd [#allocation9], 4294967040  ;;  %v90_v0 = vld [vmem:[%s2117_s0] sm:$0xff]  ;;  %v1490_v13 = vmov 0.0   ;;  %vm307_vm12 = vcmask 64512   ;;  %s1202_s15 = sshll.u32 %s2124_s7, 4  ;;  %s1203_s15 = int_to_ptr.hbm [resolvable:$true] %s1202_s15 }
  0x14   :  { %v1559_v1 = vadd.f32 2.2, %v90_v0  ;;  %v1561_v2 = vadd.f32 1.8, %v90_v0  ;;  %v1563_v3 = vadd.f32 1.0, %v90_v0  ;;  %v1565_v4 = vadd.f32 -1.0, %v90_v0 }
  0x15   :  { %v1567_v5 = vadd.f32 1.4, %v90_v0  ;;  %v1569_v6 = vadd.f32 0.6, %v90_v0  ;;  %v1571_v7 = vadd.f32 0.20000002, %v90_v0 }
  0x16   :  { %v1573_v8 = vadd.f32 -0.20000003, %v90_v0  ;;  %v1575_v9 = vadd.f32 -0.6, %v90_v0  ;;  %v1577_v10 = vadd.f32 -1.4, %v90_v0 }
  0x17   :  { %v1579_v11 = vadd.f32 -1.8, %v90_v0  ;;  %v1581_v12 = vadd.f32 -2.2, %v90_v0  ;;  %vm118_vm0 = vcmp.ge.f32.partialorder %v90_v0, -2.2 }
  0x18   :  { %v1229_v14 = vsel %vm118_vm0, 1.0, %v1490_v13  ;;  %vm121_vm1 = vcmp.ge.f32.partialorder %v90_v0, -1.8  ;;  %vm125_vm2 = vcmp.ge.f32.partialorder %v90_v0, -1.4  ;;  %vm129_vm3 = vcmp.ge.f32.partialorder %v90_v0, -1.0 }
  0x19   :  { %v1230_v15 = vsel %vm121_vm1, 1.0, %v1490_v13  ;;  %v1231_v16 = vsel %vm125_vm2, 1.0, %v1490_v13  ;;  %v1232_v17 = vsel %vm129_vm3, 1.0, %v1490_v13  ;;  %vm133_vm4 = vcmp.ge.f32.partialorder %v90_v0, -0.6 }
  0x1a   :  { %v124_v18 = vsub.f32 %v1229_v14, %v1230_v15  ;;  %v128_v19 = vsub.f32 %v1230_v15, %v1231_v16  ;;  %v132_v20 = vsub.f32 %v1231_v16, %v1232_v17  ;;  %v1233_v21 = vsel %vm133_vm4, 1.0, %v1490_v13 }
  0x1b   :  { %v136_v22 = vsub.f32 %v1232_v17, %v1233_v21  ;;  %vm137_vm5 = vcmp.ge.f32.partialorder %v90_v0, -0.20000002  ;;  %vm141_vm6 = vcmp.ge.f32.partialorder %v90_v0, 0.20000003  ;;  %vm145_vm7 = vcmp.ge.f32.partialorder %v90_v0, 0.6 }
  0x1c   :  { %v1234_v23 = vsel %vm137_vm5, 1.0, %v1490_v13  ;;  %v1235_v24 = vsel %vm141_vm6, 1.0, %v1490_v13  ;;  %v1236_v25 = vsel %vm145_vm7, 1.0, %v1490_v13  ;;  %vm149_vm8 = vcmp.ge.f32.partialorder %v90_v0, 1.0 }
  0x1d   :  { %v140_v26 = vsub.f32 %v1233_v21, %v1234_v23  ;;  %v144_v27 = vsub.f32 %v1234_v23, %v1235_v24  ;;  %v148_v28 = vsub.f32 %v1235_v24, %v1236_v25  ;;  %v1237_v29 = vsel %vm149_vm8, 1.0, %v1490_v13 }
  0x1e   :  { %v152_v30 = vsub.f32 %v1236_v25, %v1237_v29  ;;  %vm153_vm9 = vcmp.ge.f32.partialorder %v90_v0, 1.4  ;;  %vm157_vm10 = vcmp.ge.f32.partialorder %v90_v0, 1.8  ;;  %vm161_vm11 = vcmp.ge.f32.partialorder %v90_v0, 2.2 }
  0x1f   :  { %v1238_v31 = vsel %vm153_vm9, 1.0, %v1490_v13  ;;  %v1239_v32 = vsel %vm157_vm10, 1.0, %v1490_v13  ;;  %v1240_v33 = vsel %vm161_vm11, 1.0, %v1490_v13  ;;  %v165_v34 = vmul.f32 2.4999995, %v1559_v1 }
  0x20   :  { %v156_v35 = vsub.f32 %v1237_v29, %v1238_v31  ;;  %v160_v36 = vsub.f32 %v1238_v31, %v1239_v32  ;;  %v164_v37 = vsub.f32 %v1239_v32, %v1240_v33  ;;  %v167_v38 = vmul.f32 2.5000002, %v1567_v5 }
  0x21   :  { %v166_v39 = vmul.f32 %v165_v34, %v124_v18  ;;  %v170_v40 = vmul.f32 %v1561_v2, %v128_v19  ;;  %v171_v41 = vmul.f32 %v1563_v3, %v132_v20  ;;  %v174_v42 = vmul.f32 %v1567_v5, %v132_v20 }
  0x22   :  { %v168_v43 = vmul.f32 %v167_v38, %v128_v19  ;;  %v175_v44 = vmul.f32 %v1569_v6, %v136_v22  ;;  %v178_v45 = vmul.f32 2.5000002, %v1563_v3  ;;  %v180_v46 = vmul.f32 2.5, %v1571_v7 }
  0x23   :  { %v172_v47 = vsub.f32 %v170_v40, %v171_v41  ;;  %v183_v48 = vmul.f32 2.5, %v1569_v6  ;;  %v185_v49 = vmul.f32 2.4999998, %v1573_v8  ;;  %v188_v50 = vmul.f32 2.4999998, %v1571_v7 }
  0x24   :  { %v169_v51 = vsub.f32 %v166_v39, %v168_v43  ;;  %v176_v52 = vsub.f32 %v174_v42, %v175_v44  ;;  %v179_v53 = vmul.f32 %v178_v45, %v136_v22  ;;  %v181_v54 = vmul.f32 %v180_v46, %v140_v26 }
  0x25   :  { %v173_v55 = vmul.f32 2.5000002, %v172_v47  ;;  %v184_v56 = vmul.f32 %v183_v48, %v140_v26  ;;  %v186_v57 = vmul.f32 %v185_v49, %v144_v27  ;;  %v189_v58 = vmul.f32 %v188_v50, %v144_v27 }
  0x26   :  { %v177_v59 = vmul.f32 2.5000002, %v176_v52  ;;  %v182_v60 = vsub.f32 %v179_v53, %v181_v54  ;;  %v190_v61 = vmul.f32 2.5000002, %v1575_v9  ;;  %v193_v62 = vmul.f32 %v1573_v8, %v148_v28 }
  0x27   :  { %v187_v63 = vsub.f32 %v184_v56, %v186_v57  ;;  %v194_v0 = vmul.f32 %v1565_v4, %v152_v30  ;;  %v197_v14 = vmul.f32 %v1575_v9, %v152_v30  ;;  %v198_v15 = vmul.f32 %v1577_v10, %v156_v35 }
  0x28   :  { %v191_v16 = vmul.f32 %v190_v61, %v148_v28  ;;  %v201_v17 = vmul.f32 %v1565_v4, %v156_v35  ;;  %v202_v18 = vmul.f32 %v1579_v11, %v160_v36  ;;  %v205_v19 = vmul.f32 2.5000002, %v1577_v10 }
  0x29   :  { %v195_v20 = vsub.f32 %v193_v62, %v194_v0  ;;  %v199_v21 = vsub.f32 %v197_v14, %v198_v15  ;;  %v207_v22 = vmul.f32 2.4999995, %v1581_v12  ;;  %v210_v23 = vmul.f32 1.2499999, %v1559_v1 }
  0x2a   :  { %v192_v24 = vsub.f32 %v189_v58, %v191_v16  ;;  %v203_v25 = vsub.f32 %v201_v17, %v202_v18  ;;  %v206_v26 = vmul.f32 %v205_v19, %v160_v36  ;;  %v212_v27 = vmul.f32 1.2500001, %v1563_v3 }
  0x2b   :  { %v196_v29 = vmul.f32 2.5000002, %v195_v20  ;;  %v200_v30 = vmul.f32 2.5000002, %v199_v21  ;;  %v208_v28 = vmul.f32 %v207_v22, %v164_v37  ;;  %v211_v31 = vmul.f32 %v210_v23, %v169_v51 }
  0x2c   :  { %v204_v32 = vmul.f32 2.5000002, %v203_v25  ;;  %v213_v33 = vmul.f32 %v212_v27, %v173_v55  ;;  %v215_v34 = vmul.f32 %v1561_v2, %v173_v55  ;;  %v216_v35 = vmul.f32 %v1569_v6, %v177_v59 }
  0x2d   :  { %v209_v38 = vsub.f32 %v206_v26, %v208_v28  ;;  %v219_v39 = vmul.f32 %v1567_v5, %v177_v59  ;;  %v220_v40 = vmul.f32 %v1571_v7, %v182_v60  ;;  %v223_v41 = vmul.f32 %v212_v27, %v182_v60 }
  0x2e   :  { %v214_v42 = vsub.f32 %v211_v31, %v213_v33  ;;  %v217_v36 = vsub.f32 %v215_v34, %v216_v35  ;;  %v224_v43 = vmul.f32 1.2499999, %v1573_v8  ;;  %v227_v44 = vmul.f32 %v1569_v6, %v187_v63  ;;  %v93_v35 = vld [vmem:[#allocation2 + $0x8] sm:$0xff] }
  0x2f   :  { %v221_v37 = vsub.f32 %v219_v39, %v220_v40  ;;  %v228_v45 = vmul.f32 %v1575_v9, %v192_v24  ;;  %v231_v46 = vmul.f32 1.2499999, %v1571_v7  ;;  %v233_v47 = vmul.f32 1.2500001, %v1565_v4 }
  0x30   :  { %v218_v48 = vmul.f32 1.2500001, %v217_v36  ;;  %v225_v49 = vmul.f32 %v224_v43, %v187_v63  ;;  %v236_v50 = vmul.f32 %v1573_v8, %v196_v29  ;;  %v237_v51 = vmul.f32 %v1577_v10, %v200_v30 }
  0x31   :  { %v222_v52 = vmul.f32 1.2500001, %v221_v37  ;;  %v229_v53 = vsub.f32 %v227_v44, %v228_v45  ;;  %v232_v54 = vmul.f32 %v231_v46, %v192_v24  ;;  %v234_v55 = vmul.f32 %v233_v47, %v196_v29  ;;  %v97_v44 = vld [vmem:[#allocation2 + $0x18] sm:$0xff] }
  0x32   :  { %v226_v56 = vsub.f32 %v223_v41, %v225_v49  ;;  %v238_v57 = vsub.f32 %v236_v50, %v237_v51  ;;  %v240_v58 = vmul.f32 %v1575_v9, %v200_v30  ;;  %v241_v59 = vmul.f32 %v1579_v11, %v204_v32  ;;  %v95_v41 = vld [vmem:[#allocation2 + $0x10] sm:$0xff] }
  0x33   :  { %v230_v60 = vmul.f32 1.2499999, %v229_v53  ;;  %v235_v61 = vsub.f32 %v232_v54, %v234_v55  ;;  %v244_v62 = vmul.f32 %v233_v47, %v204_v32  ;;  %v245_v0 = vmul.f32 1.2499999, %v1581_v12  ;;  %v99_v47 = vld [vmem:[#allocation2 + $0x20] sm:$0xff] }
  0x34   :  { %v239_v63 = vmul.f32 1.2500001, %v238_v57  ;;  %v242_v14 = vsub.f32 %v240_v58, %v241_v59  ;;  %v248_v15 = vmul.f32 0.8333333, %v1559_v1  ;;  %v250_v16 = vmul.f32 0.8333334, %v1569_v6 }
  0x35   :  { %v246_v17 = vmul.f32 %v245_v0, %v209_v38  ;;  %v253_v18 = vmul.f32 %v1561_v2, %v218_v48  ;;  %v254_v19 = vmul.f32 %v1571_v7, %v222_v52  ;;  %v257_v20 = vmul.f32 0.8333334, %v1567_v5  ;;  %v91_v1 = vld [vmem:[#allocation2] sm:$0xff] }
  0x36   :  { %v243_v21 = vmul.f32 1.2500001, %v242_v14  ;;  %v249_v22 = vmul.f32 %v248_v15, %v214_v42  ;;  %v251_v23 = vmul.f32 %v250_v16, %v218_v48  ;;  %v259_v24 = vmul.f32 0.8333333, %v1573_v8  ;;  %v299_v14 = vld [vmem:[%s2119_s2] sm:$0xff]  ;;  %v301_v15 = vld [vmem:[%s2119_s2 + $0x10] sm:$0xff] }
  0x37   :  { %v247_v25 = vsub.f32 %v244_v62, %v246_v17  ;;  %v255_v26 = vsub.f32 %v253_v18, %v254_v19  ;;  %v258_v27 = vmul.f32 %v257_v20, %v222_v52  ;;  %v262_v29 = vmul.f32 %v1563_v3, %v226_v56  ;;  %v101_v52 = vld [vmem:[#allocation2 + $0x28] sm:$0xff]  ;;  %v302_v17 = vld [vmem:[%s2119_s2 + $0x18] sm:$0xff]  ;;  %v305_v20 = vld [vmem:[%s2120_s3 + $0x10] sm:$0xff] }
  0x38   :  { %v252_v30 = vsub.f32 %v249_v22, %v251_v23  ;;  %v260_v28 = vmul.f32 %v259_v24, %v226_v56  ;;  %v263_v31 = vmul.f32 %v1575_v9, %v230_v60  ;;  %v266_v2 = vmul.f32 %v1569_v6, %v230_v60  ;;  %v300_v16 = vld [vmem:[%s2119_s2 + $0x8] sm:$0xff]  ;;  %v306_v22 = vld [vmem:[%s2120_s3 + $0x18] sm:$0xff] }
  0x39   :  { %v256_v32 = vmul.f32 0.8333334, %v255_v26  ;;  %v267_v5 = vmul.f32 %v1565_v4, %v235_v61  ;;  %v270_v33 = vmul.f32 0.8333333, %v1571_v7  ;;  %v272_v34 = vmul.f32 0.8333334, %v1577_v10 }
  0x3a   :  { %v261_v38 = vsub.f32 %v258_v27, %v260_v28  ;;  %v264_v39 = vsub.f32 %v262_v29, %v263_v31  ;;  %v275_v40 = vmul.f32 %v1573_v8, %v239_v63  ;;  %v276_v3 = vmul.f32 %v1579_v11, %v243_v21  ;;  %v304_v29 = vld [vmem:[%s2120_s3 + $0x8] sm:$0xff] }
  0x3b   :  { %v268_v42 = vsub.f32 %v266_v2, %v267_v5  ;;  %v271_v36 = vmul.f32 %v270_v33, %v235_v61  ;;  %v273_v43 = vmul.f32 %v272_v34, %v239_v63  ;;  %v279_v6 = vmul.f32 0.8333334, %v1575_v9  ;;  %v103_v9 = vld [vmem:[#allocation2 + $0x30] sm:$0xff] }
  0x3c   :  { %v265_v37 = vmul.f32 0.8333333, %v264_v39  ;;  %v281_v4 = vmul.f32 0.8333333, %v1581_v12  ;;  %v284_v7 = vmul.f32 %v252_v30, %v91_v1  ;;  %v277_v10 = vsub.f32 %v275_v40, %v276_v3  ;;  %v105_v12 = vld [vmem:[#allocation2 + $0x38] sm:$0xff] }
  0x3d   :  { %v269_v45 = vmul.f32 0.8333333, %v268_v42  ;;  %v285_v46 = vmul.f32 %v256_v32, %v93_v35  ;;  %v274_v48 = vsub.f32 %v271_v36, %v273_v43  ;;  %v287_v49 = vmul.f32 %v261_v38, %v95_v41 }
  0x3e   :  { %v280_v8 = vmul.f32 %v279_v6, %v243_v21  ;;  %v282_v50 = vmul.f32 %v281_v4, %v247_v25  ;;  %v289_v51 = vmul.f32 %v265_v37, %v97_v44  ;;  %v278_v53 = vmul.f32 0.8333334, %v277_v10 }
  0x3f   :  { %v286_v11 = vadd.f32 %v285_v46, %v284_v7  ;;  %v291_v55 = vmul.f32 %v269_v45, %v99_v47  ;;  %v293_v58 = vmul.f32 %v274_v48, %v101_v52 }
  0x40   :  { %v283_v56 = vsub.f32 %v280_v8, %v282_v50  ;;  %v295_v60 = vmul.f32 %v278_v53, %v103_v9 }
  0x41   :  { %v288_v54 = vadd.f32 %v287_v49, %v286_v11 }
  0x42   :  { %v297_v62 = vmul.f32 %v283_v56, %v105_v12 }
  0x43   :  { %v290_v57 = vadd.f32 %v289_v51, %v288_v54 }
  0x45   :  { %v292_v59 = vadd.f32 %v291_v55, %v290_v57 }
  0x47   :  { %v294_v61 = vadd.f32 %v293_v58, %v292_v59 }
  0x49   :  { %v296_v0 = vadd.f32 %v295_v60, %v294_v61 }
  0x4b   :  { %v298_v63 = vadd.f32 %v297_v62, %v296_v0 }
  0x4d   :  { %335 = vmatpush.msra.mxu0 %v298_v63  ;;  %1343 = vmatpush.msra.mxu2 %v298_v63 }
  0x4e   :  { %1241 = vmatmul.msk.f32.vlgmr.msra.gmra.mxu0 %vm307_vm12, %v299_v14  ;;  %1243 = vmatmul.msk.f32.vlgmr.msra.gmra.mxu2 %vm307_vm12, %v301_v15 }
  0x56   :  { %1242 = vmatmul.msk.f32.gmra.mxu0 %vm307_vm12, %v300_v16  ;;  %1244 = vmatmul.msk.f32.gmra.mxu2 %vm307_vm12, %v302_v17 }
  0xcb   :  { %v1659_v19 = vpop.f32.mrf.mxu0 }
  0xd1   :  { %v343_v18 = vpop.f32.mrf.mxu2 }
  0xd2   :  { %v1664_v21 = vadd.f32 %v343_v18, %v305_v20 }
  0xd3   :  { %v340_v31 = vpop.f32.mrf.mxu0 }
  0xd4   :  { %v1670_v25 = vadd.f32 2.2, %v1664_v21  ;;  %v1673_v26 = vadd.f32 1.8, %v1664_v21  ;;  %v1676_v27 = vadd.f32 1.4, %v1664_v21  ;;  %v1710_v41 = vadd.f32 %v340_v31, %v304_v29 }
  0xd5   :  { %v1682_v1 = vadd.f32 1.0, %v1664_v21  ;;  %v1685_v30 = vadd.f32 0.6, %v1664_v21  ;;  %v1688_v28 = vadd.f32 0.20000002, %v1664_v21  ;;  %vm789_vm12 = vcmp.ge.f32.partialorder %v1664_v21, -1.0 }
  0xd6   :  { %vm778_vm9 = vcmp.ge.f32.partialorder %v1664_v21, -2.2  ;;  %vm781_vm10 = vcmp.ge.f32.partialorder %v1664_v21, -1.8  ;;  %vm785_vm11 = vcmp.ge.f32.partialorder %v1664_v21, -1.4 }
  0xd9   :  { %v346_v23 = vpop.f32.mrf.mxu2 }
  0xda   :  { %v347_v24 = vadd.f32 %v346_v23, %v306_v22 }
  0xdc   :  { %v1690_v2 = vadd.f32 2.2, %v347_v24  ;;  %v1692_v32 = vadd.f32 1.8, %v347_v24  ;;  %v1694_v5 = vadd.f32 1.4, %v347_v24 }
  0xdd   :  { %v1696_v33 = vadd.f32 1.0, %v347_v24  ;;  %v1698_v34 = vadd.f32 0.6, %v347_v24  ;;  %v1700_v35 = vadd.f32 0.20000002, %v347_v24  ;;  %v1702_v38 = vadd.f32 -1.0, %v347_v24 }
  0xde   :  { %v1704_v39 = vadd.f32 -0.20000003, %v347_v24  ;;  %v1706_v40 = vadd.f32 -0.6, %v347_v24  ;;  %v1708_v3 = vadd.f32 -1.4, %v347_v24 }
  0xdf   :  { %v1712_v42 = vadd.f32 -1.8, %v347_v24  ;;  %v1714_v36 = vadd.f32 -2.2, %v347_v24  ;;  %vm979_vm13 = vcmp.ge.f32.partialorder %v347_v24, -2.2 }
  0xe0   :  { %v1329_v43 = vsel %vm979_vm13, 1.0, %v1490_v13  ;;  %vm982_vm14 = vcmp.ge.f32.partialorder %v347_v24, -1.8  ;;  %vm986_vm15 = vcmp.ge.f32.partialorder %v347_v24, -1.4  ;;  %vm990_vm0 = vcmp.ge.f32.partialorder %v347_v24, -1.0 }
  0xe1   :  { %v1330_v6 = vsel %vm982_vm14, 1.0, %v1490_v13  ;;  %v1331_v44 = vsel %vm986_vm15, 1.0, %v1490_v13  ;;  %v1332_v37 = vsel %vm990_vm0, 1.0, %v1490_v13  ;;  %vm994_vm1 = vcmp.ge.f32.partialorder %v347_v24, -0.6 }
  0xe2   :  { %v985_v4 = vsub.f32 %v1329_v43, %v1330_v6  ;;  %v989_v7 = vsub.f32 %v1330_v6, %v1331_v44  ;;  %v993_v45 = vsub.f32 %v1331_v44, %v1332_v37  ;;  %v1333_v10 = vsel %vm994_vm1, 1.0, %v1490_v13 }
  0xe3   :  { %v997_v46 = vsub.f32 %v1332_v37, %v1333_v10  ;;  %vm998_vm2 = vcmp.ge.f32.partialorder %v347_v24, -0.20000002  ;;  %vm1002_vm3 = vcmp.ge.f32.partialorder %v347_v24, 0.20000003  ;;  %vm1006_vm4 = vcmp.ge.f32.partialorder %v347_v24, 0.6 }
  0xe4   :  { %v1334_v47 = vsel %vm998_vm2, 1.0, %v1490_v13  ;;  %v1335_v48 = vsel %vm1002_vm3, 1.0, %v1490_v13  ;;  %v1336_v49 = vsel %vm1006_vm4, 1.0, %v1490_v13  ;;  %vm1010_vm5 = vcmp.ge.f32.partialorder %v347_v24, 1.0 }
  0xe5   :  { %v1001_v8 = vsub.f32 %v1333_v10, %v1334_v47  ;;  %v1005_v50 = vsub.f32 %v1334_v47, %v1335_v48  ;;  %v1009_v11 = vsub.f32 %v1335_v48, %v1336_v49  ;;  %v1337_v51 = vsel %vm1010_vm5, 1.0, %v1490_v13 }
  0xe6   :  { %v1013_v52 = vsub.f32 %v1336_v49, %v1337_v51  ;;  %vm1014_vm6 = vcmp.ge.f32.partialorder %v347_v24, 1.4  ;;  %vm1018_vm7 = vcmp.ge.f32.partialorder %v347_v24, 1.8  ;;  %vm1022_vm8 = vcmp.ge.f32.partialorder %v347_v24, 2.2 }
  0xe7   :  { %v1338_v53 = vsel %vm1014_vm6, 1.0, %v1490_v13  ;;  %v1339_v54 = vsel %vm1018_vm7, 1.0, %v1490_v13  ;;  %v1340_v55 = vsel %vm1022_vm8, 1.0, %v1490_v13  ;;  %v1026_v9 = vmul.f32 2.4999995, %v1690_v2 }
  0xe8   :  { %v1017_v56 = vsub.f32 %v1337_v51, %v1338_v53  ;;  %v1021_v57 = vsub.f32 %v1338_v53, %v1339_v54  ;;  %v1025_v58 = vsub.f32 %v1339_v54, %v1340_v55  ;;  %v1028_v12 = vmul.f32 2.5000002, %v1694_v5 }
  0xe9   :  { %v1027_v59 = vmul.f32 %v1026_v9, %v985_v4  ;;  %v1031_v60 = vmul.f32 %v1692_v32, %v989_v7  ;;  %v1032_v61 = vmul.f32 %v1696_v33, %v993_v45  ;;  %v1035_v62 = vmul.f32 %v1694_v5, %v993_v45 }
  0xea   :  { %v1029_v0 = vmul.f32 %v1028_v12, %v989_v7  ;;  %v1036_v63 = vmul.f32 %v1698_v34, %v997_v46  ;;  %v1039_v14 = vmul.f32 2.5000002, %v1696_v33  ;;  %v1041_v15 = vmul.f32 2.5, %v1700_v35 }
  0xeb   :  { %v1033_v16 = vsub.f32 %v1031_v60, %v1032_v61  ;;  %v1044_v17 = vmul.f32 2.5, %v1698_v34  ;;  %v1046_v18 = vmul.f32 2.4999998, %v1704_v39  ;;  %v1049_v20 = vmul.f32 2.4999998, %v1700_v35 }
  0xec   :  { %v1030_v22 = vsub.f32 %v1027_v59, %v1029_v0  ;;  %v1037_v23 = vsub.f32 %v1035_v62, %v1036_v63  ;;  %v1040_v24 = vmul.f32 %v1039_v14, %v997_v46  ;;  %v1042_v29 = vmul.f32 %v1041_v15, %v1001_v8 }
  0xed   :  { %v1034_v31 = vmul.f32 2.5000002, %v1033_v16  ;;  %v1045_v43 = vmul.f32 %v1044_v17, %v1001_v8  ;;  %v1047_v6 = vmul.f32 %v1046_v18, %v1005_v50  ;;  %v1050_v44 = vmul.f32 %v1049_v20, %v1005_v50 }
  0xee   :  { %v1038_v37 = vmul.f32 2.5000002, %v1037_v23  ;;  %v1043_v4 = vsub.f32 %v1040_v24, %v1042_v29  ;;  %v1051_v7 = vmul.f32 2.5000002, %v1706_v40  ;;  %v1054_v45 = vmul.f32 %v1704_v39, %v1009_v11 }
  0xef   :  { %v1048_v10 = vsub.f32 %v1045_v43, %v1047_v6  ;;  %v1055_v47 = vmul.f32 %v1702_v38, %v1013_v52  ;;  %v1058_v48 = vmul.f32 %v1706_v40, %v1013_v52  ;;  %v1059_v49 = vmul.f32 %v1708_v3, %v1017_v56 }
  0xf0   :  { %v1052_v51 = vmul.f32 %v1051_v7, %v1009_v11  ;;  %v1062_v46 = vmul.f32 %v1702_v38, %v1017_v56  ;;  %v1063_v8 = vmul.f32 %v1712_v42, %v1021_v57  ;;  %v1066_v50 = vmul.f32 2.5000002, %v1708_v3 }
  0xf1   :  { %v1056_v53 = vsub.f32 %v1054_v45, %v1055_v47  ;;  %v1060_v54 = vsub.f32 %v1058_v48, %v1059_v49  ;;  %v1068_v55 = vmul.f32 2.4999995, %v1714_v36  ;;  %v1071_v9 = vmul.f32 1.2499999, %v1690_v2 }
  0xf2   :  { %v1053_v12 = vsub.f32 %v1050_v44, %v1052_v51  ;;  %v1064_v59 = vsub.f32 %v1062_v46, %v1063_v8  ;;  %v1067_v60 = vmul.f32 %v1066_v50, %v1021_v57  ;;  %v1073_v52 = vmul.f32 1.2500001, %v1696_v33 }
  0xf3   :  { %v1057_v61 = vmul.f32 2.5000002, %v1056_v53  ;;  %v1061_v62 = vmul.f32 2.5000002, %v1060_v54  ;;  %v1069_v11 = vmul.f32 %v1068_v55, %v1025_v58  ;;  %v1072_v0 = vmul.f32 %v1071_v9, %v1030_v22 }
  0xf4   :  { %v1065_v56 = vmul.f32 2.5000002, %v1064_v59  ;;  %v1074_v63 = vmul.f32 %v1073_v52, %v1034_v31  ;;  %v1076_v14 = vmul.f32 %v1692_v32, %v1034_v31  ;;  %v1077_v15 = vmul.f32 %v1698_v34, %v1038_v37 }
  0xf5   :  { %v1070_v16 = vsub.f32 %v1067_v60, %v1069_v11  ;;  %v1080_v17 = vmul.f32 %v1694_v5, %v1038_v37  ;;  %v1081_v18 = vmul.f32 %v1700_v35, %v1043_v4  ;;  %v1084_v20 = vmul.f32 %v1073_v52, %v1043_v4 }
  0xf6   :  { %v1075_v23 = vsub.f32 %v1072_v0, %v1074_v63  ;;  %v1078_v57 = vsub.f32 %v1076_v14, %v1077_v15  ;;  %v1085_v24 = vmul.f32 1.2499999, %v1704_v39  ;;  %v1088_v29 = vmul.f32 %v1698_v34, %v1048_v10 }
  0xf7   :  { %v1082_v58 = vsub.f32 %v1080_v17, %v1081_v18  ;;  %v1089_v22 = vmul.f32 %v1706_v40, %v1053_v12  ;;  %v1092_v43 = vmul.f32 1.2499999, %v1700_v35  ;;  %v1094_v31 = vmul.f32 1.2500001, %v1702_v38 }
  0xf8   :  { %v1079_v6 = vmul.f32 1.2500001, %v1078_v57  ;;  %v1086_v44 = vmul.f32 %v1085_v24, %v1048_v10  ;;  %v1097_v37 = vmul.f32 %v1704_v39, %v1057_v61  ;;  %v1098_v7 = vmul.f32 %v1708_v3, %v1061_v62 }
  0xf9   :  { %v1083_v4 = vmul.f32 1.2500001, %v1082_v58  ;;  %v1090_v45 = vsub.f32 %v1088_v29, %v1089_v22  ;;  %v1093_v47 = vmul.f32 %v1092_v43, %v1053_v12  ;;  %v1095_v48 = vmul.f32 %v1094_v31, %v1057_v61  ;;  %v960_v58 = vld [vmem:[#allocation5 + $0x38] sm:$0xff] }
  0xfa   :  { %v1087_v49 = vsub.f32 %v1084_v20, %v1086_v44  ;;  %v1099_v51 = vsub.f32 %v1097_v37, %v1098_v7  ;;  %v1101_v46 = vmul.f32 %v1706_v40, %v1061_v62  ;;  %v1102_v8 = vmul.f32 %v1712_v42, %v1065_v56  ;;  %v962_v44 = vld [vmem:[#allocation5 + $0x78] sm:$0xff] }
  0xfb   :  { %v1091_v50 = vmul.f32 1.2499999, %v1090_v45  ;;  %v1096_v53 = vsub.f32 %v1093_v47, %v1095_v48  ;;  %v1105_v54 = vmul.f32 %v1094_v31, %v1065_v56  ;;  %v1106_v55 = vmul.f32 1.2499999, %v1714_v36  ;;  %v963_v45 = vld [vmem:[#allocation5 + $0x98] sm:$0xff] }
  0xfc   :  { %v1100_v10 = vmul.f32 1.2500001, %v1099_v51  ;;  %v1103_v9 = vsub.f32 %v1101_v46, %v1102_v8  ;;  %v1109_v59 = vmul.f32 0.8333333, %v1690_v2  ;;  %v1111_v60 = vmul.f32 0.8333334, %v1698_v34 }
  0xfd   :  { %v1107_v52 = vmul.f32 %v1106_v55, %v1070_v16  ;;  %v1114_v12 = vmul.f32 %v1692_v32, %v1079_v6  ;;  %v1115_v61 = vmul.f32 %v1700_v35, %v1083_v4  ;;  %v1118_v62 = vmul.f32 0.8333334, %v1694_v5  ;;  %v959_v2 = vld [vmem:[#allocation5 + $0x18] sm:$0xff] }
  0xfe   :  { %v1104_v11 = vmul.f32 1.2500001, %v1103_v9  ;;  %v1110_v0 = vmul.f32 %v1109_v59, %v1075_v23  ;;  %v1112_v63 = vmul.f32 %v1111_v60, %v1079_v6  ;;  %v1120_v56 = vmul.f32 0.8333333, %v1704_v39  ;;  %v961_v6 = vld [vmem:[#allocation5 + $0x58] sm:$0xff] }
  0xff   :  { %v1108_v14 = vsub.f32 %v1105_v54, %v1107_v52  ;;  %v1116_v15 = vsub.f32 %v1114_v12, %v1115_v61  ;;  %v1119_v17 = vmul.f32 %v1118_v62, %v1083_v4  ;;  %v1123_v18 = vmul.f32 %v1696_v33, %v1087_v49 }
 0x100   :  { %v1113_v20 = vsub.f32 %v1110_v0, %v1112_v63  ;;  %v1121_v57 = vmul.f32 %v1120_v56, %v1087_v49  ;;  %v1124_v16 = vmul.f32 %v1706_v40, %v1091_v50  ;;  %v1127_v32 = vmul.f32 %v1698_v34, %v1091_v50  ;;  %v965_v49 = vld [vmem:[#allocation5 + $0xd8] sm:$0xff] }
 0x101   :  { %v1117_v24 = vmul.f32 0.8333334, %v1116_v15  ;;  %v1128_v5 = vmul.f32 %v1702_v38, %v1096_v53  ;;  %v1131_v23 = vmul.f32 0.8333333, %v1700_v35  ;;  %v1133_v29 = vmul.f32 0.8333334, %v1708_v3 }
 0x102   :  { %v1122_v22 = vsub.f32 %v1119_v17, %v1121_v57  ;;  %v1125_v43 = vsub.f32 %v1123_v18, %v1124_v16  ;;  %v1136_v31 = vmul.f32 %v1704_v39, %v1100_v10  ;;  %v1137_v33 = vmul.f32 %v1712_v42, %v1104_v11  ;;  %v964_v38 = vld [vmem:[#allocation5 + $0xb8] sm:$0xff] }
 0x103   :  { %v1129_v37 = vsub.f32 %v1127_v32, %v1128_v5  ;;  %v1132_v7 = vmul.f32 %v1131_v23, %v1096_v53  ;;  %v1134_v4 = vmul.f32 %v1133_v29, %v1100_v10  ;;  %v1140_v34 = vmul.f32 0.8333334, %v1706_v40  ;;  %v966_v53 = vld [vmem:[#allocation5 + $0xf8] sm:$0xff] }
 0x104   :  { %v1126_v47 = vmul.f32 0.8333333, %v1125_v43  ;;  %v1138_v35 = vsub.f32 %v1136_v31, %v1137_v33  ;;  %v1142_v3 = vmul.f32 0.8333333, %v1714_v36  ;;  %v1145_v48 = vmul.f32 %v1113_v20, %v959_v2 }
 0x105   :  { %v1130_v51 = vmul.f32 0.8333333, %v1129_v37  ;;  %v1135_v46 = vsub.f32 %v1132_v7, %v1134_v4  ;;  %v1141_v39 = vmul.f32 %v1140_v34, %v1104_v11  ;;  %v1146_v8 = vmul.f32 %v1117_v24, %v960_v58 }
 0x106   :  { %v1139_v42 = vmul.f32 0.8333334, %v1138_v35  ;;  %v1143_v50 = vmul.f32 %v1142_v3, %v1108_v14  ;;  %v1148_v54 = vmul.f32 %v1122_v22, %v961_v6  ;;  %v1150_v55 = vmul.f32 %v1126_v47, %v962_v44 }
 0x107   :  { %v1147_v10 = vadd.f32 %v1146_v8, %v1145_v48  ;;  %v1152_v9 = vmul.f32 %v1130_v51, %v963_v45  ;;  %v1154_v40 = vmul.f32 %v1135_v46, %v964_v38  ;;  %v1781_v59 = vadd.f32 -0.20000003, %v1664_v21 }
 0x108   :  { %v1144_v60 = vsub.f32 %v1141_v39, %v1143_v50  ;;  %v1156_v52 = vmul.f32 %v1139_v42, %v965_v49  ;;  %v1784_v36 = vadd.f32 -0.6, %v1664_v21  ;;  %v1787_v12 = vadd.f32 -1.0, %v1664_v21 }
 0x109   :  { %v1149_v61 = vadd.f32 %v1148_v54, %v1147_v10  ;;  %v1790_v62 = vadd.f32 -1.4, %v1664_v21  ;;  %v1793_v11 = vadd.f32 -1.8, %v1664_v21  ;;  %v1796_v0 = vadd.f32 -2.2, %v1664_v21 }
 0x10a   :  { %v1158_v63 = vmul.f32 %v1144_v60, %v966_v53  ;;  %v1305_v14 = vsel %vm778_vm9, 1.0, %v1490_v13  ;;  %v1306_v15 = vsel %vm781_vm10, 1.0, %v1490_v13  ;;  %v1307_v17 = vsel %vm785_vm11, 1.0, %v1490_v13 }
 0x10b   :  { %v1151_v56 = vadd.f32 %v1150_v55, %v1149_v61  ;;  %v784_v18 = vsub.f32 %v1305_v14, %v1306_v15  ;;  %v788_v2 = vsub.f32 %v1306_v15, %v1307_v17  ;;  %vm793_vm13 = vcmp.ge.f32.partialorder %v1664_v21, -0.6 }
 0x10c   :  { %v1308_v57 = vsel %vm789_vm12, 1.0, %v1490_v13  ;;  %v1309_v16 = vsel %vm793_vm13, 1.0, %v1490_v13  ;;  %vm797_vm14 = vcmp.ge.f32.partialorder %v1664_v21, -0.20000002  ;;  %vm801_vm15 = vcmp.ge.f32.partialorder %v1664_v21, 0.20000003 }
 0x10d   :  { %v1153_v20 = vadd.f32 %v1152_v9, %v1151_v56  ;;  %v792_v32 = vsub.f32 %v1307_v17, %v1308_v57  ;;  %v796_v24 = vsub.f32 %v1308_v57, %v1309_v16  ;;  %v1310_v5 = vsel %vm797_vm14, 1.0, %v1490_v13 }
 0x10e   :  { %v800_v29 = vsub.f32 %v1309_v16, %v1310_v5  ;;  %v1311_v58 = vsel %vm801_vm15, 1.0, %v1490_v13  ;;  %vm805_vm0 = vcmp.ge.f32.partialorder %v1664_v21, 0.6  ;;  %vm809_vm1 = vcmp.ge.f32.partialorder %v1664_v21, 1.0 }
 0x10f   :  { %v1155_v23 = vadd.f32 %v1154_v40, %v1153_v20  ;;  %v804_v22 = vsub.f32 %v1310_v5, %v1311_v58  ;;  %v1312_v43 = vsel %vm805_vm0, 1.0, %v1490_v13  ;;  %vm813_vm2 = vcmp.ge.f32.partialorder %v1664_v21, 1.4 }
 0x110   :  { %v808_v33 = vsub.f32 %v1311_v58, %v1312_v43  ;;  %v1313_v6 = vsel %vm809_vm1, 1.0, %v1490_v13  ;;  %v1314_v44 = vsel %vm813_vm2, 1.0, %v1490_v13  ;;  %vm817_vm3 = vcmp.ge.f32.partialorder %v1664_v21, 1.8 }
 0x111   :  { %v1157_v31 = vadd.f32 %v1156_v52, %v1155_v23  ;;  %v812_v37 = vsub.f32 %v1312_v43, %v1313_v6  ;;  %v816_v7 = vsub.f32 %v1313_v6, %v1314_v44  ;;  %vm821_vm4 = vcmp.ge.f32.partialorder %v1664_v21, 2.2 }
 0x112   :  { %v1315_v34 = vsel %vm817_vm3, 1.0, %v1490_v13  ;;  %v1316_v45 = vsel %vm821_vm4, 1.0, %v1490_v13  ;;  %v825_v38 = vmul.f32 2.4999995, %v1670_v25  ;;  %v827_v3 = vmul.f32 2.5000002, %v1676_v27 }
 0x113   :  { %v1159_v4 = vadd.f32 %v1158_v63, %v1157_v31  ;;  %v820_v47 = vsub.f32 %v1314_v44, %v1315_v34  ;;  %v824_v35 = vsub.f32 %v1315_v34, %v1316_v45  ;;  %v830_v48 = vmul.f32 %v1673_v26, %v788_v2 }
 0x114   :  { %v826_v49 = vmul.f32 %v825_v38, %v784_v18  ;;  %v831_v51 = vmul.f32 %v1682_v1, %v792_v32  ;;  %v834_v21 = vmul.f32 %v1676_v27, %v792_v32  ;;  %v838_v46 = vmul.f32 2.5000002, %v1682_v1 }
 0x115   :  { %1183 = vmatpush.msra.mxu1 %v1159_v4  ;;  %1344 = vmatpush.msra.mxu3 %v1159_v4  ;;  %v828_v39 = vmul.f32 %v827_v3, %v788_v2  ;;  %v835_v8 = vmul.f32 %v1685_v30, %v796_v24  ;;  %v840_v42 = vmul.f32 2.5, %v1688_v28  ;;  %v843_v50 = vmul.f32 2.5, %v1685_v30 }
 0x116   :  { %v832_v54 = vsub.f32 %v830_v48, %v831_v51  ;;  %v839_v55 = vmul.f32 %v838_v46, %v796_v24  ;;  %v845_v53 = vmul.f32 2.4999998, %v1781_v59  ;;  %v848_v10 = vmul.f32 2.4999998, %v1688_v28 }
 0x117   :  { %v829_v9 = vsub.f32 %v826_v49, %v828_v39  ;;  %v836_v40 = vsub.f32 %v834_v21, %v835_v8  ;;  %v841_v60 = vmul.f32 %v840_v42, %v800_v29  ;;  %v844_v52 = vmul.f32 %v843_v50, %v800_v29 }
 0x118   :  { %v833_v61 = vmul.f32 2.5000002, %v832_v54  ;;  %v846_v63 = vmul.f32 %v845_v53, %v804_v22  ;;  %v849_v56 = vmul.f32 %v848_v10, %v804_v22  ;;  %v850_v14 = vmul.f32 2.5000002, %v1784_v36 }
 0x119   :  { %v837_v15 = vmul.f32 2.5000002, %v836_v40  ;;  %v842_v17 = vsub.f32 %v839_v55, %v841_v60  ;;  %v853_v18 = vmul.f32 %v1781_v59, %v808_v33  ;;  %v854_v2 = vmul.f32 %v1787_v12, %v812_v37 }
 0x11a   :  { %v847_v20 = vsub.f32 %v844_v52, %v846_v63  ;;  %v851_v57 = vmul.f32 %v850_v14, %v808_v33  ;;  %v857_v16 = vmul.f32 %v1784_v36, %v812_v37  ;;  %v858_v32 = vmul.f32 %v1790_v62, %v816_v7 }
 0x11b   :  { %v855_v24 = vsub.f32 %v853_v18, %v854_v2  ;;  %v861_v5 = vmul.f32 %v1787_v12, %v816_v7  ;;  %v862_v23 = vmul.f32 %v1793_v11, %v820_v47  ;;  %v865_v29 = vmul.f32 2.5000002, %v1790_v62 }
 0x11c   :  { %v852_v58 = vsub.f32 %v849_v56, %v851_v57  ;;  %v859_v22 = vsub.f32 %v857_v16, %v858_v32  ;;  %v867_v43 = vmul.f32 2.4999995, %v1796_v0  ;;  %v870_v31 = vmul.f32 1.2499999, %v1670_v25 }
 0x11d   :  { %v856_v6 = vmul.f32 2.5000002, %v855_v24  ;;  %v863_v44 = vsub.f32 %v861_v5, %v862_v23  ;;  %v866_v33 = vmul.f32 %v865_v29, %v820_v47  ;;  %v872_v37 = vmul.f32 1.2500001, %v1682_v1 }
 0x11e   :  { %v860_v4 = vmul.f32 2.5000002, %v859_v22  ;;  %v868_v34 = vmul.f32 %v867_v43, %v824_v35  ;;  %v871_v45 = vmul.f32 %v870_v31, %v829_v9  ;;  %v875_v7 = vmul.f32 %v1673_v26, %v833_v61 }
 0x11f   :  { %v864_v38 = vmul.f32 2.5000002, %v863_v44  ;;  %v873_v3 = vmul.f32 %v872_v37, %v833_v61  ;;  %v876_v48 = vmul.f32 %v1685_v30, %v837_v15  ;;  %v879_v49 = vmul.f32 %v1676_v27, %v837_v15 }
 0x120   :  { %v869_v51 = vsub.f32 %v866_v33, %v868_v34  ;;  %v880_v21 = vmul.f32 %v1688_v28, %v842_v17  ;;  %v883_v46 = vmul.f32 %v872_v37, %v842_v17  ;;  %v884_v39 = vmul.f32 1.2499999, %v1781_v59 }
 0x121   :  { %v874_v47 = vsub.f32 %v871_v45, %v873_v3  ;;  %v877_v8 = vsub.f32 %v875_v7, %v876_v48  ;;  %v887_v42 = vmul.f32 %v1685_v30, %v847_v20  ;;  %v888_v35 = vmul.f32 %v1784_v36, %v852_v58  ;;  %v758_v45 = vld [vmem:[#allocation5 + $0x10] sm:$0xff] }
 0x122   :  { %v881_v50 = vsub.f32 %v879_v49, %v880_v21  ;;  %v885_v54 = vmul.f32 %v884_v39, %v847_v20  ;;  %v891_v55 = vmul.f32 1.2499999, %v1688_v28  ;;  %v893_v53 = vmul.f32 1.2500001, %v1787_v12  ;;  %v759_v21 = vld [vmem:[#allocation5 + $0x30] sm:$0xff] }
 0x123   :  { %v878_v10 = vmul.f32 1.2500001, %v877_v8  ;;  %v889_v9 = vsub.f32 %v887_v42, %v888_v35  ;;  %v896_v40 = vmul.f32 %v1781_v59, %v856_v6  ;;  %v897_v60 = vmul.f32 %v1790_v62, %v860_v4  ;;  %v761_v42 = vld [vmem:[#allocation5 + $0x70] sm:$0xff] }
 0x124   :  { %v882_v52 = vmul.f32 1.2500001, %v881_v50  ;;  %v886_v61 = vsub.f32 %v883_v46, %v885_v54  ;;  %v892_v63 = vmul.f32 %v891_v55, %v852_v58  ;;  %v894_v56 = vmul.f32 %v893_v53, %v856_v6  ;;  %v762_v35 = vld [vmem:[#allocation5 + $0x90] sm:$0xff] }
 0x125   :  { %v890_v14 = vmul.f32 1.2499999, %v889_v9  ;;  %v898_v15 = vsub.f32 %v896_v40, %v897_v60  ;;  %v900_v17 = vmul.f32 %v1784_v36, %v860_v4  ;;  %v901_v18 = vmul.f32 %v1793_v11, %v864_v38  ;;  %v763_v55 = vld [vmem:[#allocation5 + $0xb0] sm:$0xff] }
 0x126   :  { %v895_v2 = vsub.f32 %v892_v63, %v894_v56  ;;  %v904_v20 = vmul.f32 %v893_v53, %v864_v38  ;;  %v905_v57 = vmul.f32 1.2499999, %v1796_v0  ;;  %v908_v16 = vmul.f32 0.8333333, %v1670_v25  ;;  %v764_v9 = vld [vmem:[#allocation5 + $0xd0] sm:$0xff] }
 0x127   :  { %v899_v32 = vmul.f32 1.2500001, %v898_v15  ;;  %v902_v24 = vsub.f32 %v900_v17, %v901_v18  ;;  %v910_v5 = vmul.f32 0.8333334, %v1685_v30  ;;  %v913_v23 = vmul.f32 %v1673_v26, %v878_v10 }
 0x128   :  { %v906_v29 = vmul.f32 %v905_v57, %v869_v51  ;;  %v909_v58 = vmul.f32 %v908_v16, %v874_v47  ;;  %v914_v22 = vmul.f32 %v1688_v28, %v882_v52  ;;  %v917_v43 = vmul.f32 0.8333334, %v1676_v27 }
 0x129   :  { %v903_v31 = vmul.f32 1.2500001, %v902_v24  ;;  %v911_v6 = vmul.f32 %v910_v5, %v878_v10  ;;  %v919_v44 = vmul.f32 0.8333333, %v1781_v59  ;;  %v922_v33 = vmul.f32 %v1682_v1, %v886_v61  ;;  %v760_v1 = vld [vmem:[#allocation5 + $0x50] sm:$0xff] }
 0x12a   :  { %v907_v37 = vsub.f32 %v904_v20, %v906_v29  ;;  %v915_v25 = vsub.f32 %v913_v23, %v914_v22  ;;  %v918_v4 = vmul.f32 %v917_v43, %v882_v52  ;;  %v923_v34 = vmul.f32 %v1784_v36, %v890_v14 }
 0x12b   :  { %v912_v7 = vsub.f32 %v909_v58, %v911_v6  ;;  %v920_v26 = vmul.f32 %v919_v44, %v886_v61  ;;  %v926_v38 = vmul.f32 %v1685_v30, %v890_v14  ;;  %v927_v3 = vmul.f32 %v1787_v12, %v895_v2  ;;  %v765_v14 = vld [vmem:[#allocation5 + $0xf0] sm:$0xff] }
 0x12c   :  { %v916_v48 = vmul.f32 0.8333334, %v915_v25  ;;  %v924_v27 = vsub.f32 %v922_v33, %v923_v34  ;;  %v930_v49 = vmul.f32 0.8333333, %v1688_v28  ;;  %v932_v51 = vmul.f32 0.8333334, %v1790_v62 }
 0x12d   :  { %v921_v46 = vsub.f32 %v918_v4, %v920_v26  ;;  %v928_v39 = vsub.f32 %v926_v38, %v927_v3  ;;  %v935_v47 = vmul.f32 %v1781_v59, %v899_v32  ;;  %v936_v8 = vmul.f32 %v1793_v11, %v903_v31 }
 0x12e   :  { %v925_v50 = vmul.f32 0.8333333, %v924_v27  ;;  %v931_v30 = vmul.f32 %v930_v49, %v895_v2  ;;  %v933_v54 = vmul.f32 %v932_v51, %v899_v32  ;;  %v939_v12 = vmul.f32 0.8333334, %v1784_v36 }
 0x12f   :  { %v929_v53 = vmul.f32 0.8333333, %v928_v39  ;;  %v937_v28 = vsub.f32 %v935_v47, %v936_v8  ;;  %v941_v62 = vmul.f32 0.8333333, %v1796_v0  ;;  %v944_v10 = vmul.f32 %v912_v7, %v758_v45 }
 0x130   :  { %v934_v40 = vsub.f32 %v931_v30, %v933_v54  ;;  %v940_v60 = vmul.f32 %v939_v12, %v903_v31  ;;  %v945_v52 = vmul.f32 %v916_v48, %v759_v21  ;;  %v947_v59 = vmul.f32 %v921_v46, %v760_v1 }
 0x131   :  { %v938_v61 = vmul.f32 0.8333334, %v937_v28  ;;  %v942_v11 = vmul.f32 %v941_v62, %v907_v37  ;;  %v949_v63 = vmul.f32 %v925_v50, %v761_v42  ;;  %v951_v56 = vmul.f32 %v929_v53, %v762_v35 }
 0x132   :  { %v946_v15 = vadd.f32 %v945_v52, %v944_v10  ;;  %v953_v17 = vmul.f32 %v934_v40, %v763_v55  ;;  %v1875_v36 = vadd.f32 2.2, %v1710_v41  ;;  %v1878_v18 = vadd.f32 1.8, %v1710_v41 }
 0x133   :  { %v943_v0 = vsub.f32 %v940_v60, %v942_v11  ;;  %v955_v2 = vmul.f32 %v938_v61, %v764_v9  ;;  %v1881_v20 = vadd.f32 1.4, %v1710_v41  ;;  %v1884_v57 = vadd.f32 1.0, %v1710_v41 }
 0x134   :  { %v948_v16 = vadd.f32 %v947_v59, %v946_v15  ;;  %v1887_v32 = vadd.f32 0.6, %v1710_v41  ;;  %v1890_v24 = vadd.f32 0.20000002, %v1710_v41  ;;  %v1893_v5 = vadd.f32 -0.20000003, %v1710_v41 }
 0x135   :  { %v957_v23 = vmul.f32 %v943_v0, %v765_v14  ;;  %v1896_v29 = vadd.f32 -0.6, %v1710_v41  ;;  %v1899_v58 = vadd.f32 -1.0, %v1710_v41  ;;  %v1902_v22 = vadd.f32 -1.4, %v1710_v41 }
 0x136   :  { %v950_v43 = vadd.f32 %v949_v63, %v948_v16  ;;  %v1905_v31 = vadd.f32 -1.8, %v1710_v41  ;;  %v1908_v6 = vadd.f32 -2.2, %v1710_v41  ;;  %vm577_vm5 = vcmp.ge.f32.partialorder %v1710_v41, -2.2 }
 0x137   :  { %v1281_v44 = vsel %vm577_vm5, 1.0, %v1490_v13  ;;  %vm580_vm6 = vcmp.ge.f32.partialorder %v1710_v41, -1.8  ;;  %vm584_vm7 = vcmp.ge.f32.partialorder %v1710_v41, -1.4  ;;  %vm588_vm8 = vcmp.ge.f32.partialorder %v1710_v41, -1.0 }
 0x138   :  { %v952_v33 = vadd.f32 %v951_v56, %v950_v43  ;;  %v1282_v37 = vsel %vm580_vm6, 1.0, %v1490_v13  ;;  %v1283_v25 = vsel %vm584_vm7, 1.0, %v1490_v13  ;;  %v1284_v4 = vsel %vm588_vm8, 1.0, %v1490_v13 }
 0x139   :  { %v583_v34 = vsub.f32 %v1281_v44, %v1282_v37  ;;  %v587_v45 = vsub.f32 %v1282_v37, %v1283_v25  ;;  %v591_v7 = vsub.f32 %v1283_v25, %v1284_v4  ;;  %vm592_vm9 = vcmp.ge.f32.partialorder %v1710_v41, -0.6 }
 0x13a   :  { %v954_v26 = vadd.f32 %v953_v17, %v952_v33  ;;  %v1285_v38 = vsel %vm592_vm9, 1.0, %v1490_v13  ;;  %vm596_vm10 = vcmp.ge.f32.partialorder %v1710_v41, -0.20000002  ;;  %vm600_vm11 = vcmp.ge.f32.partialorder %v1710_v41, 0.20000003 }
 0x13b   :  { %v595_v3 = vsub.f32 %v1284_v4, %v1285_v38  ;;  %v1286_v48 = vsel %vm596_vm10, 1.0, %v1490_v13  ;;  %v1287_v27 = vsel %vm600_vm11, 1.0, %v1490_v13  ;;  %vm604_vm12 = vcmp.ge.f32.partialorder %v1710_v41, 0.6 }
 0x13c   :  { %v956_v49 = vadd.f32 %v955_v2, %v954_v26  ;;  %v599_v51 = vsub.f32 %v1285_v38, %v1286_v48  ;;  %v603_v21 = vsub.f32 %v1286_v48, %v1287_v27  ;;  %v1288_v1 = vsel %vm604_vm12, 1.0, %v1490_v13 }
 0x13d   :  { %v607_v46 = vsub.f32 %v1287_v27, %v1288_v1  ;;  %vm608_vm13 = vcmp.ge.f32.partialorder %v1710_v41, 1.0  ;;  %vm612_vm14 = vcmp.ge.f32.partialorder %v1710_v41, 1.4  ;;  %vm616_vm15 = vcmp.ge.f32.partialorder %v1710_v41, 1.8 }
 0x13e   :  { %v958_v39 = vadd.f32 %v957_v23, %v956_v49  ;;  %v1289_v47 = vsel %vm608_vm13, 1.0, %v1490_v13  ;;  %v1290_v8 = vsel %vm612_vm14, 1.0, %v1490_v13  ;;  %v1291_v42 = vsel %vm616_vm15, 1.0, %v1490_v13 }
 0x13f   :  { %v611_v35 = vsub.f32 %v1288_v1, %v1289_v47  ;;  %v615_v50 = vsub.f32 %v1289_v47, %v1290_v8  ;;  %v619_v30 = vsub.f32 %v1290_v8, %v1291_v42  ;;  %vm620_vm0 = vcmp.ge.f32.partialorder %v1710_v41, 2.2 }
 0x140   :  { %1184 = vmatpush.msra.mxu1 %v958_v39  ;;  %1345 = vmatpush.msra.mxu3 %v958_v39  ;;  %v1292_v54 = vsel %vm620_vm0, 1.0, %v1490_v13  ;;  %v624_v12 = vmul.f32 2.4999995, %v1875_v36  ;;  %v626_v55 = vmul.f32 2.5000002, %v1881_v20  ;;  %v629_v53 = vmul.f32 %v1878_v18, %v587_v45 }
 0x141   :  { %v623_v28 = vsub.f32 %v1291_v42, %v1292_v54  ;;  %v630_v62 = vmul.f32 %v1884_v57, %v591_v7  ;;  %v633_v10 = vmul.f32 %v1881_v20, %v591_v7  ;;  %v634_v9 = vmul.f32 %v1887_v32, %v595_v3 }
 0x142   :  { %v625_v40 = vmul.f32 %v624_v12, %v583_v34  ;;  %v627_v60 = vmul.f32 %v626_v55, %v587_v45  ;;  %v637_v41 = vmul.f32 2.5000002, %v1884_v57  ;;  %v639_v52 = vmul.f32 2.5, %v1890_v24 }
 0x143   :  { %v631_v59 = vsub.f32 %v629_v53, %v630_v62  ;;  %v635_v61 = vsub.f32 %v633_v10, %v634_v9  ;;  %v642_v11 = vmul.f32 2.5, %v1887_v32  ;;  %v644_v63 = vmul.f32 2.4999998, %v1893_v5 }
 0x144   :  { %v628_v56 = vsub.f32 %v625_v40, %v627_v60  ;;  %v638_v14 = vmul.f32 %v637_v41, %v595_v3  ;;  %v640_v15 = vmul.f32 %v639_v52, %v599_v51  ;;  %v647_v17 = vmul.f32 2.4999998, %v1890_v24 }
 0x145   :  { %v632_v0 = vmul.f32 2.5000002, %v631_v59  ;;  %v636_v2 = vmul.f32 2.5000002, %v635_v61  ;;  %v643_v16 = vmul.f32 %v642_v11, %v599_v51  ;;  %v645_v23 = vmul.f32 %v644_v63, %v603_v21 }
 0x146   :  { %v641_v43 = vsub.f32 %v638_v14, %v640_v15  ;;  %v648_v44 = vmul.f32 %v647_v17, %v603_v21  ;;  %v649_v33 = vmul.f32 2.5000002, %v1896_v29  ;;  %v652_v37 = vmul.f32 %v1893_v5, %v607_v46 }
 0x147   :  { %v646_v25 = vsub.f32 %v643_v16, %v645_v23  ;;  %v653_v4 = vmul.f32 %v1899_v58, %v611_v35  ;;  %v656_v34 = vmul.f32 %v1896_v29, %v611_v35  ;;  %v657_v45 = vmul.f32 %v1902_v22, %v615_v50 }
 0x148   :  { %v650_v7 = vmul.f32 %v649_v33, %v607_v46  ;;  %v660_v26 = vmul.f32 %v1899_v58, %v615_v50  ;;  %v661_v38 = vmul.f32 %v1905_v31, %v619_v30  ;;  %v664_v3 = vmul.f32 2.5000002, %v1902_v22 }
 0x149   :  { %v654_v48 = vsub.f32 %v652_v37, %v653_v4  ;;  %v658_v27 = vsub.f32 %v656_v34, %v657_v45  ;;  %v666_v49 = vmul.f32 2.4999995, %v1908_v6  ;;  %v669_v51 = vmul.f32 1.2499999, %v1875_v36 }
 0x14a   :  { %v651_v21 = vsub.f32 %v648_v44, %v650_v7  ;;  %v662_v1 = vsub.f32 %v660_v26, %v661_v38  ;;  %v665_v39 = vmul.f32 %v664_v3, %v619_v30  ;;  %v671_v47 = vmul.f32 1.2500001, %v1884_v57 }
 0x14b   :  { %v655_v8 = vmul.f32 2.5000002, %v654_v48  ;;  %v659_v42 = vmul.f32 2.5000002, %v658_v27  ;;  %v667_v46 = vmul.f32 %v666_v49, %v623_v28  ;;  %v670_v35 = vmul.f32 %v669_v51, %v628_v56 }
 0x14c   :  { %v663_v50 = vmul.f32 2.5000002, %v662_v1  ;;  %v672_v54 = vmul.f32 %v671_v47, %v632_v0  ;;  %v674_v12 = vmul.f32 %v1878_v18, %v632_v0  ;;  %v675_v55 = vmul.f32 %v1887_v32, %v636_v2 }
 0x14d   :  { %v668_v53 = vsub.f32 %v665_v39, %v667_v46  ;;  %v678_v62 = vmul.f32 %v1881_v20, %v636_v2  ;;  %v679_v10 = vmul.f32 %v1890_v24, %v641_v43  ;;  %v682_v9 = vmul.f32 %v671_v47, %v641_v43 }
 0x14e   :  { %v673_v40 = vsub.f32 %v670_v35, %v672_v54  ;;  %v676_v30 = vsub.f32 %v674_v12, %v675_v55  ;;  %v683_v60 = vmul.f32 1.2499999, %v1893_v5  ;;  %v686_v41 = vmul.f32 %v1887_v32, %v646_v25 }
 0x14f   :  { %v680_v28 = vsub.f32 %v678_v62, %v679_v10  ;;  %v687_v52 = vmul.f32 %v1896_v29, %v651_v21  ;;  %v690_v59 = vmul.f32 1.2499999, %v1890_v24  ;;  %v692_v61 = vmul.f32 1.2500001, %v1899_v58 }
 0x150   :  { %v677_v11 = vmul.f32 1.2500001, %v676_v30  ;;  %v684_v63 = vmul.f32 %v683_v60, %v646_v25  ;;  %v695_v56 = vmul.f32 %v1893_v5, %v655_v8  ;;  %v696_v14 = vmul.f32 %v1902_v22, %v659_v42 }
 0x151   :  { %v681_v15 = vmul.f32 1.2500001, %v680_v28  ;;  %v688_v17 = vsub.f32 %v686_v41, %v687_v52  ;;  %v691_v0 = vmul.f32 %v690_v59, %v651_v21  ;;  %v693_v2 = vmul.f32 %v692_v61, %v655_v8  ;;  %v559_v41 = vld [vmem:[#allocation5 + $0x48] sm:$0xff] }
 0x152   :  { %v685_v16 = vsub.f32 %v682_v9, %v684_v63  ;;  %v697_v23 = vsub.f32 %v695_v56, %v696_v14  ;;  %v699_v43 = vmul.f32 %v1896_v29, %v659_v42  ;;  %v700_v44 = vmul.f32 %v1905_v31, %v663_v50  ;;  %v560_v59 = vld [vmem:[#allocation5 + $0x68] sm:$0xff] }
 0x153   :  { %v689_v33 = vmul.f32 1.2499999, %v688_v17  ;;  %v694_v37 = vsub.f32 %v691_v0, %v693_v2  ;;  %v703_v4 = vmul.f32 %v692_v61, %v663_v50  ;;  %v704_v34 = vmul.f32 1.2499999, %v1908_v6  ;;  %v561_v61 = vld [vmem:[#allocation5 + $0x88] sm:$0xff] }
 0x154   :  { %v698_v25 = vmul.f32 1.2500001, %v697_v23  ;;  %v701_v45 = vsub.f32 %v699_v43, %v700_v44  ;;  %v707_v7 = vmul.f32 0.8333333, %v1875_v36  ;;  %v709_v26 = vmul.f32 0.8333334, %v1887_v32 }
 0x155   :  { %v705_v38 = vmul.f32 %v704_v34, %v668_v53  ;;  %v712_v3 = vmul.f32 %v1878_v18, %v677_v11  ;;  %v713_v48 = vmul.f32 %v1890_v24, %v681_v15  ;;  %v716_v27 = vmul.f32 0.8333334, %v1881_v20  ;;  %v557_v36 = vld [vmem:[#allocation5 + $0x8] sm:$0xff] }
 0x156   :  { %v702_v49 = vmul.f32 1.2500001, %v701_v45  ;;  %v708_v51 = vmul.f32 %v707_v7, %v673_v40  ;;  %v710_v21 = vmul.f32 %v709_v26, %v677_v11  ;;  %v718_v1 = vmul.f32 0.8333333, %v1893_v5  ;;  %v558_v53 = vld [vmem:[#allocation5 + $0x28] sm:$0xff]  ;;  %v303_v40 = vld [vmem:[%s2120_s3] sm:$0xff] }
 0x157   :  { %v706_v39 = vsub.f32 %v703_v4, %v705_v38  ;;  %v714_v47 = vsub.f32 %v712_v3, %v713_v48  ;;  %v717_v8 = vmul.f32 %v716_v27, %v681_v15  ;;  %v721_v42 = vmul.f32 %v1884_v57, %v685_v16  ;;  %v563_v0 = vld [vmem:[#allocation5 + $0xc8] sm:$0xff]  ;;  %s1491_s3 = smov [#allocation10]  }
 0x158   :  { %v711_v46 = vsub.f32 %v708_v51, %v710_v21  ;;  %v719_v35 = vmul.f32 %v718_v1, %v685_v16  ;;  %v722_v50 = vmul.f32 %v1896_v29, %v689_v33  ;;  %v725_v18 = vmul.f32 %v1887_v32, %v689_v33  ;;  %v564_v16 = vld [vmem:[#allocation5 + $0xe8] sm:$0xff]  ;;  %s1200_s14 = sshll.u32 %s1491_s3, 4  ;;  %s1201_s14 = int_to_ptr.vmem [resolvable:$true] %s1200_s14 }
 0x159   :  { %v715_v54 = vmul.f32 0.8333334, %v714_v47  ;;  %v726_v20 = vmul.f32 %v1899_v58, %v694_v37  ;;  %v729_v12 = vmul.f32 0.8333333, %v1890_v24  ;;  %v731_v55 = vmul.f32 0.8333334, %v1902_v22 }
 0x15a   :  { %v720_v62 = vsub.f32 %v717_v8, %v719_v35  ;;  %v723_v10 = vsub.f32 %v721_v42, %v722_v50  ;;  %v734_v9 = vmul.f32 %v1893_v5, %v698_v25  ;;  %v735_v57 = vmul.f32 %v1905_v31, %v702_v49  ;;  %v562_v5 = vld [vmem:[#allocation5 + $0xa8] sm:$0xff] }
 0x15b   :  { %v727_v30 = vsub.f32 %v725_v18, %v726_v20  ;;  %v730_v32 = vmul.f32 %v729_v12, %v694_v37  ;;  %v732_v60 = vmul.f32 %v731_v55, %v698_v25  ;;  %v738_v58 = vmul.f32 0.8333334, %v1896_v29 }
 0x15c   :  { %v724_v24 = vmul.f32 0.8333333, %v723_v10  ;;  %v736_v28 = vsub.f32 %v734_v9, %v735_v57  ;;  %v740_v22 = vmul.f32 0.8333333, %v1908_v6  ;;  %v743_v52 = vmul.f32 %v711_v46, %v557_v36 }
 0x15d   :  { %v728_v11 = vmul.f32 0.8333333, %v727_v30  ;;  %v733_v31 = vsub.f32 %v730_v32, %v732_v60  ;;  %v739_v63 = vmul.f32 %v738_v58, %v702_v49  ;;  %v744_v56 = vmul.f32 %v715_v54, %v558_v53 }
 0x15e   :  { %v1990_v14 = vadd.f32 %v1659_v19, %v303_v40  ;;  %v737_v15 = vmul.f32 0.8333334, %v736_v28  ;;  %v741_v17 = vmul.f32 %v740_v22, %v706_v39  ;;  %v746_v2 = vmul.f32 %v720_v62, %v559_v41 }
 0x15f   :  { %v745_v29 = vadd.f32 %v744_v56, %v743_v52  ;;  %v748_v43 = vmul.f32 %v724_v24, %v560_v59  ;;  %v750_v6 = vmul.f32 %v728_v11, %v561_v61  ;;  %v752_v44 = vmul.f32 %v733_v31, %v562_v5 }
 0x160   :  { %v742_v23 = vsub.f32 %v739_v63, %v741_v17  ;;  %v1993_v37 = vadd.f32 2.2, %v1990_v14  ;;  %v1996_v4 = vadd.f32 1.8, %v1990_v14  ;;  %v1999_v19 = vadd.f32 1.4, %v1990_v14 }
 0x161   :  { %v747_v33 = vadd.f32 %v746_v2, %v745_v29  ;;  %v754_v34 = vmul.f32 %v737_v15, %v563_v0  ;;  %v2002_v25 = vadd.f32 1.0, %v1990_v14  ;;  %v2005_v45 = vadd.f32 0.6, %v1990_v14 }
 0x162   :  { %v2008_v7 = vadd.f32 0.20000002, %v1990_v14  ;;  %v2011_v38 = vadd.f32 -0.20000003, %v1990_v14  ;;  %v2014_v3 = vadd.f32 -0.6, %v1990_v14  ;;  %v756_v27 = vmul.f32 %v742_v23, %v564_v16 }
 0x163   :  { %v749_v26 = vadd.f32 %v748_v43, %v747_v33  ;;  %v2017_v48 = vadd.f32 -1.0, %v1990_v14  ;;  %vm376_vm1 = vcmp.ge.f32.partialorder %v1990_v14, -2.2  ;;  %vm379_vm2 = vcmp.ge.f32.partialorder %v1990_v14, -1.8 }
 0x164   :  { %vm383_vm3 = vcmp.ge.f32.partialorder %v1990_v14, -1.4  ;;  %v2023_v51 = vadd.f32 -1.4, %v1990_v14  ;;  %v2026_v21 = vadd.f32 -1.8, %v1990_v14 }
 0x165   :  { %v751_v49 = vadd.f32 %v750_v6, %v749_v26  ;;  %v1257_v1 = vsel %vm376_vm1, 1.0, %v1490_v13  ;;  %v1258_v39 = vsel %vm379_vm2, 1.0, %v1490_v13  ;;  %v1259_v47 = vsel %vm383_vm3, 1.0, %v1490_v13 }
 0x166   :  { %vm387_vm4 = vcmp.ge.f32.partialorder %v1990_v14, -1.0  ;;  %vm391_vm5 = vcmp.ge.f32.partialorder %v1990_v14, -0.6  ;;  %v2034_v42 = vadd.f32 -2.2, %v1990_v14  ;;  %v382_v46 = vsub.f32 %v1257_v1, %v1258_v39 }
 0x167   :  { %v753_v8 = vadd.f32 %v752_v44, %v751_v49  ;;  %v1260_v36 = vsel %vm387_vm4, 1.0, %v1490_v13  ;;  %vm395_vm6 = vcmp.ge.f32.partialorder %v1990_v14, -0.20000002  ;;  %v1261_v35 = vsel %vm391_vm5, 1.0, %v1490_v13 }
 0x168   :  { %v1262_v50 = vsel %vm395_vm6, 1.0, %v1490_v13  ;;  %vm399_vm7 = vcmp.ge.f32.partialorder %v1990_v14, 0.20000003  ;;  %v386_v54 = vsub.f32 %v1258_v39, %v1259_v47  ;;  %vm403_vm8 = vcmp.ge.f32.partialorder %v1990_v14, 0.6 }
 0x169   :  { %v755_v18 = vadd.f32 %v754_v34, %v753_v8  ;;  %v1263_v20 = vsel %vm399_vm7, 1.0, %v1490_v13  ;;  %v390_v12 = vsub.f32 %v1259_v47, %v1260_v36  ;;  %v1264_v55 = vsel %vm403_vm8, 1.0, %v1490_v13 }
 0x16a   :  { %vm407_vm9 = vcmp.ge.f32.partialorder %v1990_v14, 1.0  ;;  %vm411_vm10 = vcmp.ge.f32.partialorder %v1990_v14, 1.4  ;;  %v394_v62 = vsub.f32 %v1260_v36, %v1261_v35  ;;  %v398_v10 = vsub.f32 %v1261_v35, %v1262_v50 }
 0x16b   :  { %v757_v53 = vadd.f32 %v756_v27, %v755_v18  ;;  %v1265_v9 = vsel %vm407_vm9, 1.0, %v1490_v13  ;;  %v402_v57 = vsub.f32 %v1262_v50, %v1263_v20  ;;  %v406_v40 = vsub.f32 %v1263_v20, %v1264_v55 }
 0x16c   :  { %vm415_vm11 = vcmp.ge.f32.partialorder %v1990_v14, 1.8  ;;  %vm419_vm12 = vcmp.ge.f32.partialorder %v1990_v14, 2.2  ;;  %v410_v30 = vsub.f32 %v1264_v55, %v1265_v9  ;;  %v1266_v32 = vsel %vm411_vm10, 1.0, %v1490_v13 }
 0x16d   :  { %1185 = vmatpush.msra.mxu1 %v757_v53  ;;  %1346 = vmatpush.msra.mxu3 %v757_v53  ;;  %v423_v60 = vmul.f32 2.4999995, %v1993_v37  ;;  %v425_v58 = vmul.f32 2.5000002, %v1999_v19  ;;  %v2053_v41 = vsel %vm415_vm11, 1.0, %v1490_v13  ;;  %v2056_v24 = vsel %vm419_vm12, 1.0, %v1490_v13 }
 0x16e   :  { %v428_v28 = vmul.f32 %v1996_v4, %v386_v54  ;;  %v429_v22 = vmul.f32 %v2002_v25, %v390_v12  ;;  %v432_v61 = vmul.f32 %v1999_v19, %v390_v12  ;;  %v433_v5 = vmul.f32 %v2005_v45, %v394_v62 }
 0x16f   :  { %v424_v52 = vmul.f32 %v423_v60, %v382_v46  ;;  %v426_v59 = vmul.f32 %v425_v58, %v386_v54  ;;  %v414_v11 = vsub.f32 %v1265_v9, %v1266_v32  ;;  %v436_v31 = vmul.f32 2.5000002, %v2002_v25 }
 0x170   :  { %v438_v63 = vmul.f32 2.5, %v2008_v7  ;;  %v441_v56 = vmul.f32 2.5, %v2005_v45  ;;  %v418_v13 = vsub.f32 %v1266_v32, %v2053_v41  ;;  %v430_v14 = vsub.f32 %v428_v28, %v429_v22 }
 0x171   :  { %v443_v15 = vmul.f32 2.4999998, %v2011_v38  ;;  %v446_v17 = vmul.f32 2.4999998, %v2008_v7  ;;  %v422_v0 = vsub.f32 %v2053_v41, %v2056_v24  ;;  %v427_v29 = vsub.f32 %v424_v52, %v426_v59 }
 0x172   :  { %v434_v2 = vsub.f32 %v432_v61, %v433_v5  ;;  %v437_v16 = vmul.f32 %v436_v31, %v394_v62  ;;  %v439_v23 = vmul.f32 %v438_v63, %v398_v10  ;;  %v442_v43 = vmul.f32 %v441_v56, %v398_v10 }
 0x173   :  { %v444_v6 = vmul.f32 %v443_v15, %v402_v57  ;;  %v448_v44 = vmul.f32 2.5000002, %v2014_v3  ;;  %v447_v33 = vmul.f32 %v446_v17, %v402_v57  ;;  %v451_v34 = vmul.f32 %v2011_v38, %v406_v40 }
 0x174   :  { %v452_v26 = vmul.f32 %v2017_v48, %v410_v30  ;;  %v455_v27 = vmul.f32 %v2014_v3, %v410_v30  ;;  %v431_v49 = vmul.f32 2.5000002, %v430_v14  ;;  %v456_v39 = vmul.f32 %v2023_v51, %v414_v11 }
 0x175   :  { %v449_v1 = vmul.f32 %v448_v44, %v406_v40  ;;  %v459_v47 = vmul.f32 %v2017_v48, %v414_v11  ;;  %v435_v8 = vmul.f32 2.5000002, %v434_v2  ;;  %v460_v46 = vmul.f32 %v2026_v21, %v418_v13 }
 0x176   :  { %v453_v36 = vsub.f32 %v451_v34, %v452_v26  ;;  %v463_v35 = vmul.f32 2.5000002, %v2023_v51  ;;  %v440_v50 = vsub.f32 %v437_v16, %v439_v23  ;;  %v457_v18 = vsub.f32 %v455_v27, %v456_v39 }
 0x177   :  { %v468_v54 = vmul.f32 1.2499999, %v1993_v37  ;;  %v470_v20 = vmul.f32 1.2500001, %v2002_v25  ;;  %v445_v12 = vsub.f32 %v442_v43, %v444_v6  ;;  %v450_v55 = vsub.f32 %v447_v33, %v449_v1 }
 0x178   :  { %v461_v53 = vsub.f32 %v459_v47, %v460_v46  ;;  %v465_v62 = vmul.f32 2.4999995, %v2034_v42  ;;  %v454_v10 = vmul.f32 2.5000002, %v453_v36  ;;  %v458_v9 = vmul.f32 2.5000002, %v457_v18 }
 0x179   :  { %v464_v57 = vmul.f32 %v463_v35, %v418_v13  ;;  %v473_v40 = vmul.f32 %v1996_v4, %v431_v49  ;;  %v469_v30 = vmul.f32 %v468_v54, %v427_v29  ;;  %v471_v32 = vmul.f32 %v470_v20, %v431_v49 }
 0x17a   :  { %v474_v60 = vmul.f32 %v2005_v45, %v435_v8  ;;  %v477_v58 = vmul.f32 %v1999_v19, %v435_v8  ;;  %v462_v41 = vmul.f32 2.5000002, %v461_v53  ;;  %v478_v24 = vmul.f32 %v2008_v7, %v440_v50 }
 0x17b   :  { %v481_v28 = vmul.f32 %v470_v20, %v440_v50  ;;  %v482_v22 = vmul.f32 1.2499999, %v2011_v38  ;;  %v485_v59 = vmul.f32 %v2005_v45, %v445_v12  ;;  %v486_v61 = vmul.f32 %v2014_v3, %v450_v55 }
 0x17c   :  { %v475_v52 = vsub.f32 %v473_v40, %v474_v60  ;;  %v489_v5 = vmul.f32 1.2499999, %v2008_v7  ;;  %v479_v11 = vsub.f32 %v477_v58, %v478_v24  ;;  %v491_v63 = vmul.f32 1.2500001, %v2017_v48  ;;  %v351_v40 = vld [vmem:[#allocation5 + $0x20] sm:$0xff] }
 0x17d   :  { %v483_v31 = vmul.f32 %v482_v22, %v445_v12  ;;  %v494_v56 = vmul.f32 %v2011_v38, %v454_v10  ;;  %v487_v14 = vsub.f32 %v485_v59, %v486_v61  ;;  %v495_v17 = vmul.f32 %v2023_v51, %v458_v9  ;;  %v353_v22 = vld [vmem:[#allocation5 + $0x40] sm:$0xff] }
 0x17e   :  { %v476_v13 = vmul.f32 1.2500001, %v475_v52  ;;  %v490_v15 = vmul.f32 %v489_v5, %v450_v55  ;;  %v466_v29 = vmul.f32 %v465_v62, %v422_v0  ;;  %v480_v2 = vmul.f32 1.2500001, %v479_v11  ;;  %v355_v5 = vld [vmem:[#allocation5 + $0x60] sm:$0xff] }
 0x17f   :  { %v492_v16 = vmul.f32 %v491_v63, %v454_v10  ;;  %v498_v23 = vmul.f32 %v2014_v3, %v458_v9  ;;  %v472_v43 = vsub.f32 %v469_v30, %v471_v32  ;;  %v496_v6 = vsub.f32 %v494_v56, %v495_v17 }
 0x180   :  { %v499_v44 = vmul.f32 %v2026_v21, %v462_v41  ;;  %v484_v33 = vsub.f32 %v481_v28, %v483_v31  ;;  %v488_v34 = vmul.f32 1.2499999, %v487_v14  ;;  %v506_v26 = vmul.f32 0.8333333, %v1993_v37  ;;  %v357_v14 = vld [vmem:[#allocation5 + $0x80] sm:$0xff] }
 0x181   :  { %v508_v27 = vmul.f32 0.8333334, %v2005_v45  ;;  %v493_v49 = vsub.f32 %v490_v15, %v492_v16  ;;  %v511_v39 = vmul.f32 %v1996_v4, %v476_v13  ;;  %v512_v0 = vmul.f32 %v2008_v7, %v480_v2 }
 0x182   :  { %v500_v1 = vsub.f32 %v498_v23, %v499_v44  ;;  %v467_v47 = vsub.f32 %v464_v57, %v466_v29  ;;  %v503_v8 = vmul.f32 1.2499999, %v2034_v42  ;;  %v515_v46 = vmul.f32 0.8333334, %v1999_v19  ;;  %v349_v19 = vld [vmem:[#allocation5] sm:$0xff] }
 0x183   :  { %v509_v36 = vmul.f32 %v508_v27, %v476_v13  ;;  %v497_v35 = vmul.f32 1.2500001, %v496_v6  ;;  %v507_v50 = vmul.f32 %v506_v26, %v472_v43  ;;  %v513_v18 = vsub.f32 %v511_v39, %v512_v0  ;;  %v359_v29 = vld [vmem:[#allocation5 + $0xa0] sm:$0xff]  ;;  %v1161_v39 = vld [vmem:[#allocation7 + $0x8] sm:$0xff] }
 0x184   :  { %v517_v54 = vmul.f32 0.8333333, %v2011_v38  ;;  %v501_v37 = vmul.f32 1.2500001, %v500_v1  ;;  %v516_v20 = vmul.f32 %v515_v46, %v480_v2  ;;  %v520_v12 = vmul.f32 %v2002_v25, %v484_v33  ;;  %v361_v6 = vld [vmem:[#allocation5 + $0xc0] sm:$0xff]  ;;  %v1163_v46 = vld [vmem:[#allocation8 + $0x8] sm:$0xff] }
 0x185   :  { %v521_v55 = vmul.f32 %v2014_v3, %v488_v34  ;;  %v524_v4 = vmul.f32 %v2005_v45, %v488_v34  ;;  %v525_v53 = vmul.f32 %v2017_v48, %v493_v49  ;;  %v510_v62 = vsub.f32 %v507_v50, %v509_v36  ;;  %v363_v34 = vld [vmem:[#allocation5 + $0xe0] sm:$0xff] }
 0x186   :  { %v514_v10 = vmul.f32 0.8333334, %v513_v18  ;;  %v518_v9 = vmul.f32 %v517_v54, %v484_v33  ;;  %v502_v30 = vmul.f32 %v491_v63, %v462_v41  ;;  %v504_v32 = vmul.f32 %v503_v8, %v467_v47  ;;  %v1160_v0 = vld [vmem:[#allocation7] sm:$0xff]  ;;  %v1162_v47 = vld [vmem:[#allocation8] sm:$0xff] }
 0x187   :  { %v522_v57 = vsub.f32 %v520_v12, %v521_v55  ;;  %v528_v60 = vmul.f32 0.8333333, %v2008_v7  ;;  %v530_v58 = vmul.f32 0.8333334, %v2023_v51  ;;  %v526_v25 = vsub.f32 %v524_v4, %v525_v53 }
 0x188   :  { %v519_v24 = vsub.f32 %v516_v20, %v518_v9  ;;  %v533_v28 = vmul.f32 %v2011_v38, %v497_v35  ;;  %v534_v45 = vmul.f32 %v2026_v21, %v501_v37  ;;  %v542_v59 = vmul.f32 %v510_v62, %v349_v19 }
 0x189   :  { %v523_v48 = vmul.f32 0.8333333, %v522_v57  ;;  %v531_v52 = vmul.f32 %v530_v58, %v497_v35  ;;  %v543_v61 = vmul.f32 %v514_v10, %v351_v40  ;;  %v505_v11 = vsub.f32 %v502_v30, %v504_v32 }
 0x18a   :  { %v529_v31 = vmul.f32 %v528_v60, %v493_v49  ;;  %v537_v41 = vmul.f32 0.8333334, %v2014_v3  ;;  %v539_v7 = vmul.f32 0.8333333, %v2034_v42  ;;  %v527_v63 = vmul.f32 0.8333333, %v526_v25 }
 0x18b   :  { %v535_v51 = vsub.f32 %v533_v28, %v534_v45  ;;  %v544_v56 = vadd.f32 %v543_v61, %v542_v59  ;;  %v545_v13 = vmul.f32 %v519_v24, %v353_v22  ;;  %v547_v17 = vmul.f32 %v523_v48, %v355_v5 }
 0x18c   :  { %v532_v38 = vsub.f32 %v529_v31, %v531_v52  ;;  %v538_v15 = vmul.f32 %v537_v41, %v501_v37  ;;  %v540_v16 = vmul.f32 %v539_v7, %v505_v11  ;;  %v549_v43 = vmul.f32 %v527_v63, %v357_v14 }
 0x18d   :  { %v546_v21 = vadd.f32 %v545_v13, %v544_v56  ;;  %v536_v2 = vmul.f32 0.8333334, %v535_v51  ;;  %vm1164_vm13 = vcmask 261120  }
 0x18e   :  { %v541_v44 = vsub.f32 %v538_v15, %v540_v16  ;;  %v551_v3 = vmul.f32 %v532_v38, %v359_v29 }
 0x18f   :  { %v548_v23 = vadd.f32 %v547_v17, %v546_v21  ;;  %v553_v26 = vmul.f32 %v536_v2, %v361_v6 }
 0x190   :  { %v555_v49 = vmul.f32 %v541_v44, %v363_v34 }
 0x191   :  { %v550_v33 = vadd.f32 %v549_v43, %v548_v23 }
 0x193   :  { %v552_v42 = vadd.f32 %v551_v3, %v550_v33 }
 0x195   :  { %v554_v27 = vadd.f32 %v553_v26, %v552_v42 }
 0x197   :  { %v556_v1 = vadd.f32 %v555_v49, %v554_v27 }
 0x199   :  { %1186 = vmatpush.msra.mxu1 %v556_v1  ;;  %1347 = vmatpush.msra.mxu3 %v556_v1 }
 0x19a   :  { %1342 = vmatmul.msk.f32.vlgmr.msra.gmra.mxu3 %vm1164_vm13, %v1161_v39  ;;  %1341 = vmatmul.msk.f32.vlgmr.msra.gmra.mxu1 %vm1164_vm13, %v1160_v0 }
 0x217   :  { %v1188_v8 = vpop.f32.mrf.mxu1 }
 0x218   :  { %v1189_v36 = vadd.f32 %v1188_v8, %v1162_v47 }
 0x21a   :  { %1194 = vst [vmem:[#allocation10] sm:$0xff] %v1189_v36 }
 0x21d   :  { %v1191_v35 = vpop.f32.mrf.mxu3 }
 0x21e   :  { %v1192_v50 = vadd.f32 %v1191_v35, %v1163_v46 }
 0x220   :  { %1195 = vst [vmem:[#allocation10 + $0x8] sm:$0xff] %v1192_v50 }
 0x221   :  { %1208 = dma.vmem_to_hbm [thread:$0]  %s1201_s14, 256, %s1203_s15, [#allocation4], %s1485_s9, %s1485_s9, %s1486_s10  }
 0x222   :  { %1482 = dma.done.wait [#allocation4], 256  }
 0x223   :  { %1483 = vsyncadd [#allocation4], 4294967040 }
 0x224   :  { %1213 = vsyncpa [#allocation3], 1 }
 0x225   :  { %1214 = vsyncpa [#allocation6], 1 }
 0x226   :  { %1215 = vsyncpa [#allocation9], 1 }
 0x227   :  { %1216 = vsyncpa [#allocation4], 1 }

</bundles_post_ra>
